<compile_context>
chip_gen: v7x
topology: tpu7x:2x2x1
jax: 0.10.0
libtpu: 0.0.40
codegen_flags: <defaults>
</compile_context>

<pallas_src>
import functools

import jax
import jax.numpy as jnp
from jax.experimental import pallas as pl
from jax.experimental.pallas import tpu as pltpu


# ----------------------------------------------------------------------------
# Kernel 1: fused QKV projection.
#   One (tm, D) @ (D, 3D) matmul per input (scale already folded into the Q
#   third of the weights), bf16 operands, fp32 accumulation, bf16 Q/K/V written
#   straight to the HBM outputs (no scratch pass).
# ----------------------------------------------------------------------------
def _proj_kernel(x_ref, y_ref, wx_ref, wy_ref, bx_ref, by_ref,
                 q1_ref, k1_ref, v1_ref, q2_ref, k2_ref, v2_ref):
    D = x_ref.shape[-1]

    def proj(inp_ref, w_ref, b_ref, q_ref, k_ref, v_ref):
        qkv = jnp.dot(inp_ref[...].astype(jnp.bfloat16), w_ref[...],
                      preferred_element_type=jnp.float32) + b_ref[...]
        q_ref[...] = qkv[:, 0:D].astype(q_ref.dtype)
        k_ref[...] = qkv[:, D:2 * D].astype(k_ref.dtype)
        v_ref[...] = qkv[:, 2 * D:3 * D].astype(v_ref.dtype)

    proj(x_ref, wx_ref, bx_ref, q1_ref, k1_ref, v1_ref)
    proj(y_ref, wy_ref, by_ref, q2_ref, k2_ref, v2_ref)


# ----------------------------------------------------------------------------
# Kernel 2: cross-attention, gridded over query tiles (pure "parallel" axis).
#   K/V (bf16) are VMEM-resident via constant index maps; X/Y/Q/out are tiles.
# ----------------------------------------------------------------------------
def _attn_kernel(x_ref, y_ref, q1_ref, k2_ref, v2_ref, q2_ref, k1_ref, v1_ref,
                 out_ref, *, approx_recip):
    s1 = jnp.einsum('bqd,bkd->bqk', q1_ref[...], k2_ref[...],
                    preferred_element_type=jnp.float32)
    s2 = jnp.einsum('bqd,bkd->bqk', q2_ref[...], k1_ref[...],
                    preferred_element_type=jnp.float32)

    def softmax_dim0(s):
        # Faithful to F.softmax(<3-D>) default: softmax over dim=0 (batch axis).
        m = jnp.max(s, axis=0, keepdims=True)
        e = jnp.exp(s - m)
        denom = jnp.sum(e, axis=0, keepdims=True)
        if approx_recip:
            return e * pl.reciprocal(denom, approx=True)   # EUP slot, ~free
        return e / denom

    a1 = softmax_dim0(s1).astype(v2_ref.dtype)   # bf16 operands for the PV matmul
    a2 = softmax_dim0(s2).astype(v1_ref.dtype)

    o1 = jnp.einsum('bqk,bkd->bqd', a1, v2_ref[...],
                    preferred_element_type=jnp.float32)
    o2 = jnp.einsum('bqk,bkd->bqd', a2, v1_ref[...],
                    preferred_element_type=jnp.float32)

    out_ref[...] = (x_ref[...].astype(jnp.float32)
                    + y_ref[...].astype(jnp.float32)
                    + o1 + o2).astype(out_ref.dtype)


# ----------------------------------------------------------------------------
# Helpers
# ----------------------------------------------------------------------------
def _pick_divisor(n, cap):
    """Largest multiple-of-8 divisor of n that is <= cap; n if none (full block)."""
    for cand in range(cap, 7, -8):
        if n % cand == 0:
            return cand
    return n


def _vmem_limit(est_bytes):
    """Clamp the requested VMEM limit to physical capacity minus headroom."""
    try:
        cap = int(pltpu.get_tpu_info().vmem_capacity_bytes)
    except Exception:
        cap = 64 * 1024 * 1024          # conservative: v7x per-TC VMEM
    ceiling = max(cap - 8 * 1024 * 1024, 16 * 1024 * 1024)
    return int(min(max(int(1.5 * est_bytes), 16 * 1024 * 1024), ceiling))


def prepare_params(params, *, weight_dtype=jnp.bfloat16):
    """One-time host-side weight prep: transpose PyTorch (out,in) weights to
    (in,out), concatenate [Q|K|V] along the output axis, fold the 1/sqrt(D)
    attention scale into the Q weight/bias, cast weights to bf16 (MXU-native)."""
    D = params['wxq'].shape[0]
    scale = 1.0 / jnp.sqrt(jnp.float32(D))

    def fuse(wq, wk, wv, bq, bk, bv):
        w = jnp.concatenate([wq.T * scale, wk.T, wv.T], axis=1)            # (D, 3D)
        b = jnp.concatenate([bq * scale, bk, bv], axis=0).reshape(1, 3 * D)
        return w.astype(weight_dtype), b.astype(jnp.float32)

    wx, bx = fuse(params['wxq'], params['wxk'], params['wxv'],
                  params['bxq'], params['bxk'], params['bxv'])
    wy, by = fuse(params['wyq'], params['wyk'], params['wyv'],
                  params['byq'], params['byk'], params['byv'])
    return {'wx': wx, 'wy': wy, 'bx': bx, 'by': by}


@functools.partial(jax.jit, static_argnames=('tq', 'approx_recip'))
def ca_forward(x, y, fused, tq=None, approx_recip=True):
    """x, y: (B, S, D) float32.  fused: output of prepare_params."""
    B, S, D = x.shape
    wx, wy, bx, by = fused['wx'], fused['wy'], fused['bx'], fused['by']

    # ---------------- Kernel 1: fused QKV projection over flattened rows -------
    BS = B * S
    tm = BS if BS <= 1024 else _pick_divisor(BS, 512)
    x2 = x.reshape(BS, D)
    y2 = y.reshape(BS, D)

    row_spec = pl.BlockSpec((tm, D), lambda i: (i, 0))
    w_spec = pl.BlockSpec((D, 3 * D), lambda i: (0, 0))     # resident weights
    b_spec = pl.BlockSpec((1, 3 * D), lambda i: (0, 0))

    proj_flops = 2 * 2 * BS * D * (3 * D)
    proj_bytes = int(2 * BS * D * x.dtype.itemsize
                     + 2 * D * 3 * D * wx.dtype.itemsize
                     + 2 * 3 * D * 4
                     + 6 * BS * D * 2)
    proj_vmem_est = (2 * (2 * tm * D * x.dtype.itemsize      # x/y tiles (dbl-buf)
                          + 6 * tm * D * 2)                  # q/k/v output tiles
                     + 2 * D * 3 * D * wx.dtype.itemsize     # resident weights
                     + 2 * 3 * D * 4
                     + 2 * tm * 3 * D * 4)                   # fp32 matmul temps

    q1, k1, v1, q2, k2, v2 = pl.pallas_call(
        _proj_kernel,
        out_shape=tuple(jax.ShapeDtypeStruct((BS, D), jnp.bfloat16)
                        for _ in range(6)),
        grid_spec=pltpu.PrefetchScalarGridSpec(
            num_scalar_prefetch=0,
            grid=(BS // tm,),
            in_specs=[row_spec, row_spec, w_spec, w_spec, b_spec, b_spec],
            out_specs=[pl.BlockSpec((tm, D), lambda i: (i, 0))
                       for _ in range(6)]),
        compiler_params=pltpu.CompilerParams(
            dimension_semantics=("parallel",),
            vmem_limit_bytes=_vmem_limit(proj_vmem_est)),
        cost_estimate=pl.CostEstimate(flops=proj_flops, transcendentals=0,
                                      bytes_accessed=proj_bytes),
    )(x2, y2, wx, wy, bx, by)

    q1, k1, v1, q2, k2, v2 = (a.reshape(B, S, D)
                              for a in (q1, k1, v1, q2, k2, v2))

    # Pad K/V along the key axis to a multiple of 128 so the (B, tq, S) score /
    # probability tensors are lane-dense.  Exact: padded V rows are zero, so they
    # contribute nothing to attn @ V (the softmax is over the batch axis).
    S_kv = -(-S // 128) * 128
    if S_kv != S:
        pad = ((0, 0), (0, S_kv - S), (0, 0))
        k1, v1 = jnp.pad(k1, pad), jnp.pad(v1, pad)
        k2, v2 = jnp.pad(k2, pad), jnp.pad(v2, pad)

    # ---------------- Kernel 2: attention, gridded over query tiles ------------
    if tq is None:
        tq = S if S <= 512 else _pick_divisor(S, 256)
    if S % tq != 0 or not (tq % 8 == 0 or tq == S):
        raise ValueError(f"tq={tq} must divide S={S} and be a multiple of 8")

    q_spec = pl.BlockSpec((B, tq, D), lambda i: (0, i, 0))        # per-tile
    kv_spec = pl.BlockSpec((B, S_kv, D), lambda i: (0, 0, 0))     # VMEM-resident

    attn_flops = 8 * B * S * S_kv * D
    attn_trans = 2 * B * S * S_kv
    attn_bytes = int(2 * B * S * D * x.dtype.itemsize             # x, y
                     + 2 * B * S * D * 2                          # q1, q2
                     + 4 * B * S_kv * D * 2                       # k/v
                     + B * S * D * x.dtype.itemsize)              # out
    attn_vmem_est = (2 * 4 * B * S_kv * D * 2                     # resident k/v
                     + 2 * 2 * B * tq * D * 2                     # q tiles
                     + 2 * 3 * B * tq * D * x.dtype.itemsize      # x/y/out tiles
                     + 4 * B * tq * S_kv * 4                      # score/prob temps
                     + 2 * B * tq * D * 4)                        # o1/o2 temps

    kernel = functools.partial(_attn_kernel, approx_recip=approx_recip)
    return pl.pallas_call(
        kernel,
        out_shape=jax.ShapeDtypeStruct((B, S, D), x.dtype),
        grid_spec=pltpu.PrefetchScalarGridSpec(
            num_scalar_prefetch=0,
            grid=(S // tq,),
            in_specs=[q_spec, q_spec,                 # x, y  (residual tiles)
                      q_spec, kv_spec, kv_spec,       # q1, k2, v2
                      q_spec, kv_spec, kv_spec],      # q2, k1, v1
            out_specs=pl.BlockSpec((B, tq, D), lambda i: (0, i, 0))),
        compiler_params=pltpu.CompilerParams(
            dimension_semantics=("parallel",),        # no cross-step state
            vmem_limit_bytes=_vmem_limit(attn_vmem_est)),
        cost_estimate=pl.CostEstimate(flops=attn_flops,
                                      transcendentals=attn_trans,
                                      bytes_accessed=attn_bytes),
    )(x, y, q1, k2, v2, q2, k1, v1)


# ----------------------------------------------------------------------------
# Reference / init
# ----------------------------------------------------------------------------
def init_params(key, feature_dim):
    """Deterministic synthetic init mimicking nn.Linear shapes (out, in) + (out,)."""
    keys = jax.random.split(key, 12)
    names_w = ('wxq', 'wxk', 'wxv', 'wyq', 'wyk', 'wyv')
    names_b = ('bxq', 'bxk', 'bxv', 'byq', 'byk', 'byv')
    bound = 1.0 / jnp.sqrt(feature_dim)
    params = {}
    for i, n in enumerate(names_w):
        params[n] = jax.random.uniform(
            keys[i], (feature_dim, feature_dim), jnp.float32, -bound, bound)
    for i, n in enumerate(names_b):
        params[n] = jax.random.uniform(
            keys[6 + i], (feature_dim,), jnp.float32, -bound, bound)
    return params


def ca_reference(x, y, params):
    """Pure-JAX fp32 reference mirroring the PyTorch forward (eval mode)."""
    D = x.shape[-1]
    hi = jax.lax.Precision.HIGHEST

    def lin(inp, w, b):
        return jnp.matmul(inp, w.T, precision=hi) + b

    q1, k1, v1 = (lin(x, params['wxq'], params['bxq']),
                  lin(x, params['wxk'], params['bxk']),
                  lin(x, params['wxv'], params['bxv']))
    q2, k2, v2 = (lin(y, params['wyq'], params['byq']),
                  lin(y, params['wyk'], params['byk']),
                  lin(y, params['wyv'], params['byv']))
    s1 = jnp.einsum('bqd,bkd->bqk', q1, k2, precision=hi) / jnp.sqrt(jnp.float32(D))
    s2 = jnp.einsum('bqd,bkd->bqk', q2, k1, precision=hi) / jnp.sqrt(jnp.float32(D))
    a1 = jax.nn.softmax(s1, axis=0)   # PyTorch's implicit dim=0 for 3-D input
    a2 = jax.nn.softmax(s2, axis=0)
    u1 = x + jnp.einsum('bqk,bkd->bqd', a1, v2, precision=hi)
    u2 = y + jnp.einsum('bqk,bkd->bqd', a2, v1, precision=hi)
    return u1 + u2


if __name__ == "__main__":
    # feature_dim matches the module default (256); small demo shapes.
    B, S, D = 2, 64, 256

    key = jax.random.PRNGKey(0)
    kx, ky, kp = jax.random.split(key, 3)
    x = jax.random.normal(kx, (B, S, D), jnp.float32)
    y = jax.random.normal(ky, (B, S, D), jnp.float32)
    params = init_params(kp, D)
    fused = prepare_params(params)          # one-time host-side weight prep

    out = ca_forward(x, y, fused)           # S<=512 -> tq=S, single grid step
    out = jax.block_until_ready(out)

    ref = ca_reference(x, y, params)
    assert out.shape == ref.shape == (B, S, D)
    max_err = float(jnp.max(jnp.abs(out - ref)))
    ref_scale = float(jnp.max(jnp.abs(ref)))
    # Tolerance sized for bf16 MXU operands + approx-reciprocal softmax on
    # attention outputs of magnitude ~|ref|: 3% relative (wrong semantics would
    # be O(100%) relative).
    assert max_err <= 3e-2 * ref_scale + 1e-3, (
        f"mismatch vs reference: max_abs_err={max_err}, ref_scale={ref_scale}")

    print("KERNEL_OK")
</pallas_src>

<mosaic_0001>
module attributes {stable_mosaic.version = 11 : i64} {
  func.func @_proj_kernel(%arg0: i32, %arg1: memref<128x256xf32, #tpu.memory_space<vmem>>, %arg2: memref<128x256xf32, #tpu.memory_space<vmem>>, %arg3: memref<256x768xbf16, #tpu.memory_space<vmem>>, %arg4: memref<256x768xbf16, #tpu.memory_space<vmem>>, %arg5: memref<1x768xf32, #tpu.memory_space<vmem>>, %arg6: memref<1x768xf32, #tpu.memory_space<vmem>>, %arg7: memref<128x256xbf16, #tpu.memory_space<vmem>>, %arg8: memref<128x256xbf16, #tpu.memory_space<vmem>>, %arg9: memref<128x256xbf16, #tpu.memory_space<vmem>>, %arg10: memref<128x256xbf16, #tpu.memory_space<vmem>>, %arg11: memref<128x256xbf16, #tpu.memory_space<vmem>>, %arg12: memref<128x256xbf16, #tpu.memory_space<vmem>>) attributes {dimension_semantics = [#tpu.dimension_semantics<parallel>], iteration_bounds = array<i64: 1>, scalar_prefetch = 0 : i64, scratch_operands = 0 : i64, tpu.core_type = #tpu.core_type<tc>, window_params = [{transform_indices = @transform_0, window_bounds = array<i64: 128, 256>}, {transform_indices = @transform_1, window_bounds = array<i64: 128, 256>}, {pipeline_mode = #tpu.pipeline_mode<synchronous>, transform_indices = @transform_2, window_bounds = array<i64: 256, 768>}, {pipeline_mode = #tpu.pipeline_mode<synchronous>, transform_indices = @transform_3, window_bounds = array<i64: 256, 768>}, {pipeline_mode = #tpu.pipeline_mode<synchronous>, transform_indices = @transform_4, window_bounds = array<i64: 1, 768>}, {pipeline_mode = #tpu.pipeline_mode<synchronous>, transform_indices = @transform_5, window_bounds = array<i64: 1, 768>}, {transform_indices = @transform_6, window_bounds = array<i64: 128, 256>}, {transform_indices = @transform_7, window_bounds = array<i64: 128, 256>}, {transform_indices = @transform_8, window_bounds = array<i64: 128, 256>}, {transform_indices = @transform_9, window_bounds = array<i64: 128, 256>}, {transform_indices = @transform_10, window_bounds = array<i64: 128, 256>}, {transform_indices = @transform_11, window_bounds = array<i64: 128, 256>}]} {
    %c0 = arith.constant 0 : index
    %c0_0 = arith.constant 0 : index
    %0 = vector.load %arg1[%c0, %c0_0] : memref<128x256xf32, #tpu.memory_space<vmem>>, vector<128x256xf32>
    %1 = arith.truncf %0 : vector<128x256xf32> to vector<128x256xbf16>
    %c0_1 = arith.constant 0 : index
    %c0_2 = arith.constant 0 : index
    %2 = vector.load %arg3[%c0_1, %c0_2] : memref<256x768xbf16, #tpu.memory_space<vmem>>, vector<256x768xbf16>
    %cst = arith.constant dense<0.000000e+00> : vector<128x768xf32>
    %3 = tpu.matmul %1, %2, %cst {dimension_numbers = #tpu.dot_dimension_numbers<[1], [0], [0], [1], [0, 0, 1, 1], [], []>} : vector<128x256xbf16>, vector<256x768xbf16>, vector<128x768xf32> -> vector<128x768xf32>
    %c0_3 = arith.constant 0 : index
    %c0_4 = arith.constant 0 : index
    %4 = vector.load %arg5[%c0_3, %c0_4] : memref<1x768xf32, #tpu.memory_space<vmem>>, vector<1x768xf32>
    %5 = vector.broadcast %4 : vector<1x768xf32> to vector<128x768xf32>
    %6 = arith.addf %3, %5 : vector<128x768xf32>
    %7 = vector.extract_strided_slice %6 {offsets = [0, 0], sizes = [128, 256], strides = [1, 1]} : vector<128x768xf32> to vector<128x256xf32>
    %8 = arith.truncf %7 : vector<128x256xf32> to vector<128x256xbf16>
    %c0_5 = arith.constant 0 : index
    %c0_6 = arith.constant 0 : index
    %9 = vector.load %arg7[%c0_5, %c0_6] : memref<128x256xbf16, #tpu.memory_space<vmem>>, vector<128x256xbf16>
    tpu.vector_store %arg7[%c0_5, %c0_6], %8 {strides = array<i32>} : memref<128x256xbf16, #tpu.memory_space<vmem>>, vector<128x256xbf16>,
    %10 = vector.extract_strided_slice %6 {offsets = [0, 256], sizes = [128, 256], strides = [1, 1]} : vector<128x768xf32> to vector<128x256xf32>
    %11 = arith.truncf %10 : vector<128x256xf32> to vector<128x256xbf16>
    %c0_7 = arith.constant 0 : index
    %c0_8 = arith.constant 0 : index
    %12 = vector.load %arg8[%c0_7, %c0_8] : memref<128x256xbf16, #tpu.memory_space<vmem>>, vector<128x256xbf16>
    tpu.vector_store %arg8[%c0_7, %c0_8], %11 {strides = array<i32>} : memref<128x256xbf16, #tpu.memory_space<vmem>>, vector<128x256xbf16>,
    %13 = vector.extract_strided_slice %6 {offsets = [0, 512], sizes = [128, 256], strides = [1, 1]} : vector<128x768xf32> to vector<128x256xf32>
    %14 = arith.truncf %13 : vector<128x256xf32> to vector<128x256xbf16>
    %c0_9 = arith.constant 0 : index
    %c0_10 = arith.constant 0 : index
    %15 = vector.load %arg9[%c0_9, %c0_10] : memref<128x256xbf16, #tpu.memory_space<vmem>>, vector<128x256xbf16>
    tpu.vector_store %arg9[%c0_9, %c0_10], %14 {strides = array<i32>} : memref<128x256xbf16, #tpu.memory_space<vmem>>, vector<128x256xbf16>,
    %c0_11 = arith.constant 0 : index
    %c0_12 = arith.constant 0 : index
    %16 = vector.load %arg2[%c0_11, %c0_12] : memref<128x256xf32, #tpu.memory_space<vmem>>, vector<128x256xf32>
    %17 = arith.truncf %16 : vector<128x256xf32> to vector<128x256xbf16>
    %c0_13 = arith.constant 0 : index
    %c0_14 = arith.constant 0 : index
    %18 = vector.load %arg4[%c0_13, %c0_14] : memref<256x768xbf16, #tpu.memory_space<vmem>>, vector<256x768xbf16>
    %cst_15 = arith.constant dense<0.000000e+00> : vector<128x768xf32>
    %19 = tpu.matmul %17, %18, %cst_15 {dimension_numbers = #tpu.dot_dimension_numbers<[1], [0], [0], [1], [0, 0, 1, 1], [], []>} : vector<128x256xbf16>, vector<256x768xbf16>, vector<128x768xf32> -> vector<128x768xf32>
    %c0_16 = arith.constant 0 : index
    %c0_17 = arith.constant 0 : index
    %20 = vector.load %arg6[%c0_16, %c0_17] : memref<1x768xf32, #tpu.memory_space<vmem>>, vector<1x768xf32>
    %21 = vector.broadcast %20 : vector<1x768xf32> to vector<128x768xf32>
    %22 = arith.addf %19, %21 : vector<128x768xf32>
    %23 = vector.extract_strided_slice %22 {offsets = [0, 0], sizes = [128, 256], strides = [1, 1]} : vector<128x768xf32> to vector<128x256xf32>
    %24 = arith.truncf %23 : vector<128x256xf32> to vector<128x256xbf16>
    %c0_18 = arith.constant 0 : index
    %c0_19 = arith.constant 0 : index
    %25 = vector.load %arg10[%c0_18, %c0_19] : memref<128x256xbf16, #tpu.memory_space<vmem>>, vector<128x256xbf16>
    tpu.vector_store %arg10[%c0_18, %c0_19], %24 {strides = array<i32>} : memref<128x256xbf16, #tpu.memory_space<vmem>>, vector<128x256xbf16>,
    %26 = vector.extract_strided_slice %22 {offsets = [0, 256], sizes = [128, 256], strides = [1, 1]} : vector<128x768xf32> to vector<128x256xf32>
    %27 = arith.truncf %26 : vector<128x256xf32> to vector<128x256xbf16>
    %c0_20 = arith.constant 0 : index
    %c0_21 = arith.constant 0 : index
    %28 = vector.load %arg11[%c0_20, %c0_21] : memref<128x256xbf16, #tpu.memory_space<vmem>>, vector<128x256xbf16>
    tpu.vector_store %arg11[%c0_20, %c0_21], %27 {strides = array<i32>} : memref<128x256xbf16, #tpu.memory_space<vmem>>, vector<128x256xbf16>,
    %29 = vector.extract_strided_slice %22 {offsets = [0, 512], sizes = [128, 256], strides = [1, 1]} : vector<128x768xf32> to vector<128x256xf32>
    %30 = arith.truncf %29 : vector<128x256xf32> to vector<128x256xbf16>
    %c0_22 = arith.constant 0 : index
    %c0_23 = arith.constant 0 : index
    %31 = vector.load %arg12[%c0_22, %c0_23] : memref<128x256xbf16, #tpu.memory_space<vmem>>, vector<128x256xbf16>
    tpu.vector_store %arg12[%c0_22, %c0_23], %30 {strides = array<i32>} : memref<128x256xbf16, #tpu.memory_space<vmem>>, vector<128x256xbf16>,
    return
  }
  func.func @transform_0(%arg0: i32) -> (i32, i32) {
    %c0_i32 = arith.constant 0 : i32
    %c0_i32_0 = arith.constant 0 : i32
    return %arg0, %c0_i32 : i32, i32
  }
  func.func @transform_1(%arg0: i32) -> (i32, i32) {
    %c0_i32 = arith.constant 0 : i32
    %c0_i32_0 = arith.constant 0 : i32
    return %arg0, %c0_i32 : i32, i32
  }
  func.func @transform_2(%arg0: i32) -> (i32, i32) {
    %c0_i32 = arith.constant 0 : i32
    %c0_i32_0 = arith.constant 0 : i32
    %c0_i32_1 = arith.constant 0 : i32
    return %c0_i32, %c0_i32_0 : i32, i32
  }
  func.func @transform_3(%arg0: i32) -> (i32, i32) {
    %c0_i32 = arith.constant 0 : i32
    %c0_i32_0 = arith.constant 0 : i32
    %c0_i32_1 = arith.constant 0 : i32
    return %c0_i32, %c0_i32_0 : i32, i32
  }
  func.func @transform_4(%arg0: i32) -> (i32, i32) {
    %c0_i32 = arith.constant 0 : i32
    %c0_i32_0 = arith.constant 0 : i32
    %c0_i32_1 = arith.constant 0 : i32
    return %c0_i32, %c0_i32_0 : i32, i32
  }
  func.func @transform_5(%arg0: i32) -> (i32, i32) {
    %c0_i32 = arith.constant 0 : i32
    %c0_i32_0 = arith.constant 0 : i32
    %c0_i32_1 = arith.constant 0 : i32
    return %c0_i32, %c0_i32_0 : i32, i32
  }
  func.func @transform_6(%arg0: i32) -> (i32, i32) {
    %c0_i32 = arith.constant 0 : i32
    %c0_i32_0 = arith.constant 0 : i32
    return %arg0, %c0_i32 : i32, i32
  }
  func.func @transform_7(%arg0: i32) -> (i32, i32) {
    %c0_i32 = arith.constant 0 : i32
    %c0_i32_0 = arith.constant 0 : i32
    return %arg0, %c0_i32 : i32, i32
  }
  func.func @transform_8(%arg0: i32) -> (i32, i32) {
    %c0_i32 = arith.constant 0 : i32
    %c0_i32_0 = arith.constant 0 : i32
    return %arg0, %c0_i32 : i32, i32
  }
  func.func @transform_9(%arg0: i32) -> (i32, i32) {
    %c0_i32 = arith.constant 0 : i32
    %c0_i32_0 = arith.constant 0 : i32
    return %arg0, %c0_i32 : i32, i32
  }
  func.func @transform_10(%arg0: i32) -> (i32, i32) {
    %c0_i32 = arith.constant 0 : i32
    %c0_i32_0 = arith.constant 0 : i32
    return %arg0, %c0_i32 : i32, i32
  }
  func.func @transform_11(%arg0: i32) -> (i32, i32) {
    %c0_i32 = arith.constant 0 : i32
    %c0_i32_0 = arith.constant 0 : i32
    return %arg0, %c0_i32 : i32, i32
  }
}

module attributes {stable_mosaic.version = 11 : i64} {
  func.func @_attn_kernel(%arg0: i32, %arg1: memref<2x64x256xf32, #tpu.memory_space<vmem>>, %arg2: memref<2x64x256xf32, #tpu.memory_space<vmem>>, %arg3: memref<2x64x256xbf16, #tpu.memory_space<vmem>>, %arg4: memref<2x128x256xbf16, #tpu.memory_space<vmem>>, %arg5: memref<2x128x256xbf16, #tpu.memory_space<vmem>>, %arg6: memref<2x64x256xbf16, #tpu.memory_space<vmem>>, %arg7: memref<2x128x256xbf16, #tpu.memory_space<vmem>>, %arg8: memref<2x128x256xbf16, #tpu.memory_space<vmem>>, %arg9: memref<2x64x256xf32, #tpu.memory_space<vmem>>) attributes {dimension_semantics = [#tpu.dimension_semantics<parallel>], iteration_bounds = array<i64: 1>, scalar_prefetch = 0 : i64, scratch_operands = 0 : i64, tpu.core_type = #tpu.core_type<tc>, window_params = [{transform_indices = @transform_0, window_bounds = array<i64: 2, 64, 256>}, {transform_indices = @transform_1, window_bounds = array<i64: 2, 64, 256>}, {transform_indices = @transform_2, window_bounds = array<i64: 2, 64, 256>}, {pipeline_mode = #tpu.pipeline_mode<synchronous>, transform_indices = @transform_3, window_bounds = array<i64: 2, 128, 256>}, {pipeline_mode = #tpu.pipeline_mode<synchronous>, transform_indices = @transform_4, window_bounds = array<i64: 2, 128, 256>}, {transform_indices = @transform_5, window_bounds = array<i64: 2, 64, 256>}, {pipeline_mode = #tpu.pipeline_mode<synchronous>, transform_indices = @transform_6, window_bounds = array<i64: 2, 128, 256>}, {pipeline_mode = #tpu.pipeline_mode<synchronous>, transform_indices = @transform_7, window_bounds = array<i64: 2, 128, 256>}, {transform_indices = @transform_8, window_bounds = array<i64: 2, 64, 256>}]} {
    %c0 = arith.constant 0 : index
    %c0_0 = arith.constant 0 : index
    %c0_1 = arith.constant 0 : index
    %0 = vector.load %arg3[%c0, %c0_0, %c0_1] : memref<2x64x256xbf16, #tpu.memory_space<vmem>>, vector<2x64x256xbf16>
    %c0_2 = arith.constant 0 : index
    %c0_3 = arith.constant 0 : index
    %c0_4 = arith.constant 0 : index
    %1 = vector.load %arg4[%c0_2, %c0_3, %c0_4] : memref<2x128x256xbf16, #tpu.memory_space<vmem>>, vector<2x128x256xbf16>
    "tpu.trace_start"() <{level = 10 : i32, message = "bqd,bkd->bqk"}> : () -> ()
    %cst = arith.constant dense<0.000000e+00> : vector<2x64x128xf32>
    %2 = tpu.matmul %0, %1, %cst {dimension_numbers = #tpu.dot_dimension_numbers<[2], [2], [1], [1], [0, 0, 0, 1, 1, 1], [0], [0]>} : vector<2x64x256xbf16>, vector<2x128x256xbf16>, vector<2x64x128xf32> -> vector<2x64x128xf32>
    "tpu.trace_stop"() : () -> ()
    %c0_5 = arith.constant 0 : index
    %c0_6 = arith.constant 0 : index
    %c0_7 = arith.constant 0 : index
    %3 = vector.load %arg6[%c0_5, %c0_6, %c0_7] : memref<2x64x256xbf16, #tpu.memory_space<vmem>>, vector<2x64x256xbf16>
    %c0_8 = arith.constant 0 : index
    %c0_9 = arith.constant 0 : index
    %c0_10 = arith.constant 0 : index
    %4 = vector.load %arg7[%c0_8, %c0_9, %c0_10] : memref<2x128x256xbf16, #tpu.memory_space<vmem>>, vector<2x128x256xbf16>
    "tpu.trace_start"() <{level = 10 : i32, message = "bqd,bkd->bqk"}> : () -> ()
    %cst_11 = arith.constant dense<0.000000e+00> : vector<2x64x128xf32>
    %5 = tpu.matmul %3, %4, %cst_11 {dimension_numbers = #tpu.dot_dimension_numbers<[2], [2], [1], [1], [0, 0, 0, 1, 1, 1], [0], [0]>} : vector<2x64x256xbf16>, vector<2x128x256xbf16>, vector<2x64x128xf32> -> vector<2x64x128xf32>
    "tpu.trace_stop"() : () -> ()
    %cst_12 = arith.constant dense<0xFF800000> : vector<64x128xf32>
    %6 = vector.multi_reduction <maximumf>, %2, %cst_12 [0] : vector<2x64x128xf32> to vector<64x128xf32>
    %7 = vector.shape_cast %6 : vector<64x128xf32> to vector<1x64x128xf32>
    %8 = vector.broadcast %7 : vector<1x64x128xf32> to vector<2x64x128xf32>
    %9 = arith.subf %2, %8 : vector<2x64x128xf32>
    %10 = math.exp %9 : vector<2x64x128xf32>
    %cst_13 = arith.constant dense<0.000000e+00> : vector<64x128xf32>
    %11 = vector.multi_reduction <add>, %10, %cst_13 [0] : vector<2x64x128xf32> to vector<64x128xf32>
    %12 = vector.shape_cast %11 : vector<64x128xf32> to vector<1x64x128xf32>
    %13 = tpu.reciprocal %12 {approx = true} : vector<1x64x128xf32> -> vector<1x64x128xf32>
    %14 = vector.broadcast %13 : vector<1x64x128xf32> to vector<2x64x128xf32>
    %15 = arith.mulf %10, %14 : vector<2x64x128xf32>
    %16 = arith.truncf %15 : vector<2x64x128xf32> to vector<2x64x128xbf16>
    %cst_14 = arith.constant dense<0xFF800000> : vector<64x128xf32>
    %17 = vector.multi_reduction <maximumf>, %5, %cst_14 [0] : vector<2x64x128xf32> to vector<64x128xf32>
    %18 = vector.shape_cast %17 : vector<64x128xf32> to vector<1x64x128xf32>
    %19 = vector.broadcast %18 : vector<1x64x128xf32> to vector<2x64x128xf32>
    %20 = arith.subf %5, %19 : vector<2x64x128xf32>
    %21 = math.exp %20 : vector<2x64x128xf32>
    %cst_15 = arith.constant dense<0.000000e+00> : vector<64x128xf32>
    %22 = vector.multi_reduction <add>, %21, %cst_15 [0] : vector<2x64x128xf32> to vector<64x128xf32>
    %23 = vector.shape_cast %22 : vector<64x128xf32> to vector<1x64x128xf32>
    %24 = tpu.reciprocal %23 {approx = true} : vector<1x64x128xf32> -> vector<1x64x128xf32>
    %25 = vector.broadcast %24 : vector<1x64x128xf32> to vector<2x64x128xf32>
    %26 = arith.mulf %21, %25 : vector<2x64x128xf32>
    %27 = arith.truncf %26 : vector<2x64x128xf32> to vector<2x64x128xbf16>
    %c0_16 = arith.constant 0 : index
    %c0_17 = arith.constant 0 : index
    %c0_18 = arith.constant 0 : index
    %28 = vector.load %arg5[%c0_16, %c0_17, %c0_18] : memref<2x128x256xbf16, #tpu.memory_space<vmem>>, vector<2x128x256xbf16>
    "tpu.trace_start"() <{level = 10 : i32, message = "bqk,bkd->bqd"}> : () -> ()
    %cst_19 = arith.constant dense<0.000000e+00> : vector<2x64x256xf32>
    %29 = tpu.matmul %16, %28, %cst_19 {dimension_numbers = #tpu.dot_dimension_numbers<[2], [1], [1], [2], [0, 0, 0, 1, 1, 2], [0], [0]>} : vector<2x64x128xbf16>, vector<2x128x256xbf16>, vector<2x64x256xf32> -> vector<2x64x256xf32>
    "tpu.trace_stop"() : () -> ()
    %c0_20 = arith.constant 0 : index
    %c0_21 = arith.constant 0 : index
    %c0_22 = arith.constant 0 : index
    %30 = vector.load %arg8[%c0_20, %c0_21, %c0_22] : memref<2x128x256xbf16, #tpu.memory_space<vmem>>, vector<2x128x256xbf16>
    "tpu.trace_start"() <{level = 10 : i32, message = "bqk,bkd->bqd"}> : () -> ()
    %cst_23 = arith.constant dense<0.000000e+00> : vector<2x64x256xf32>
    %31 = tpu.matmul %27, %30, %cst_23 {dimension_numbers = #tpu.dot_dimension_numbers<[2], [1], [1], [2], [0, 0, 0, 1, 1, 2], [0], [0]>} : vector<2x64x128xbf16>, vector<2x128x256xbf16>, vector<2x64x256xf32> -> vector<2x64x256xf32>
    "tpu.trace_stop"() : () -> ()
    %c0_24 = arith.constant 0 : index
    %c0_25 = arith.constant 0 : index
    %c0_26 = arith.constant 0 : index
    %32 = vector.load %arg1[%c0_24, %c0_25, %c0_26] : memref<2x64x256xf32, #tpu.memory_space<vmem>>, vector<2x64x256xf32>
    %c0_27 = arith.constant 0 : index
    %c0_28 = arith.constant 0 : index
    %c0_29 = arith.constant 0 : index
    %33 = vector.load %arg2[%c0_27, %c0_28, %c0_29] : memref<2x64x256xf32, #tpu.memory_space<vmem>>, vector<2x64x256xf32>
    %34 = arith.addf %32, %33 : vector<2x64x256xf32>
    %35 = arith.addf %34, %29 : vector<2x64x256xf32>
    %36 = arith.addf %35, %31 : vector<2x64x256xf32>
    %c0_30 = arith.constant 0 : index
    %c0_31 = arith.constant 0 : index
    %c0_32 = arith.constant 0 : index
    %37 = vector.load %arg9[%c0_30, %c0_31, %c0_32] : memref<2x64x256xf32, #tpu.memory_space<vmem>>, vector<2x64x256xf32>
    tpu.vector_store %arg9[%c0_30, %c0_31, %c0_32], %36 {strides = array<i32>} : memref<2x64x256xf32, #tpu.memory_space<vmem>>, vector<2x64x256xf32>,
    return
  }
  func.func @transform_0(%arg0: i32) -> (i32, i32, i32) {
    %c0_i32 = arith.constant 0 : i32
    %c0_i32_0 = arith.constant 0 : i32
    %c0_i32_1 = arith.constant 0 : i32
    return %c0_i32, %arg0, %c0_i32_0 : i32, i32, i32
  }
  func.func @transform_1(%arg0: i32) -> (i32, i32, i32) {
    %c0_i32 = arith.constant 0 : i32
    %c0_i32_0 = arith.constant 0 : i32
    %c0_i32_1 = arith.constant 0 : i32
    return %c0_i32, %arg0, %c0_i32_0 : i32, i32, i32
  }
  func.func @transform_2(%arg0: i32) -> (i32, i32, i32) {
    %c0_i32 = arith.constant 0 : i32
    %c0_i32_0 = arith.constant 0 : i32
    %c0_i32_1 = arith.constant 0 : i32
    return %c0_i32, %arg0, %c0_i32_0 : i32, i32, i32
  }
  func.func @transform_3(%arg0: i32) -> (i32, i32, i32) {
    %c0_i32 = arith.constant 0 : i32
    %c0_i32_0 = arith.constant 0 : i32
    %c0_i32_1 = arith.constant 0 : i32
    %c0_i32_2 = arith.constant 0 : i32
    return %c0_i32, %c0_i32_0, %c0_i32_1 : i32, i32, i32
  }
  func.func @transform_4(%arg0: i32) -> (i32, i32, i32) {
    %c0_i32 = arith.constant 0 : i32
    %c0_i32_0 = arith.constant 0 : i32
    %c0_i32_1 = arith.constant 0 : i32
    %c0_i32_2 = arith.constant 0 : i32
    return %c0_i32, %c0_i32_0, %c0_i32_1 : i32, i32, i32
  }
  func.func @transform_5(%arg0: i32) -> (i32, i32, i32) {
    %c0_i32 = arith.constant 0 : i32
    %c0_i32_0 = arith.constant 0 : i32
    %c0_i32_1 = arith.constant 0 : i32
    return %c0_i32, %arg0, %c0_i32_0 : i32, i32, i32
  }
  func.func @transform_6(%arg0: i32) -> (i32, i32, i32) {
    %c0_i32 = arith.constant 0 : i32
    %c0_i32_0 = arith.constant 0 : i32
    %c0_i32_1 = arith.constant 0 : i32
    %c0_i32_2 = arith.constant 0 : i32
    return %c0_i32, %c0_i32_0, %c0_i32_1 : i32, i32, i32
  }
  func.func @transform_7(%arg0: i32) -> (i32, i32, i32) {
    %c0_i32 = arith.constant 0 : i32
    %c0_i32_0 = arith.constant 0 : i32
    %c0_i32_1 = arith.constant 0 : i32
    %c0_i32_2 = arith.constant 0 : i32
    return %c0_i32, %c0_i32_0, %c0_i32_1 : i32, i32, i32
  }
  func.func @transform_8(%arg0: i32) -> (i32, i32, i32) {
    %c0_i32 = arith.constant 0 : i32
    %c0_i32_0 = arith.constant 0 : i32
    %c0_i32_1 = arith.constant 0 : i32
    return %c0_i32, %arg0, %c0_i32_0 : i32, i32, i32
  }
}

</mosaic_0001>

<bundles_post_ra>
// kernel: ca_forward.3
= control target key start
LH: loop header
LB: loop body
LE: loop exit
PB: predicated region body
PF: predicated region fallthrough
CT: control target
= control target key end

     0   :  { %s3288_s0 = inlined_call_operand.vmem [shape: f32[2,64,256], index: 0, kind: input, shape index: {}]   ;;  %s3289_s1 = inlined_call_operand.vmem [shape: f32[2,64,256], index: 1, kind: input, shape index: {}]   ;;  %s3290_s2 = inlined_call_operand.vmem [shape: bf16[2,64,256], index: 2, kind: input, shape index: {}]   ;;  %s3291_s3 = inlined_call_operand.vmem [shape: bf16[2,128,256], index: 3, kind: input, shape index: {}]   ;;  %s3292_s4 = inlined_call_operand.vmem [shape: bf16[2,128,256], index: 4, kind: input, shape index: {}]   ;;  %s3293_s5 = inlined_call_operand.vmem [shape: bf16[2,64,256], index: 5, kind: input, shape index: {}]   ;;  %s3294_s6 = inlined_call_operand.vmem [shape: bf16[2,128,256], index: 6, kind: input, shape index: {}]   ;;  %s3295_s7 = inlined_call_operand.vmem [shape: bf16[2,128,256], index: 7, kind: input, shape index: {}]   ;;  %s3296_s8 = inlined_call_operand.hbm [shape: f32[2,64,256], index: 8, kind: output, shape index: {}]  }
   0x1   :  { %v2171_v0 = vld [vmem:[%s3291_s3 + $0x4] ss:$8 sps:$4 sm:$0xff]   ;;  %v2175_v2 = vld [vmem:[%s3291_s3] ss:$8 sps:$4 sm:$0xff]   ;;  %v2177_v4 = vld [vmem:[%s3291_s3 + $0x14] ss:$8 sps:$4 sm:$0xff]  }
   0x2   :  { %v2173_v1 = vld [vmem:[%s3291_s3 + $0x84] ss:$8 sps:$4 sm:$0xff]   ;;  %199 = vmatprep.subr.bf16.mxu0 %v2171_v0  ;;  %v2176_v3 = vld [vmem:[%s3291_s3 + $0x80] ss:$8 sps:$4 sm:$0xff]   ;;  %v2179_v5 = vld [vmem:[%s3291_s3 + $0x94] ss:$8 sps:$4 sm:$0xff]  }
   0x3   :  { %384 = vmatprep.subr.bf16.mxu1 %v2173_v1  ;;  %200 = vmatpush1.bf16.xpose.msra.mxu0 %v2175_v2  ;;  %v2181_v6 = vld [vmem:[%s3291_s3 + $0x10] ss:$8 sps:$4 sm:$0xff]   ;;  %v2183_v8 = vld [vmem:[%s3291_s3 + $0x24] ss:$8 sps:$4 sm:$0xff]   ;;  %v2187_v10 = vld [vmem:[%s3291_s3 + $0x20] ss:$8 sps:$4 sm:$0xff]  }
   0x4   :  { %385 = vmatpush1.bf16.xpose.msra.mxu1 %v2176_v3  ;;  %201 = vmatprep.subr.bf16.mxu0 %v2177_v4  ;;  %v2182_v7 = vld [vmem:[%s3291_s3 + $0x90] ss:$8 sps:$4 sm:$0xff]   ;;  %v2185_v9 = vld [vmem:[%s3291_s3 + $0xa4] ss:$8 sps:$4 sm:$0xff]   ;;  %v2188_v11 = vld [vmem:[%s3291_s3 + $0xa0] ss:$8 sps:$4 sm:$0xff]  }
   0x5   :  { %386 = vmatprep.subr.bf16.mxu1 %v2179_v5  ;;  %v2189_v12 = vld [vmem:[%s3291_s3 + $0x34] ss:$8 sps:$4 sm:$0xff]   ;;  %v2193_v14 = vld [vmem:[%s3291_s3 + $0x30] ss:$8 sps:$4 sm:$0xff]   ;;  %v2221_v15 = vld [vmem:[%s3290_s2 + $0x4] ss:$8 sps:$4 sm:$0xff]  }
   0x6   :  { %v2191_v13 = vld [vmem:[%s3291_s3 + $0xb4] ss:$8 sps:$4 sm:$0xff]   ;;  %v2194_v16 = vld [vmem:[%s3291_s3 + $0xb0] ss:$8 sps:$4 sm:$0xff]   ;;  %v2224_v17 = vld [vmem:[%s3290_s2 + $0x44] ss:$8 sps:$4 sm:$0xff]   ;;  %231 = vmatprep.mubr.bf16.mxu0 %v2221_v15 }
   0x7   :  { %v2195_v18 = vld [vmem:[%s3291_s3 + $0x44] ss:$8 sps:$4 sm:$0xff]   ;;  %416 = vmatprep.mubr.bf16.mxu1 %v2224_v17  ;;  %v2199_v20 = vld [vmem:[%s3291_s3 + $0x40] ss:$8 sps:$4 sm:$0xff]   ;;  %v2201_v22 = vld [vmem:[%s3291_s3 + $0x54] ss:$8 sps:$4 sm:$0xff]  }
   0x8   :  { %v2197_v19 = vld [vmem:[%s3291_s3 + $0xc4] ss:$8 sps:$4 sm:$0xff]   ;;  %v2200_v21 = vld [vmem:[%s3291_s3 + $0xc0] ss:$8 sps:$4 sm:$0xff]   ;;  %v2203_v23 = vld [vmem:[%s3291_s3 + $0xd4] ss:$8 sps:$4 sm:$0xff]  }
   0x9   :  { %v2205_v24 = vld [vmem:[%s3291_s3 + $0x50] ss:$8 sps:$4 sm:$0xff]   ;;  %v2207_v26 = vld [vmem:[%s3291_s3 + $0x64] ss:$8 sps:$4 sm:$0xff]   ;;  %v2211_v28 = vld [vmem:[%s3291_s3 + $0x60] ss:$8 sps:$4 sm:$0xff]  }
   0xa   :  { %v2206_v25 = vld [vmem:[%s3291_s3 + $0xd0] ss:$8 sps:$4 sm:$0xff]   ;;  %v2209_v27 = vld [vmem:[%s3291_s3 + $0xe4] ss:$8 sps:$4 sm:$0xff]   ;;  %v2212_v29 = vld [vmem:[%s3291_s3 + $0xe0] ss:$8 sps:$4 sm:$0xff]  }
   0xb   :  { %202 = vmatpush1.bf16.xpose.msra.mxu0 %v2181_v6  ;;  %v2213_v30 = vld [vmem:[%s3291_s3 + $0x74] ss:$8 sps:$4 sm:$0xff]   ;;  %v2217_v32 = vld [vmem:[%s3291_s3 + $0x70] ss:$8 sps:$4 sm:$0xff]   ;;  %v2227_v34 = vld [vmem:[%s3294_s6 + $0x4] ss:$8 sps:$4 sm:$0xff]  }
   0xc   :  { %387 = vmatpush1.bf16.xpose.msra.mxu1 %v2182_v7  ;;  %203 = vmatprep.subr.bf16.mxu0 %v2183_v8  ;;  %v2215_v31 = vld [vmem:[%s3291_s3 + $0xf4] ss:$8 sps:$4 sm:$0xff]   ;;  %v2218_v33 = vld [vmem:[%s3291_s3 + $0xf0] ss:$8 sps:$4 sm:$0xff]   ;;  %v2230_v35 = vld [vmem:[%s3294_s6 + $0x84] ss:$8 sps:$4 sm:$0xff]  }
   0xd   :  { %388 = vmatprep.subr.bf16.mxu1 %v2185_v9  ;;  %v2219_v36 = vld [vmem:[%s3290_s2] ss:$8 sps:$4 sm:$0xff]   ;;  %v2233_v40 = vld [vmem:[%s3294_s6 + $0x14] ss:$8 sps:$4 sm:$0xff]   ;;  %v2247_v44 = vld [vmem:[%s3290_s2 + $0x10] ss:$8 sps:$4 sm:$0xff]  }
   0xe   :  { %v2222_v37 = vld [vmem:[%s3290_s2 + $0x40] ss:$8 sps:$4 sm:$0xff]   ;;  %v2236_v41 = vld [vmem:[%s3294_s6 + $0x94] ss:$8 sps:$4 sm:$0xff]   ;;  %v2248_v45 = vld [vmem:[%s3290_s2 + $0x50] ss:$8 sps:$4 sm:$0xff]  }
   0xf   :  { %v2225_v38 = vld [vmem:[%s3294_s6] ss:$8 sps:$4 sm:$0xff]   ;;  %v2243_v42 = vld [vmem:[%s3290_s2 + $0x14] ss:$8 sps:$4 sm:$0xff]   ;;  %v2231_v46 = vld [vmem:[%s3294_s6 + $0x10] ss:$8 sps:$4 sm:$0xff]  }
  0x10   :  { %v2228_v39 = vld [vmem:[%s3294_s6 + $0x80] ss:$8 sps:$4 sm:$0xff]   ;;  %v2245_v43 = vld [vmem:[%s3290_s2 + $0x54] ss:$8 sps:$4 sm:$0xff]   ;;  %v2234_v47 = vld [vmem:[%s3294_s6 + $0x90] ss:$8 sps:$4 sm:$0xff]  }
  0x11   :  { %v2239_v48 = vld [vmem:[%s3294_s6 + $0x24] ss:$8 sps:$4 sm:$0xff]   ;;  %v2259_v52 = vld [vmem:[%s3290_s2 + $0x20] ss:$8 sps:$4 sm:$0xff]   ;;  %v2251_v56 = vld [vmem:[%s3294_s6 + $0x34] ss:$8 sps:$4 sm:$0xff]  }
  0x12   :  { %v2242_v49 = vld [vmem:[%s3294_s6 + $0xa4] ss:$8 sps:$4 sm:$0xff]   ;;  %v2260_v53 = vld [vmem:[%s3290_s2 + $0x60] ss:$8 sps:$4 sm:$0xff]   ;;  %v2254_v57 = vld [vmem:[%s3294_s6 + $0xb4] ss:$8 sps:$4 sm:$0xff]  }
  0x13   :  { %204 = vmatpush1.bf16.xpose.msra.mxu0 %v2187_v10  ;;  %v2255_v50 = vld [vmem:[%s3290_s2 + $0x24] ss:$8 sps:$4 sm:$0xff]   ;;  %v2237_v54 = vld [vmem:[%s3294_s6 + $0x20] ss:$8 sps:$4 sm:$0xff]   ;;  %v2267_v58 = vld [vmem:[%s3290_s2 + $0x34] ss:$8 sps:$4 sm:$0xff]  }
  0x14   :  { %389 = vmatpush1.bf16.xpose.msra.mxu1 %v2188_v11  ;;  %205 = vmatprep.subr.bf16.mxu0 %v2189_v12  ;;  %v2257_v51 = vld [vmem:[%s3290_s2 + $0x64] ss:$8 sps:$4 sm:$0xff]   ;;  %v2240_v55 = vld [vmem:[%s3294_s6 + $0xa0] ss:$8 sps:$4 sm:$0xff]   ;;  %v2269_v59 = vld [vmem:[%s3290_s2 + $0x74] ss:$8 sps:$4 sm:$0xff]  }
  0x15   :  { %390 = vmatprep.subr.bf16.mxu1 %v2191_v13 }
  0x1b   :  { %206 = vmatpush1.bf16.xpose.msra.mxu0 %v2193_v14 }
  0x1c   :  { %391 = vmatpush1.bf16.xpose.msra.mxu1 %v2194_v16  ;;  %207 = vmatprep.subr.bf16.mxu0 %v2195_v18 }
  0x1d   :  { %392 = vmatprep.subr.bf16.mxu1 %v2197_v19 }
  0x23   :  { %208 = vmatpush1.bf16.xpose.msra.mxu0 %v2199_v20 }
  0x24   :  { %393 = vmatpush1.bf16.xpose.msra.mxu1 %v2200_v21  ;;  %209 = vmatprep.subr.bf16.mxu0 %v2201_v22 }
  0x25   :  { %394 = vmatprep.subr.bf16.mxu1 %v2203_v23 }
  0x2b   :  { %210 = vmatpush1.bf16.xpose.msra.mxu0 %v2205_v24 }
  0x2c   :  { %395 = vmatpush1.bf16.xpose.msra.mxu1 %v2206_v25  ;;  %211 = vmatprep.subr.bf16.mxu0 %v2207_v26 }
  0x2d   :  { %396 = vmatprep.subr.bf16.mxu1 %v2209_v27 }
  0x33   :  { %212 = vmatpush1.bf16.xpose.msra.mxu0 %v2211_v28 }
  0x34   :  { %397 = vmatpush1.bf16.xpose.msra.mxu1 %v2212_v29  ;;  %213 = vmatprep.subr.bf16.mxu0 %v2213_v30 }
  0x35   :  { %398 = vmatprep.subr.bf16.mxu1 %v2215_v31 }
  0x3b   :  { %214 = vmatpush1.bf16.xpose.msra.mxu0 %v2217_v32 }
  0x3c   :  { %399 = vmatpush1.bf16.xpose.msra.mxu1 %v2218_v33  ;;  %617 = vmatprep.subr.bf16.mxu0 %v2227_v34 }
  0x3d   :  { %802 = vmatprep.subr.bf16.mxu1 %v2230_v35 }
  0x42   :  { %232 = vmatmul.mubr.bf16.vlgmr.msra.gmra.mrb[0].mxu0 %v2219_v36 }
  0x43   :  { %417 = vmatmul.mubr.bf16.vlgmr.msra.gmra.mrb[0].mxu1 %v2222_v37  ;;  %618 = vmatpush1.bf16.xpose.msra.mxu0 %v2225_v38 }
  0x44   :  { %803 = vmatpush1.bf16.xpose.msra.mxu1 %v2228_v39  ;;  %619 = vmatprep.subr.bf16.mxu0 %v2233_v40 }
  0x45   :  { %804 = vmatprep.subr.bf16.mxu1 %v2236_v41  ;;  %239 = vmatprep.mubr.bf16.mxu0 %v2243_v42 }
  0x46   :  { %424 = vmatprep.mubr.bf16.mxu1 %v2245_v43 }
  0x4a   :  { %240 = vmatmul.mubr.bf16.gmra.mrb[4].mxu0 %v2247_v44 }
  0x4b   :  { %425 = vmatmul.mubr.bf16.gmra.mrb[4].mxu1 %v2248_v45  ;;  %620 = vmatpush1.bf16.xpose.msra.mxu0 %v2231_v46 }
  0x4c   :  { %805 = vmatpush1.bf16.xpose.msra.mxu1 %v2234_v47  ;;  %621 = vmatprep.subr.bf16.mxu0 %v2239_v48 }
  0x4d   :  { %806 = vmatprep.subr.bf16.mxu1 %v2242_v49  ;;  %247 = vmatprep.mubr.bf16.mxu0 %v2255_v50 }
  0x4e   :  { %432 = vmatprep.mubr.bf16.mxu1 %v2257_v51 }
  0x52   :  { %248 = vmatmul.mubr.bf16.gmra.mrb[8].mxu0 %v2259_v52 }
  0x53   :  { %433 = vmatmul.mubr.bf16.gmra.mrb[8].mxu1 %v2260_v53  ;;  %622 = vmatpush1.bf16.xpose.msra.mxu0 %v2237_v54 }
  0x54   :  { %807 = vmatpush1.bf16.xpose.msra.mxu1 %v2240_v55  ;;  %623 = vmatprep.subr.bf16.mxu0 %v2251_v56 }
  0x55   :  { %808 = vmatprep.subr.bf16.mxu1 %v2254_v57 }
  0x56   :  { %13 = vsyncpa [#allocation3], 0  ;;  %255 = vmatprep.mubr.bf16.mxu0 %v2267_v58  ;;  %440 = vmatprep.mubr.bf16.mxu1 %v2269_v59  ;;  %v2271_v60 = vld [vmem:[%s3290_s2 + $0x30] ss:$8 sps:$4 sm:$0xff]   ;;  %v2263_v0 = vld [vmem:[%s3294_s6 + $0x44] ss:$8 sps:$4 sm:$0xff]  }
  0x57   :  { %v2272_v61 = vld [vmem:[%s3290_s2 + $0x70] ss:$8 sps:$4 sm:$0xff]   ;;  %v2266_v1 = vld [vmem:[%s3294_s6 + $0xc4] ss:$8 sps:$4 sm:$0xff]   ;;  %v2261_v4 = vld [vmem:[%s3294_s6 + $0x40] ss:$8 sps:$4 sm:$0xff]  }
  0x58   :  { %v2249_v62 = vld [vmem:[%s3294_s6 + $0x30] ss:$8 sps:$4 sm:$0xff]   ;;  %v2293_v2 = vld [vmem:[%s3293_s5 + $0x4] ss:$8 sps:$4 sm:$0xff]   ;;  %v2264_v5 = vld [vmem:[%s3294_s6 + $0xc0] ss:$8 sps:$4 sm:$0xff]  }
  0x59   :  { %v2252_v63 = vld [vmem:[%s3294_s6 + $0xb0] ss:$8 sps:$4 sm:$0xff]   ;;  %v2296_v3 = vld [vmem:[%s3293_s5 + $0x44] ss:$8 sps:$4 sm:$0xff]   ;;  %v2275_v6 = vld [vmem:[%s3294_s6 + $0x54] ss:$8 sps:$4 sm:$0xff]  }
  0x5a   :  { %256 = vmatmul.mubr.bf16.gmra.mrb[12].mxu0 %v2271_v60  ;;  %v2278_v7 = vld [vmem:[%s3294_s6 + $0xd4] ss:$8 sps:$4 sm:$0xff]   ;;  %v2273_v8 = vld [vmem:[%s3294_s6 + $0x50] ss:$8 sps:$4 sm:$0xff]   ;;  %v2281_v10 = vld [vmem:[%s3294_s6 + $0x64] ss:$8 sps:$4 sm:$0xff]  }
  0x5b   :  { %441 = vmatmul.mubr.bf16.gmra.mrb[12].mxu1 %v2272_v61  ;;  %624 = vmatpush1.bf16.xpose.msra.mxu0 %v2249_v62  ;;  %v2276_v9 = vld [vmem:[%s3294_s6 + $0xd0] ss:$8 sps:$4 sm:$0xff]   ;;  %v2284_v11 = vld [vmem:[%s3294_s6 + $0xe4] ss:$8 sps:$4 sm:$0xff]   ;;  %v2279_v12 = vld [vmem:[%s3294_s6 + $0x60] ss:$8 sps:$4 sm:$0xff]  }
  0x5c   :  { %809 = vmatpush1.bf16.xpose.msra.mxu1 %v2252_v63  ;;  %625 = vmatprep.subr.bf16.mxu0 %v2263_v0  ;;  %v2282_v13 = vld [vmem:[%s3294_s6 + $0xe0] ss:$8 sps:$4 sm:$0xff]   ;;  %v2287_v14 = vld [vmem:[%s3294_s6 + $0x74] ss:$8 sps:$4 sm:$0xff]   ;;  %v2285_v16 = vld [vmem:[%s3294_s6 + $0x70] ss:$8 sps:$4 sm:$0xff]  }
  0x5d   :  { %810 = vmatprep.subr.bf16.mxu1 %v2266_v1  ;;  %649 = vmatprep.mubr.bf16.mxu0 %v2293_v2  ;;  %v2290_v15 = vld [vmem:[%s3294_s6 + $0xf4] ss:$8 sps:$4 sm:$0xff]   ;;  %v2288_v17 = vld [vmem:[%s3294_s6 + $0xf0] ss:$8 sps:$4 sm:$0xff]   ;;  %v2291_v18 = vld [vmem:[%s3293_s5] ss:$8 sps:$4 sm:$0xff]  }
  0x5e   :  { %834 = vmatprep.mubr.bf16.mxu1 %v2296_v3  ;;  %v2294_v19 = vld [vmem:[%s3293_s5 + $0x40] ss:$8 sps:$4 sm:$0xff]   ;;  %v2297_v20 = vld [vmem:[%s3293_s5 + $0x14] ss:$8 sps:$4 sm:$0xff]   ;;  %v2301_v22 = vld [vmem:[%s3293_s5 + $0x10] ss:$8 sps:$4 sm:$0xff]  }
  0x5f   :  { %v2299_v21 = vld [vmem:[%s3293_s5 + $0x54] ss:$8 sps:$4 sm:$0xff]   ;;  %v2302_v23 = vld [vmem:[%s3293_s5 + $0x50] ss:$8 sps:$4 sm:$0xff]   ;;  %v2303_v24 = vld [vmem:[%s3293_s5 + $0x24] ss:$8 sps:$4 sm:$0xff]  }
  0x60   :  { %v2305_v25 = vld [vmem:[%s3293_s5 + $0x64] ss:$8 sps:$4 sm:$0xff]   ;;  %v2307_v26 = vld [vmem:[%s3293_s5 + $0x20] ss:$8 sps:$4 sm:$0xff]   ;;  %v2309_v28 = vld [vmem:[%s3293_s5 + $0x34] ss:$8 sps:$4 sm:$0xff]  }
  0x61   :  { %v2308_v27 = vld [vmem:[%s3293_s5 + $0x60] ss:$8 sps:$4 sm:$0xff]   ;;  %v2311_v29 = vld [vmem:[%s3293_s5 + $0x74] ss:$8 sps:$4 sm:$0xff]   ;;  %v2313_v30 = vld [vmem:[%s3293_s5 + $0x30] ss:$8 sps:$4 sm:$0xff]  }
  0x62   :  { %v2314_v31 = vld [vmem:[%s3293_s5 + $0x70] ss:$8 sps:$4 sm:$0xff]   ;;  %v2317_v32 = vld [vmem:[%s3292_s4 + $0x4] ss:$8 sps:$4 sm:$0xff]   ;;  %v2315_v34 = vld [vmem:[%s3292_s4] ss:$8 sps:$4 sm:$0xff]  }
  0x63   :  { %626 = vmatpush1.bf16.xpose.msra.mxu0 %v2261_v4  ;;  %v2320_v33 = vld [vmem:[%s3292_s4 + $0x84] ss:$8 sps:$4 sm:$0xff]   ;;  %v2318_v35 = vld [vmem:[%s3292_s4 + $0x80] ss:$8 sps:$4 sm:$0xff]   ;;  %v2323_v36 = vld [vmem:[%s3292_s4 + $0x14] ss:$8 sps:$4 sm:$0xff]  }
  0x64   :  { %811 = vmatpush1.bf16.xpose.msra.mxu1 %v2264_v5  ;;  %627 = vmatprep.subr.bf16.mxu0 %v2275_v6  ;;  %v2326_v37 = vld [vmem:[%s3292_s4 + $0x94] ss:$8 sps:$4 sm:$0xff]   ;;  %v2321_v38 = vld [vmem:[%s3292_s4 + $0x10] ss:$8 sps:$4 sm:$0xff]   ;;  %v2329_v40 = vld [vmem:[%s3292_s4 + $0x24] ss:$8 sps:$4 sm:$0xff]  }
  0x65   :  { %812 = vmatprep.subr.bf16.mxu1 %v2278_v7  ;;  %v2324_v39 = vld [vmem:[%s3292_s4 + $0x90] ss:$8 sps:$4 sm:$0xff]   ;;  %v2332_v41 = vld [vmem:[%s3292_s4 + $0xa4] ss:$8 sps:$4 sm:$0xff]   ;;  %v2327_v42 = vld [vmem:[%s3292_s4 + $0x20] ss:$8 sps:$4 sm:$0xff]  }
  0x66   :  { %v2330_v43 = vld [vmem:[%s3292_s4 + $0xa0] ss:$8 sps:$4 sm:$0xff]   ;;  %v2335_v44 = vld [vmem:[%s3292_s4 + $0x34] ss:$8 sps:$4 sm:$0xff]   ;;  %v2333_v46 = vld [vmem:[%s3292_s4 + $0x30] ss:$8 sps:$4 sm:$0xff]  }
  0x67   :  { %v2338_v45 = vld [vmem:[%s3292_s4 + $0xb4] ss:$8 sps:$4 sm:$0xff]   ;;  %v2336_v47 = vld [vmem:[%s3292_s4 + $0xb0] ss:$8 sps:$4 sm:$0xff]   ;;  %v2341_v48 = vld [vmem:[%s3292_s4 + $0x44] ss:$8 sps:$4 sm:$0xff]  }
  0x68   :  { %v2344_v49 = vld [vmem:[%s3292_s4 + $0xc4] ss:$8 sps:$4 sm:$0xff]   ;;  %v2339_v50 = vld [vmem:[%s3292_s4 + $0x40] ss:$8 sps:$4 sm:$0xff]   ;;  %v2347_v52 = vld [vmem:[%s3292_s4 + $0x54] ss:$8 sps:$4 sm:$0xff]  }
  0x69   :  { %v2342_v51 = vld [vmem:[%s3292_s4 + $0xc0] ss:$8 sps:$4 sm:$0xff]   ;;  %v2350_v53 = vld [vmem:[%s3292_s4 + $0xd4] ss:$8 sps:$4 sm:$0xff]   ;;  %v2345_v54 = vld [vmem:[%s3292_s4 + $0x50] ss:$8 sps:$4 sm:$0xff]  }
  0x6a   :  { %v2348_v55 = vld [vmem:[%s3292_s4 + $0xd0] ss:$8 sps:$4 sm:$0xff]   ;;  %v2353_v56 = vld [vmem:[%s3292_s4 + $0x64] ss:$8 sps:$4 sm:$0xff]   ;;  %v2351_v58 = vld [vmem:[%s3292_s4 + $0x60] ss:$8 sps:$4 sm:$0xff]  }
  0x6b   :  { %628 = vmatpush1.bf16.xpose.msra.mxu0 %v2273_v8  ;;  %v2356_v57 = vld [vmem:[%s3292_s4 + $0xe4] ss:$8 sps:$4 sm:$0xff]   ;;  %v2354_v59 = vld [vmem:[%s3292_s4 + $0xe0] ss:$8 sps:$4 sm:$0xff]   ;;  %v2359_v60 = vld [vmem:[%s3292_s4 + $0x74] ss:$8 sps:$4 sm:$0xff]  }
  0x6c   :  { %813 = vmatpush1.bf16.xpose.msra.mxu1 %v2276_v9  ;;  %629 = vmatprep.subr.bf16.mxu0 %v2281_v10  ;;  %v2362_v61 = vld [vmem:[%s3292_s4 + $0xf4] ss:$8 sps:$4 sm:$0xff]   ;;  %v2357_v62 = vld [vmem:[%s3292_s4 + $0x70] ss:$8 sps:$4 sm:$0xff]   ;;  %v2531_v0 = vmov 0   ;;  %s2532_s19 = smov [#allocation2]  }
  0x6d   :  { %814 = vmatprep.subr.bf16.mxu1 %v2284_v11  ;;  %v2360_v63 = vld [vmem:[%s3292_s4 + $0xf0] ss:$8 sps:$4 sm:$0xff]   ;;  %v2365_v1 = vld [vmem:[%s3295_s7 + $0x4] ss:$8 sps:$4 sm:$0xff]   ;;  %s1932_s20 = sshll.u32 %s2532_s19, 4  ;;  %s1933_s20 = int_to_ptr.vmem [resolvable:$true] %s1932_s20 }
  0x6e   :  { %v2368_v2 = vld [vmem:[%s3295_s7 + $0x84] ss:$8 sps:$4 sm:$0xff]   ;;  %p2512_p1 = scmp.lt.s32.totalorder %s1933_s20, %s1933_s20 }
  0x73   :  { %630 = vmatpush1.bf16.xpose.msra.mxu0 %v2279_v12 }
  0x74   :  { %815 = vmatpush1.bf16.xpose.msra.mxu1 %v2282_v13  ;;  %631 = vmatprep.subr.bf16.mxu0 %v2287_v14 }
  0x75   :  { %816 = vmatprep.subr.bf16.mxu1 %v2290_v15 }
  0x7b   :  { %632 = vmatpush1.bf16.xpose.msra.mxu0 %v2285_v16 }
  0x7c   :  { %817 = vmatpush1.bf16.xpose.msra.mxu1 %v2288_v17  ;;  %1171 = vmatprep.subr.bf16.mxu0 %v2317_v32 }
  0x7d   :  { %1324 = vmatprep.subr.bf16.mxu1 %v2320_v33 }
  0x82   :  { %650 = vmatmul.mubr.bf16.vlgmr.msra.gmra.mrb[16].mxu0 %v2291_v18 }
  0x83   :  { %835 = vmatmul.mubr.bf16.vlgmr.msra.gmra.mrb[16].mxu1 %v2294_v19  ;;  %657 = vmatprep.mubr.bf16.mxu0 %v2297_v20 }
  0x84   :  { %842 = vmatprep.mubr.bf16.mxu1 %v2299_v21  ;;  %1172 = vmatpush1.bf16.msra.mxu0 %v2315_v34 }
  0x85   :  { %1325 = vmatpush1.bf16.msra.mxu1 %v2318_v35  ;;  %1173 = vmatprep.subr.bf16.mxu0 %v2323_v36 }
  0x86   :  { %1326 = vmatprep.subr.bf16.mxu1 %v2326_v37 }
  0x88   :  { %1174 = vmatpush1.bf16.msra.mxu0 %v2321_v38 }
  0x89   :  { %1327 = vmatpush1.bf16.msra.mxu1 %v2324_v39  ;;  %1175 = vmatprep.subr.bf16.mxu0 %v2329_v40 }
  0x8a   :  { %658 = vmatmul.mubr.bf16.gmra.mrb[20].mxu0 %v2301_v22  ;;  %1328 = vmatprep.subr.bf16.mxu1 %v2332_v41 }
  0x8b   :  { %843 = vmatmul.mubr.bf16.gmra.mrb[20].mxu1 %v2302_v23  ;;  %665 = vmatprep.mubr.bf16.mxu0 %v2303_v24 }
  0x8c   :  { %850 = vmatprep.mubr.bf16.mxu1 %v2305_v25  ;;  %1176 = vmatpush1.bf16.msra.mxu0 %v2327_v42 }
  0x8d   :  { %1329 = vmatpush1.bf16.msra.mxu1 %v2330_v43  ;;  %1177 = vmatprep.subr.bf16.mxu0 %v2335_v44 }
  0x8e   :  { %1330 = vmatprep.subr.bf16.mxu1 %v2338_v45 }
  0x90   :  { %1178 = vmatpush1.bf16.msra.mxu0 %v2333_v46 }
  0x91   :  { %1331 = vmatpush1.bf16.msra.mxu1 %v2336_v47  ;;  %1179 = vmatprep.subr.bf16.mxu0 %v2341_v48 }
  0x92   :  { %666 = vmatmul.mubr.bf16.gmra.mrb[24].mxu0 %v2307_v26  ;;  %1332 = vmatprep.subr.bf16.mxu1 %v2344_v49 }
  0x93   :  { %851 = vmatmul.mubr.bf16.gmra.mrb[24].mxu1 %v2308_v27  ;;  %673 = vmatprep.mubr.bf16.mxu0 %v2309_v28 }
  0x94   :  { %858 = vmatprep.mubr.bf16.mxu1 %v2311_v29  ;;  %1180 = vmatpush1.bf16.msra.mxu0 %v2339_v50 }
  0x95   :  { %1333 = vmatpush1.bf16.msra.mxu1 %v2342_v51  ;;  %1181 = vmatprep.subr.bf16.mxu0 %v2347_v52 }
  0x96   :  { %1334 = vmatprep.subr.bf16.mxu1 %v2350_v53 }
  0x98   :  { %1182 = vmatpush1.bf16.msra.mxu0 %v2345_v54 }
  0x99   :  { %1335 = vmatpush1.bf16.msra.mxu1 %v2348_v55  ;;  %1183 = vmatprep.subr.bf16.mxu0 %v2353_v56 }
  0x9a   :  { %674 = vmatmul.mubr.bf16.gmra.mrb[28].mxu0 %v2313_v30  ;;  %1336 = vmatprep.subr.bf16.mxu1 %v2356_v57 }
  0x9b   :  { %859 = vmatmul.mubr.bf16.gmra.mrb[28].mxu1 %v2314_v31  ;;  %1203 = vmatprep.mubr.bf16.mxu0 %v2531_v0 }
  0x9c   :  { %1184 = vmatpush1.bf16.msra.mxu0 %v2351_v58  ;;  %1356 = vmatprep.mubr.bf16.mxu1 %v2531_v0 }
  0x9d   :  { %1337 = vmatpush1.bf16.msra.mxu1 %v2354_v59  ;;  %1185 = vmatprep.subr.bf16.mxu0 %v2359_v60 }
  0x9e   :  { %1338 = vmatprep.subr.bf16.mxu1 %v2362_v61 }
  0xa0   :  { %1186 = vmatpush1.bf16.msra.mxu0 %v2357_v62 }
  0xa1   :  { %1339 = vmatpush1.bf16.msra.mxu1 %v2360_v63  ;;  %1509 = vmatprep.subr.bf16.mxu0 %v2365_v1 }
  0xa2   :  { %1662 = vmatprep.subr.bf16.mxu1 %v2368_v2 }
 0x115   :  { %v233_v3 = vpop.f32.mrb[0].mxu0 }
 0x116   :  { %v418_v4 = vpop.f32.mrb[0].mxu1  ;;  %v235_v6 = vpop.f32.mrb[1].mxu0 }
 0x117   :  { %v867_v5 = vmax.f32 %v233_v3, %v418_v4  ;;  %v420_v7 = vpop.f32.mrb[1].mxu1  ;;  %v236_v8 = vpop.f32.mrb[2].mxu0 }
 0x118   :  { %v421_v9 = vpop.f32.mrb[2].mxu1  ;;  %v238_v13 = vpop.f32.mrb[3].mxu0 }
 0x119   :  { %v875_v10 = vsub.f32 %v233_v3, %v867_v5  ;;  %v883_v11 = vsub.f32 %v418_v4, %v867_v5  ;;  %v868_v12 = vmax.f32 %v236_v8, %v421_v9  ;;  %v423_v14 = vpop.f32.mrb[3].mxu1 }
 0x11b   :  { %v891_v15 = vmul.f32 1.442695, %v875_v10  ;;  %v907_v16 = vmul.f32 1.442695, %v883_v11  ;;  %v876_v17 = vsub.f32 %v236_v8, %v868_v12  ;;  %v884_v18 = vsub.f32 %v421_v9, %v868_v12 }
 0x11d   :  { %2411 = vpow2.f32 %v891_v15  ;;  %v893_v19 = vmul.f32 1.442695, %v876_v17  ;;  %v909_v20 = vmul.f32 1.442695, %v884_v18  ;;  %v241_v21 = vpop.f32.mrb[4].mxu0 }
 0x11e   :  { %2413 = vpow2.f32 %v907_v16  ;;  %v426_v22 = vpop.f32.mrb[4].mxu1  ;;  %v243_v24 = vpop.f32.mrb[5].mxu0 }
 0x11f   :  { %2415 = vpow2.f32 %v893_v19  ;;  %v869_v23 = vmax.f32 %v241_v21, %v426_v22  ;;  %v428_v25 = vpop.f32.mrb[5].mxu1  ;;  %v244_v26 = vpop.f32.mrb[6].mxu0 }
 0x120   :  { %2417 = vpow2.f32 %v909_v20  ;;  %v429_v27 = vpop.f32.mrb[6].mxu1  ;;  %v246_v31 = vpop.f32.mrb[7].mxu0 }
 0x121   :  { %v877_v28 = vsub.f32 %v241_v21, %v869_v23  ;;  %v885_v29 = vsub.f32 %v426_v22, %v869_v23  ;;  %v870_v30 = vmax.f32 %v244_v26, %v429_v27  ;;  %v431_v32 = vpop.f32.mrb[7].mxu1 }
 0x123   :  { %v895_v33 = vmul.f32 1.442695, %v877_v28  ;;  %v911_v34 = vmul.f32 1.442695, %v885_v29  ;;  %v878_v35 = vsub.f32 %v244_v26, %v870_v30  ;;  %v886_v36 = vsub.f32 %v429_v27, %v870_v30 }
 0x125   :  { %2419 = vpow2.f32 %v895_v33  ;;  %v897_v37 = vmul.f32 1.442695, %v878_v35  ;;  %v913_v38 = vmul.f32 1.442695, %v886_v36  ;;  %v249_v39 = vpop.f32.mrb[8].mxu0 }
 0x126   :  { %2421 = vpow2.f32 %v911_v34  ;;  %v434_v40 = vpop.f32.mrb[8].mxu1  ;;  %v251_v43 = vpop.f32.mrb[9].mxu0  ;;  %v2363_v36 = vld [vmem:[%s3295_s7] ss:$8 sps:$4 sm:$0xff]  }
 0x127   :  { %v2412_v41 = vpop.eup %2411  ;;  %2423 = vpow2.f32 %v897_v37  ;;  %v871_v42 = vmax.f32 %v249_v39, %v434_v40  ;;  %v436_v44 = vpop.f32.mrb[9].mxu1  ;;  %v2366_v37 = vld [vmem:[%s3295_s7 + $0x80] ss:$8 sps:$4 sm:$0xff]  }
 0x128   :  { %v2414_v45 = vpop.eup %2413  ;;  %2425 = vpow2.f32 %v913_v38  ;;  %v252_v46 = vpop.f32.mrb[10].mxu0 }
 0x129   :  { %v437_v47 = vpop.f32.mrb[10].mxu1  ;;  %v2416_v48 = vpop.eup %2415  ;;  %v923_v49 = vadd.f32 %v2414_v45, %v2412_v41  ;;  %v879_v50 = vsub.f32 %v249_v39, %v871_v42  ;;  %v887_v51 = vsub.f32 %v434_v40, %v871_v42  ;;  %v2371_v39 = vld [vmem:[%s3295_s7 + $0x14] ss:$8 sps:$4 sm:$0xff]  }
 0x12a   :  { %v872_v52 = vmax.f32 %v252_v46, %v437_v47  ;;  %v254_v53 = vpop.f32.mrb[11].mxu0  ;;  %v439_v54 = vpop.f32.mrb[11].mxu1  ;;  %v2374_v40 = vld [vmem:[%s3295_s7 + $0x94] ss:$8 sps:$4 sm:$0xff]  }
 0x12b   :  { %v2418_v55 = vpop.eup %2417  ;;  %2427 = vrcp.f32 %v923_v49  ;;  %v899_v57 = vmul.f32 1.442695, %v879_v50  ;;  %v915_v58 = vmul.f32 1.442695, %v887_v51  ;;  %v2380_v49 = vld [vmem:[%s3295_s7 + $0xa4] ss:$8 sps:$4 sm:$0xff]  }
 0x12c   :  { %v924_v56 = vadd.f32 %v2418_v55, %v2416_v48  ;;  %v880_v59 = vsub.f32 %v252_v46, %v872_v52  ;;  %v888_v60 = vsub.f32 %v437_v47, %v872_v52  ;;  %v2372_v46 = vld [vmem:[%s3295_s7 + $0x90] ss:$8 sps:$4 sm:$0xff]  }
 0x12d   :  { %v257_v63 = vpop.f32.mrb[12].mxu0 }
 0x12e   :  { %2429 = vrcp.f32 %v924_v56  ;;  %v901_v61 = vmul.f32 1.442695, %v880_v59  ;;  %v917_v62 = vmul.f32 1.442695, %v888_v60  ;;  %v442_v1 = vpop.f32.mrb[12].mxu1  ;;  %v259_v4 = vpop.f32.mrb[13].mxu0 }
 0x12f   :  { %2431 = vpow2.f32 %v899_v57  ;;  %v2420_v2 = vpop.eup %2419  ;;  %v873_v3 = vmax.f32 %v257_v63, %v442_v1  ;;  %v444_v5 = vpop.f32.mrb[13].mxu1  ;;  %v2378_v59 = vld [vmem:[%s3295_s7 + $0xa0] ss:$8 sps:$4 sm:$0xff]  }
 0x130   :  { %2433 = vpow2.f32 %v915_v58  ;;  %v2422_v6 = vpop.eup %2421  ;;  %v260_v7 = vpop.f32.mrb[14].mxu0  ;;  %v2375_v58 = vld [vmem:[%s3295_s7 + $0x20] ss:$8 sps:$4 sm:$0xff]  }
 0x131   :  { %2435 = vpow2.f32 %v901_v61  ;;  %v445_v8 = vpop.f32.mrb[14].mxu1  ;;  %v2424_v9 = vpop.eup %2423  ;;  %v925_v10 = vadd.f32 %v2422_v6, %v2420_v2  ;;  %v881_v11 = vsub.f32 %v257_v63, %v873_v3  ;;  %v889_v12 = vsub.f32 %v442_v1, %v873_v3  ;;  %v2383_v61 = vld [vmem:[%s3295_s7 + $0x34] ss:$8 sps:$4 sm:$0xff]   ;;  %v2384_v3 = vld [vmem:[%s3295_s7 + $0xb0] ss:$8 sps:$4 sm:$0xff]  }
 0x132   :  { %2437 = vpow2.f32 %v917_v62  ;;  %v262_v13 = vpop.f32.mrb[15].mxu0  ;;  %v447_v14 = vpop.f32.mrb[15].mxu1  ;;  %v874_v16 = vmax.f32 %v260_v7, %v445_v8  ;;  %v2386_v62 = vld [vmem:[%s3295_s7 + $0xb4] ss:$8 sps:$4 sm:$0xff]  }
 0x133   :  { %v2426_v15 = vpop.eup %2425  ;;  %2439 = vrcp.f32 %v925_v10  ;;  %v903_v18 = vmul.f32 1.442695, %v881_v11  ;;  %v919_v19 = vmul.f32 1.442695, %v889_v12  ;;  %v2387_v13 = vld [vmem:[%s3295_s7 + $0x40] ss:$8 sps:$4 sm:$0xff]  }
 0x134   :  { %v926_v17 = vadd.f32 %v2426_v15, %v2424_v9  ;;  %v882_v20 = vsub.f32 %v260_v7, %v874_v16  ;;  %v890_v21 = vsub.f32 %v445_v8, %v874_v16  ;;  %v2392_v7 = vld [vmem:[%s3295_s7 + $0xc4] ss:$8 sps:$4 sm:$0xff]   ;;  %v2390_v14 = vld [vmem:[%s3295_s7 + $0xc0] ss:$8 sps:$4 sm:$0xff]   ;;  %v2398_v16 = vld [vmem:[%s3295_s7 + $0xd4] ss:$8 sps:$4 sm:$0xff]  }
 0x135   :  { %v2428_v22 = vpop.eup %2427 }
 0x136   :  { %2441 = vrcp.f32 %v926_v17  ;;  %v947_v23 = vmul.f32 %v2428_v22, %v2414_v45  ;;  %v939_v24 = vmul.f32 %v2428_v22, %v2412_v41  ;;  %v905_v25 = vmul.f32 1.442695, %v882_v20  ;;  %v2369_v45 = vld [vmem:[%s3295_s7 + $0x10] ss:$8 sps:$4 sm:$0xff]  }
 0x137   :  { %2443 = vpow2.f32 %v903_v18  ;;  %v921_v27 = vmul.f32 1.442695, %v890_v21  ;;  %v2393_v20 = vld [vmem:[%s3295_s7 + $0x50] ss:$8 sps:$4 sm:$0xff]  }
 0x138   :  { %v2430_v26 = vpop.eup %2429  ;;  %2445 = vpow2.f32 %v919_v19  ;;  %v2396_v21 = vld [vmem:[%s3295_s7 + $0xd0] ss:$8 sps:$4 sm:$0xff]  }
 0x139   :  { %v2972_v28 = vpop.eup %2431  ;;  %v948_v29 = vmul.f32 %v2430_v26, %v2418_v55  ;;  %v940_v30 = vmul.f32 %v2430_v26, %v2416_v48  ;;  %2447 = vpow2.f32 %v905_v25  ;;  %v2377_v48 = vld [vmem:[%s3295_s7 + $0x24] ss:$8 sps:$4 sm:$0xff]  }
 0x13a   :  { %v2434_v31 = vpop.eup %2433  ;;  %2449 = vpow2.f32 %v921_v27 }
 0x13b   :  { %v2974_v32 = vpop.eup %2435  ;;  %v927_v33 = vadd.f32 %v2434_v31, %v2972_v28  ;;  %v955_v34 = vpack.c.bf16 %v940_v30, %v939_v24  ;;  %v959_v35 = vpack.c.bf16 %v948_v29, %v947_v23  ;;  %v2401_v23 = vld [vmem:[%s3295_s7 + $0x64] ss:$8 sps:$4 sm:$0xff]   ;;  %v2399_v29 = vld [vmem:[%s3295_s7 + $0x60] ss:$8 sps:$4 sm:$0xff]  }
 0x13c   :  { %v2438_v38 = vpop.eup %2437  ;;  %v2404_v24 = vld [vmem:[%s3295_s7 + $0xe4] ss:$8 sps:$4 sm:$0xff]   ;;  %v2402_v30 = vld [vmem:[%s3295_s7 + $0xe0] ss:$8 sps:$4 sm:$0xff]  }
 0x13d   :  { %2451 = vrcp.f32 %v927_v33  ;;  %v928_v41 = vadd.f32 %v2438_v38, %v2974_v32  ;;  %1204 = vmatmul.mubr.bf16.vlgmr.msra.gmra.mrb[32].mxu0 %v955_v34  ;;  %1357 = vmatmul.mubr.bf16.vlgmr.msra.gmra.mrb[32].mxu1 %v959_v35  ;;  %v2440_v42 = vpop.eup %2439 }
 0x13e   :  { %1213 = vmatprep.mubr.bf16.mxu0 %v2531_v0  ;;  %1366 = vmatprep.mubr.bf16.mxu1 %v2531_v0  ;;  %v941_v43 = vmul.f32 %v2440_v42, %v2420_v2  ;;  %v949_v44 = vmul.f32 %v2440_v42, %v2422_v6  ;;  %v2381_v2 = vld [vmem:[%s3295_s7 + $0x30] ss:$8 sps:$4 sm:$0xff]   ;;  %v2389_v6 = vld [vmem:[%s3295_s7 + $0x44] ss:$8 sps:$4 sm:$0xff]  }
 0x13f   :  { %2453 = vrcp.f32 %v928_v41  ;;  %1510 = vmatpush1.bf16.msra.mxu0 %v2363_v36  ;;  %1663 = vmatpush1.bf16.msra.mxu1 %v2366_v37 }
 0x140   :  { %v2442_v47 = vpop.eup %2441  ;;  %1511 = vmatprep.subr.bf16.mxu0 %v2371_v39  ;;  %1664 = vmatprep.subr.bf16.mxu1 %v2374_v40  ;;  %v2408_v39 = vld [vmem:[%s3295_s7 + $0xf0] ss:$8 sps:$4 sm:$0xff]  }
 0x141   :  { %v2444_v50 = vpop.eup %2443  ;;  %v942_v51 = vmul.f32 %v2442_v47, %v2424_v9  ;;  %v950_v52 = vmul.f32 %v2442_v47, %v2426_v15  ;;  %v2395_v15 = vld [vmem:[%s3295_s7 + $0x54] ss:$8 sps:$4 sm:$0xff]  }
 0x142   :  { %v2446_v53 = vpop.eup %2445 }
 0x143   :  { %v2448_v54 = vpop.eup %2447  ;;  %v929_v55 = vadd.f32 %v2446_v53, %v2444_v50  ;;  %v956_v56 = vpack.c.bf16 %v942_v51, %v941_v43  ;;  %v960_v57 = vpack.c.bf16 %v950_v52, %v949_v44  ;;  %1512 = vmatpush1.bf16.msra.mxu0 %v2369_v45  ;;  %1665 = vmatpush1.bf16.msra.mxu1 %v2372_v46 }
 0x144   :  { %v2450_v60 = vpop.eup %2449  ;;  %1513 = vmatprep.subr.bf16.mxu0 %v2377_v48  ;;  %1666 = vmatprep.subr.bf16.mxu1 %v2380_v49 }
 0x145   :  { %2455 = vrcp.f32 %v929_v55  ;;  %v930_v63 = vadd.f32 %v2450_v60, %v2448_v54  ;;  %1214 = vmatmul.mubr.bf16.gmra.mrb[36].mxu0 %v956_v56  ;;  %1367 = vmatmul.mubr.bf16.gmra.mrb[36].mxu1 %v960_v57 }
 0x146   :  { %1223 = vmatprep.mubr.bf16.mxu0 %v2531_v0  ;;  %1376 = vmatprep.mubr.bf16.mxu1 %v2531_v0 }
 0x147   :  { %v2452_v1 = vpop.eup %2451  ;;  %2457 = vrcp.f32 %v930_v63  ;;  %1514 = vmatpush1.bf16.msra.mxu0 %v2375_v58  ;;  %1667 = vmatpush1.bf16.msra.mxu1 %v2378_v59 }
 0x148   :  { %v943_v4 = vmul.f32 %v2452_v1, %v2972_v28  ;;  %v951_v5 = vmul.f32 %v2452_v1, %v2434_v31  ;;  %1515 = vmatprep.subr.bf16.mxu0 %v2383_v61  ;;  %1668 = vmatprep.subr.bf16.mxu1 %v2386_v62  ;;  %v2407_v31 = vld [vmem:[%s3295_s7 + $0x74] ss:$8 sps:$4 sm:$0xff]  }
 0x149   :  { %v2454_v8 = vpop.eup %2453 }
 0x14a   :  { %v944_v9 = vmul.f32 %v2454_v8, %v2974_v32  ;;  %v952_v10 = vmul.f32 %v2454_v8, %v2438_v38  ;;  %v2410_v32 = vld [vmem:[%s3295_s7 + $0xf4] ss:$8 sps:$4 sm:$0xff]   ;;  %v2405_v38 = vld [vmem:[%s3295_s7 + $0x70] ss:$8 sps:$4 sm:$0xff]  }
 0x14b   :  { %1516 = vmatpush1.bf16.msra.mxu0 %v2381_v2  ;;  %1669 = vmatpush1.bf16.msra.mxu1 %v2384_v3 }
 0x14c   :  { %v957_v11 = vpack.c.bf16 %v944_v9, %v943_v4  ;;  %v961_v12 = vpack.c.bf16 %v952_v10, %v951_v5  ;;  %1517 = vmatprep.subr.bf16.mxu0 %v2389_v6  ;;  %1670 = vmatprep.subr.bf16.mxu1 %v2392_v7 }
 0x14e   :  { %1224 = vmatmul.mubr.bf16.gmra.mrb[40].mxu0 %v957_v11  ;;  %1377 = vmatmul.mubr.bf16.gmra.mrb[40].mxu1 %v961_v12 }
 0x14f   :  { %v2456_v17 = vpop.eup %2455  ;;  %1233 = vmatprep.mubr.bf16.mxu0 %v2531_v0  ;;  %1386 = vmatprep.mubr.bf16.mxu1 %v2531_v0 }
 0x150   :  { %v945_v18 = vmul.f32 %v2456_v17, %v2444_v50  ;;  %v953_v19 = vmul.f32 %v2456_v17, %v2446_v53  ;;  %1518 = vmatpush1.bf16.msra.mxu0 %v2387_v13  ;;  %1671 = vmatpush1.bf16.msra.mxu1 %v2390_v14 }
 0x151   :  { %v2458_v22 = vpop.eup %2457  ;;  %1519 = vmatprep.subr.bf16.mxu0 %v2395_v15  ;;  %1672 = vmatprep.subr.bf16.mxu1 %v2398_v16 }
 0x152   :  { %v946_v25 = vmul.f32 %v2458_v22, %v2448_v54  ;;  %v954_v26 = vmul.f32 %v2458_v22, %v2450_v60 }
 0x154   :  { %v958_v27 = vpack.c.bf16 %v946_v25, %v945_v18  ;;  %v962_v28 = vpack.c.bf16 %v954_v26, %v953_v19  ;;  %1520 = vmatpush1.bf16.msra.mxu0 %v2393_v20  ;;  %1673 = vmatpush1.bf16.msra.mxu1 %v2396_v21 }
 0x155   :  { %1521 = vmatprep.subr.bf16.mxu0 %v2401_v23  ;;  %1674 = vmatprep.subr.bf16.mxu1 %v2404_v24  ;;  %v651_v33 = vpop.f32.mrb[16].mxu0 }
 0x156   :  { %1234 = vmatmul.mubr.bf16.gmra.mrb[44].mxu0 %v958_v27  ;;  %1387 = vmatmul.mubr.bf16.gmra.mrb[44].mxu1 %v962_v28  ;;  %v836_v34 = vpop.f32.mrb[16].mxu1  ;;  %v653_v36 = vpop.f32.mrb[17].mxu0 }
 0x157   :  { %1541 = vmatprep.mubr.bf16.mxu0 %v2531_v0  ;;  %1694 = vmatprep.mubr.bf16.mxu1 %v2531_v0  ;;  %v963_v35 = vmax.f32 %v651_v33, %v836_v34  ;;  %v838_v37 = vpop.f32.mrb[17].mxu1  ;;  %v654_v40 = vpop.f32.mrb[18].mxu0 }
 0x158   :  { %1522 = vmatpush1.bf16.msra.mxu0 %v2399_v29  ;;  %1675 = vmatpush1.bf16.msra.mxu1 %v2402_v30  ;;  %v839_v41 = vpop.f32.mrb[18].mxu1  ;;  %v656_v45 = vpop.f32.mrb[19].mxu0 }
 0x159   :  { %1523 = vmatprep.subr.bf16.mxu0 %v2407_v31  ;;  %1676 = vmatprep.subr.bf16.mxu1 %v2410_v32  ;;  %v971_v42 = vsub.f32 %v651_v33, %v963_v35  ;;  %v979_v43 = vsub.f32 %v836_v34, %v963_v35  ;;  %v964_v44 = vmax.f32 %v654_v40, %v839_v41  ;;  %v841_v46 = vpop.f32.mrb[19].mxu1 }
 0x15b   :  { %v987_v47 = vmul.f32 1.442695, %v971_v42  ;;  %v1003_v48 = vmul.f32 1.442695, %v979_v43  ;;  %v972_v49 = vsub.f32 %v654_v40, %v964_v44  ;;  %v980_v50 = vsub.f32 %v839_v41, %v964_v44 }
 0x15c   :  { %1524 = vmatpush1.bf16.msra.mxu0 %v2405_v38  ;;  %1677 = vmatpush1.bf16.msra.mxu1 %v2408_v39 }
 0x15d   :  { %2459 = vpow2.f32 %v987_v47  ;;  %v989_v51 = vmul.f32 1.442695, %v972_v49  ;;  %v1005_v52 = vmul.f32 1.442695, %v980_v50  ;;  %v659_v53 = vpop.f32.mrb[20].mxu0 }
 0x15e   :  { %2461 = vpow2.f32 %v1003_v48  ;;  %v844_v54 = vpop.f32.mrb[20].mxu1  ;;  %v661_v56 = vpop.f32.mrb[21].mxu0 }
 0x15f   :  { %2463 = vpow2.f32 %v989_v51  ;;  %v965_v55 = vmax.f32 %v659_v53, %v844_v54  ;;  %v846_v57 = vpop.f32.mrb[21].mxu1  ;;  %v662_v58 = vpop.f32.mrb[22].mxu0 }
 0x160   :  { %2465 = vpow2.f32 %v1005_v52  ;;  %v847_v59 = vpop.f32.mrb[22].mxu1  ;;  %v664_v63 = vpop.f32.mrb[23].mxu0 }
 0x161   :  { %v973_v60 = vsub.f32 %v659_v53, %v965_v55  ;;  %v981_v61 = vsub.f32 %v844_v54, %v965_v55  ;;  %v966_v62 = vmax.f32 %v662_v58, %v847_v59  ;;  %v849_v1 = vpop.f32.mrb[23].mxu1 }
 0x163   :  { %v991_v2 = vmul.f32 1.442695, %v973_v60  ;;  %v1007_v3 = vmul.f32 1.442695, %v981_v61  ;;  %v974_v4 = vsub.f32 %v662_v58, %v966_v62  ;;  %v982_v5 = vsub.f32 %v847_v59, %v966_v62 }
 0x165   :  { %2467 = vpow2.f32 %v991_v2  ;;  %v993_v6 = vmul.f32 1.442695, %v974_v4  ;;  %v1009_v7 = vmul.f32 1.442695, %v982_v5  ;;  %v667_v8 = vpop.f32.mrb[24].mxu0 }
 0x166   :  { %2469 = vpow2.f32 %v1007_v3  ;;  %v852_v9 = vpop.f32.mrb[24].mxu1  ;;  %v669_v12 = vpop.f32.mrb[25].mxu0 }
 0x167   :  { %v2460_v10 = vpop.eup %2459  ;;  %2471 = vpow2.f32 %v993_v6  ;;  %v967_v11 = vmax.f32 %v667_v8, %v852_v9  ;;  %v854_v13 = vpop.f32.mrb[25].mxu1 }
 0x168   :  { %v2462_v14 = vpop.eup %2461  ;;  %2473 = vpow2.f32 %v1009_v7  ;;  %v670_v15 = vpop.f32.mrb[26].mxu0 }
 0x169   :  { %v855_v16 = vpop.f32.mrb[26].mxu1  ;;  %v2464_v17 = vpop.eup %2463  ;;  %v1019_v18 = vadd.f32 %v2462_v14, %v2460_v10  ;;  %v975_v19 = vsub.f32 %v667_v8, %v967_v11  ;;  %v983_v20 = vsub.f32 %v852_v9, %v967_v11 }
 0x16a   :  { %v968_v21 = vmax.f32 %v670_v15, %v855_v16  ;;  %v672_v22 = vpop.f32.mrb[27].mxu0  ;;  %v857_v23 = vpop.f32.mrb[27].mxu1 }
 0x16b   :  { %v2466_v24 = vpop.eup %2465  ;;  %2475 = vrcp.f32 %v1019_v18  ;;  %v995_v26 = vmul.f32 1.442695, %v975_v19  ;;  %v1011_v27 = vmul.f32 1.442695, %v983_v20 }
 0x16c   :  { %v1020_v25 = vadd.f32 %v2466_v24, %v2464_v17  ;;  %v976_v28 = vsub.f32 %v670_v15, %v968_v21  ;;  %v984_v29 = vsub.f32 %v855_v16, %v968_v21 }
 0x16d   :  { %v675_v32 = vpop.f32.mrb[28].mxu0 }
 0x16e   :  { %2477 = vrcp.f32 %v1020_v25  ;;  %v997_v30 = vmul.f32 1.442695, %v976_v28  ;;  %v1013_v31 = vmul.f32 1.442695, %v984_v29  ;;  %v860_v33 = vpop.f32.mrb[28].mxu1  ;;  %v677_v36 = vpop.f32.mrb[29].mxu0 }
 0x16f   :  { %2479 = vpow2.f32 %v995_v26  ;;  %v2468_v34 = vpop.eup %2467  ;;  %v969_v35 = vmax.f32 %v675_v32, %v860_v33  ;;  %v862_v37 = vpop.f32.mrb[29].mxu1 }
 0x170   :  { %2481 = vpow2.f32 %v1011_v27  ;;  %v2470_v38 = vpop.eup %2469  ;;  %v678_v39 = vpop.f32.mrb[30].mxu0  ;;  %v1735_v37 = vld [vmem:[%s3288_s0] sm:$0xff] }
 0x171   :  { %2483 = vpow2.f32 %v997_v30  ;;  %v863_v40 = vpop.f32.mrb[30].mxu1  ;;  %v2472_v41 = vpop.eup %2471  ;;  %v1021_v42 = vadd.f32 %v2470_v38, %v2468_v34  ;;  %v977_v43 = vsub.f32 %v675_v32, %v969_v35  ;;  %v985_v44 = vsub.f32 %v860_v33, %v969_v35 }
 0x172   :  { %2485 = vpow2.f32 %v1013_v31  ;;  %v680_v45 = vpop.f32.mrb[31].mxu0  ;;  %v865_v46 = vpop.f32.mrb[31].mxu1  ;;  %v970_v48 = vmax.f32 %v678_v39, %v863_v40 }
 0x173   :  { %v2474_v47 = vpop.eup %2473  ;;  %2487 = vrcp.f32 %v1021_v42  ;;  %v999_v50 = vmul.f32 1.442695, %v977_v43  ;;  %v1015_v51 = vmul.f32 1.442695, %v985_v44  ;;  %v1752_v42 = vld [vmem:[%s3288_s0 + $0x88] sm:$0xff]  ;;  %v1737_v44 = vld [vmem:[%s3288_s0 + $0x10] sm:$0xff] }
 0x174   :  { %v1022_v49 = vadd.f32 %v2474_v47, %v2472_v41  ;;  %v978_v52 = vsub.f32 %v678_v39, %v970_v48  ;;  %v986_v53 = vsub.f32 %v863_v40, %v970_v48  ;;  %v1783_v39 = vld [vmem:[%s3289_s1 + $0x80] sm:$0xff]  ;;  %v1736_v40 = vld [vmem:[%s3288_s0 + $0x8] sm:$0xff]  ;;  %v1769_v45 = vld [vmem:[%s3289_s1 + $0x10] sm:$0xff] }
 0x175   :  { %v2476_v54 = vpop.eup %2475  ;;  %v1784_v43 = vld [vmem:[%s3289_s1 + $0x88] sm:$0xff]  ;;  %v1753_v46 = vld [vmem:[%s3288_s0 + $0x90] sm:$0xff]  ;;  %v1738_v48 = vld [vmem:[%s3288_s0 + $0x18] sm:$0xff] }
 0x176   :  { %2489 = vrcp.f32 %v1022_v49  ;;  %v1043_v55 = vmul.f32 %v2476_v54, %v2462_v14  ;;  %v1001_v56 = vmul.f32 1.442695, %v978_v52  ;;  %v1017_v57 = vmul.f32 1.442695, %v986_v53  ;;  %v1754_v52 = vld [vmem:[%s3288_s0 + $0x98] sm:$0xff] }
 0x177   :  { %2491 = vpow2.f32 %v999_v50  ;;  %v1035_v59 = vmul.f32 %v2476_v54, %v2460_v10  ;;  %v1786_v53 = vld [vmem:[%s3289_s1 + $0x98] sm:$0xff] }
 0x178   :  { %v2478_v58 = vpop.eup %2477  ;;  %2493 = vpow2.f32 %v1015_v51  ;;  %v1770_v51 = vld [vmem:[%s3289_s1 + $0x18] sm:$0xff] }
 0x179   :  { %v2480_v60 = vpop.eup %2479  ;;  %v1044_v61 = vmul.f32 %v2478_v58, %v2466_v24  ;;  %2495 = vpow2.f32 %v1001_v56  ;;  %v1036_v62 = vmul.f32 %v2478_v58, %v2464_v17  ;;  %v1801_v56 = vadd.f32 %v1769_v45, %v1737_v44 }
 0x17a   :  { %v2482_v63 = vpop.eup %2481  ;;  %2497 = vpow2.f32 %v1017_v57 }
 0x17b   :  { %v2484_v1 = vpop.eup %2483  ;;  %v1023_v2 = vadd.f32 %v2482_v63, %v2480_v60  ;;  %v1051_v3 = vpack.c.bf16 %v1036_v62, %v1035_v59  ;;  %v1055_v4 = vpack.c.bf16 %v1044_v61, %v1043_v55  ;;  %v1816_v55 = vadd.f32 %v1784_v43, %v1752_v42  ;;  %v1739_v62 = vld [vmem:[%s3288_s0 + $0x20] sm:$0xff] }
 0x17c   :  { %v2486_v5 = vpop.eup %2485  ;;  %v1818_v61 = vadd.f32 %v1786_v53, %v1754_v52  ;;  %v1743_v42 = vld [vmem:[%s3288_s0 + $0x40] sm:$0xff] }
 0x17d   :  { %2499 = vrcp.f32 %v1023_v2  ;;  %v1024_v6 = vadd.f32 %v2486_v5, %v2484_v1  ;;  %1542 = vmatmul.mubr.bf16.vlgmr.msra.gmra.mrb[32].mxu0 %v1051_v3  ;;  %1695 = vmatmul.mubr.bf16.vlgmr.msra.gmra.mrb[32].mxu1 %v1055_v4  ;;  %v2488_v7 = vpop.eup %2487  ;;  %v1771_v4 = vld [vmem:[%s3289_s1 + $0x20] sm:$0xff] }
 0x17e   :  { %1551 = vmatprep.mubr.bf16.mxu0 %v2531_v0  ;;  %1704 = vmatprep.mubr.bf16.mxu1 %v2531_v0  ;;  %v1037_v8 = vmul.f32 %v2488_v7, %v2468_v34  ;;  %v1045_v9 = vmul.f32 %v2488_v7, %v2470_v38  ;;  %v1767_v38 = vld [vmem:[%s3289_s1] sm:$0xff] }
 0x17f   :  { %2501 = vrcp.f32 %v1024_v6  ;;  %v1799_v49 = vadd.f32 %v1767_v38, %v1735_v37  ;;  %v1787_v6 = vld [vmem:[%s3289_s1 + $0xa0] sm:$0xff] }
 0x180   :  { %v2490_v10 = vpop.eup %2489 }
 0x181   :  { %v2492_v11 = vpop.eup %2491  ;;  %v1038_v12 = vmul.f32 %v2490_v10, %v2472_v41  ;;  %v1046_v13 = vmul.f32 %v2490_v10, %v2474_v47  ;;  %v1768_v41 = vld [vmem:[%s3289_s1 + $0x8] sm:$0xff]  ;;  %v1785_v47 = vld [vmem:[%s3289_s1 + $0x90] sm:$0xff] }
 0x182   :  { %v2494_v14 = vpop.eup %2493  ;;  %v1800_v54 = vadd.f32 %v1768_v41, %v1736_v40  ;;  %v1817_v57 = vadd.f32 %v1785_v47, %v1753_v46  ;;  %v1775_v47 = vld [vmem:[%s3289_s1 + $0x40] sm:$0xff] }
 0x183   :  { %v2496_v15 = vpop.eup %2495  ;;  %v1025_v16 = vadd.f32 %v2494_v14, %v2492_v11  ;;  %v1052_v17 = vpack.c.bf16 %v1038_v12, %v1037_v8  ;;  %v1056_v18 = vpack.c.bf16 %v1046_v13, %v1045_v9  ;;  %v1772_v12 = vld [vmem:[%s3289_s1 + $0x28] sm:$0xff] }
 0x184   :  { %v2498_v19 = vpop.eup %2497  ;;  %v1756_v13 = vld [vmem:[%s3288_s0 + $0xa8] sm:$0xff] }
 0x185   :  { %2503 = vrcp.f32 %v1025_v16  ;;  %v1026_v20 = vadd.f32 %v2498_v19, %v2496_v15  ;;  %1552 = vmatmul.mubr.bf16.gmra.mrb[36].mxu0 %v1052_v17  ;;  %1705 = vmatmul.mubr.bf16.gmra.mrb[36].mxu1 %v1056_v18  ;;  %v1788_v18 = vld [vmem:[%s3289_s1 + $0xa8] sm:$0xff] }
 0x186   :  { %1561 = vmatprep.mubr.bf16.mxu0 %v2531_v0  ;;  %1714 = vmatprep.mubr.bf16.mxu1 %v2531_v0 }
 0x187   :  { %v2500_v21 = vpop.eup %2499  ;;  %2505 = vrcp.f32 %v1026_v20  ;;  %v1773_v20 = vld [vmem:[%s3289_s1 + $0x30] sm:$0xff] }
 0x188   :  { %v1039_v22 = vmul.f32 %v2500_v21, %v2480_v60  ;;  %v1047_v23 = vmul.f32 %v2500_v21, %v2482_v63  ;;  %v1802_v60 = vadd.f32 %v1770_v51, %v1738_v48  ;;  %v1759_v48 = vld [vmem:[%s3288_s0 + $0xc0] sm:$0xff] }
 0x189   :  { %v2502_v24 = vpop.eup %2501 }
 0x18a   :  { %v1040_v25 = vmul.f32 %v2502_v24, %v2484_v1  ;;  %v1048_v26 = vmul.f32 %v2502_v24, %v2486_v5  ;;  %v1755_v5 = vld [vmem:[%s3288_s0 + $0xa0] sm:$0xff]  ;;  %v1789_v24 = vld [vmem:[%s3289_s1 + $0xb0] sm:$0xff] }
 0x18c   :  { %v1053_v27 = vpack.c.bf16 %v1040_v25, %v1039_v22  ;;  %v1057_v28 = vpack.c.bf16 %v1048_v26, %v1047_v23  ;;  %v1757_v23 = vld [vmem:[%s3288_s0 + $0xb0] sm:$0xff]  ;;  %v1742_v25 = vld [vmem:[%s3288_s0 + $0x38] sm:$0xff]  ;;  %v1803_v26 = vadd.f32 %v1771_v4, %v1739_v62 }
 0x18d   :  { %v1761_v62 = vld [vmem:[%s3288_s0 + $0xd0] sm:$0xff]  ;;  %v1778_v4 = vld [vmem:[%s3289_s1 + $0x58] sm:$0xff] }
 0x18e   :  { %1562 = vmatmul.mubr.bf16.gmra.mrb[40].mxu0 %v1053_v27  ;;  %1715 = vmatmul.mubr.bf16.gmra.mrb[40].mxu1 %v1057_v28  ;;  %v1819_v27 = vadd.f32 %v1787_v6, %v1755_v5  ;;  %v1774_v28 = vld [vmem:[%s3289_s1 + $0x38] sm:$0xff] }
 0x18f   :  { %v2504_v29 = vpop.eup %2503  ;;  %1571 = vmatprep.mubr.bf16.mxu0 %v2531_v0  ;;  %1724 = vmatprep.mubr.bf16.mxu1 %v2531_v0  ;;  %v1751_v0 = vld [vmem:[%s3288_s0 + $0x80] sm:$0xff]  ;;  %v1806_v37 = vadd.f32 %v1774_v28, %v1742_v25  ;;  %v1762_v5 = vld [vmem:[%s3288_s0 + $0xd8] sm:$0xff]  ;;  %v1780_v28 = vld [vmem:[%s3289_s1 + $0x68] sm:$0xff] }
 0x190   :  { %v1041_v30 = vmul.f32 %v2504_v29, %v2492_v11  ;;  %v1049_v31 = vmul.f32 %v2504_v29, %v2494_v14  ;;  %v1815_v50 = vadd.f32 %v1783_v39, %v1751_v0  ;;  %v1740_v11 = vld [vmem:[%s3288_s0 + $0x28] sm:$0xff]  ;;  %v1758_v29 = vld [vmem:[%s3288_s0 + $0xb8] sm:$0xff] }
 0x191   :  { %v2506_v32 = vpop.eup %2505  ;;  %v1794_v6 = vld [vmem:[%s3289_s1 + $0xd8] sm:$0xff] }
 0x192   :  { %v1042_v33 = vmul.f32 %v2506_v32, %v2496_v15  ;;  %v1050_v34 = vmul.f32 %v2506_v32, %v2498_v19  ;;  %v1741_v19 = vld [vmem:[%s3288_s0 + $0x30] sm:$0xff]  ;;  %v1820_v32 = vadd.f32 %v1788_v18, %v1756_v13 }
 0x194   :  { %v1054_v35 = vpack.c.bf16 %v1042_v33, %v1041_v30  ;;  %v1058_v36 = vpack.c.bf16 %v1050_v34, %v1049_v31  ;;  %v1790_v30 = vld [vmem:[%s3289_s1 + $0xb8] sm:$0xff]  ;;  %v1804_v31 = vadd.f32 %v1772_v12, %v1740_v11  ;;  %v1805_v33 = vadd.f32 %v1773_v20, %v1741_v19  ;;  %v1779_v20 = vld [vmem:[%s3289_s1 + $0x60] sm:$0xff] }
 0x195   :  { %v1821_v34 = vadd.f32 %v1789_v24, %v1757_v23  ;;  %v1822_v38 = vadd.f32 %v1790_v30, %v1758_v29  ;;  %v1764_v29 = vld [vmem:[%s3288_s0 + $0xe8] sm:$0xff] }
 0x196   :  { %1572 = vmatmul.mubr.bf16.gmra.mrb[44].mxu0 %v1054_v35  ;;  %1725 = vmatmul.mubr.bf16.gmra.mrb[44].mxu1 %v1058_v36 }
 0x250   :  { %v1543_v58 = vpop.f32.mrb[32].mxu0  ;;  %v1696_v59 = vpop.f32.mrb[32].mxu1 }
 0x251   :  { %v2103_v63 = vadd.f32 %v1799_v49, %v1543_v58  ;;  %v2119_v1 = vadd.f32 %v1815_v50, %v1696_v59  ;;  %v1545_v2 = vpop.f32.mrb[33].mxu0  ;;  %v1698_v3 = vpop.f32.mrb[33].mxu1  ;;  %v1791_v49 = vld [vmem:[%s3289_s1 + $0xc0] sm:$0xff]  ;;  %v1792_v59 = vld [vmem:[%s3289_s1 + $0xc8] sm:$0xff] }
 0x252   :  { %v2104_v7 = vadd.f32 %v1800_v54, %v1545_v2  ;;  %v2120_v8 = vadd.f32 %v1816_v55, %v1698_v3  ;;  %v1547_v9 = vpop.f32.mrb[34].mxu0  ;;  %v1700_v10 = vpop.f32.mrb[34].mxu1  ;;  %v1744_v54 = vld [vmem:[%s3288_s0 + $0x48] sm:$0xff]  ;;  %v1807_v2 = vadd.f32 %v1775_v47, %v1743_v42  ;;  %v1823_v3 = vadd.f32 %v1791_v49, %v1759_v48 }
 0x253   :  { %1895 = vst [vmem:[#allocation2] sm:$0xff] %v2103_v63  ;;  %1911 = vst [vmem:[#allocation2 + $0x80] sm:$0xff] %v2119_v1  ;;  %v2105_v14 = vadd.f32 %v1801_v56, %v1547_v9  ;;  %v2121_v15 = vadd.f32 %v1817_v57, %v1700_v10  ;;  %v1549_v16 = vpop.f32.mrb[35].mxu0  ;;  %v1702_v17 = vpop.f32.mrb[35].mxu1  ;;  %v1776_v55 = vld [vmem:[%s3289_s1 + $0x48] sm:$0xff]  ;;  %v1793_v63 = vld [vmem:[%s3289_s1 + $0xd0] sm:$0xff] }
 0x254   :  { %1896 = vst [vmem:[#allocation2 + $0x8] sm:$0xff] %v2104_v7  ;;  %1912 = vst [vmem:[#allocation2 + $0x88] sm:$0xff] %v2120_v8  ;;  %v2106_v21 = vadd.f32 %v1802_v60, %v1549_v16  ;;  %v2122_v22 = vadd.f32 %v1818_v61, %v1702_v17  ;;  %v1760_v56 = vld [vmem:[%s3288_s0 + $0xc8] sm:$0xff]  ;;  %v1745_v60 = vld [vmem:[%s3288_s0 + $0x50] sm:$0xff]  ;;  %v1808_v7 = vadd.f32 %v1776_v55, %v1744_v54 }
 0x255   :  { %1897 = vst [vmem:[#allocation2 + $0x10] sm:$0xff] %v2105_v14  ;;  %1913 = vst [vmem:[#allocation2 + $0x90] sm:$0xff] %v2121_v15  ;;  %v1777_v61 = vld [vmem:[%s3289_s1 + $0x50] sm:$0xff]  ;;  %v1746_v1 = vld [vmem:[%s3288_s0 + $0x58] sm:$0xff]  ;;  %v1824_v8 = vadd.f32 %v1792_v59, %v1760_v56  ;;  %v1825_v10 = vadd.f32 %v1793_v63, %v1761_v62  ;;  %v1826_v14 = vadd.f32 %v1794_v6, %v1762_v5 }
 0x256   :  { %1898 = vst [vmem:[#allocation2 + $0x18] sm:$0xff] %v2106_v21  ;;  %1914 = vst [vmem:[#allocation2 + $0x98] sm:$0xff] %v2122_v22  ;;  %v1809_v9 = vadd.f32 %v1777_v61, %v1745_v60  ;;  %v1810_v13 = vadd.f32 %v1778_v4, %v1746_v1  ;;  %v1747_v15 = vld [vmem:[%s3288_s0 + $0x60] sm:$0xff] }
 0x257   :  { %v1763_v21 = vld [vmem:[%s3288_s0 + $0xe0] sm:$0xff] }
 0x258   :  { %v1553_v35 = vpop.f32.mrb[36].mxu0  ;;  %v1706_v36 = vpop.f32.mrb[36].mxu1  ;;  %v1795_v22 = vld [vmem:[%s3289_s1 + $0xe0] sm:$0xff] }
 0x259   :  { %v2107_v0 = vadd.f32 %v1803_v26, %v1553_v35  ;;  %v2123_v39 = vadd.f32 %v1819_v27, %v1706_v36  ;;  %v1555_v40 = vpop.f32.mrb[37].mxu0  ;;  %v1708_v41 = vpop.f32.mrb[37].mxu1  ;;  %v1748_v27 = vld [vmem:[%s3288_s0 + $0x68] sm:$0xff]  ;;  %v1749_v35 = vld [vmem:[%s3288_s0 + $0x70] sm:$0xff]  ;;  %v1827_v42 = vadd.f32 %v1795_v22, %v1763_v21 }
 0x25a   :  { %v2108_v43 = vadd.f32 %v1804_v31, %v1555_v40  ;;  %v2124_v44 = vadd.f32 %v1820_v32, %v1708_v41  ;;  %v1557_v45 = vpop.f32.mrb[38].mxu0  ;;  %v1710_v46 = vpop.f32.mrb[38].mxu1  ;;  %v1781_v36 = vld [vmem:[%s3289_s1 + $0x70] sm:$0xff]  ;;  %v1750_v40 = vld [vmem:[%s3288_s0 + $0x78] sm:$0xff]  ;;  %v1811_v41 = vadd.f32 %v1779_v20, %v1747_v15 }
 0x25b   :  { %1899 = vst [vmem:[#allocation2 + $0x20] sm:$0xff] %v2107_v0  ;;  %1915 = vst [vmem:[#allocation2 + $0xa0] sm:$0xff] %v2123_v39  ;;  %v2109_v50 = vadd.f32 %v1805_v33, %v1557_v45  ;;  %v2125_v51 = vadd.f32 %v1821_v34, %v1710_v46  ;;  %v1559_v52 = vpop.f32.mrb[39].mxu0  ;;  %v1712_v53 = vpop.f32.mrb[39].mxu1  ;;  %v1796_v34 = vld [vmem:[%s3289_s1 + $0xe8] sm:$0xff]  ;;  %v1765_v0 = vld [vmem:[%s3288_s0 + $0xf0] sm:$0xff]  ;;  %v1812_v46 = vadd.f32 %v1780_v28, %v1748_v27 }
 0x25c   :  { %1900 = vst [vmem:[#allocation2 + $0x28] sm:$0xff] %v2108_v43  ;;  %1916 = vst [vmem:[#allocation2 + $0xa8] sm:$0xff] %v2124_v44  ;;  %v2110_v57 = vadd.f32 %v1806_v37, %v1559_v52  ;;  %v2126_v58 = vadd.f32 %v1822_v38, %v1712_v53  ;;  %v1797_v39 = vld [vmem:[%s3289_s1 + $0xf0] sm:$0xff]  ;;  %v1782_v43 = vld [vmem:[%s3289_s1 + $0x78] sm:$0xff]  ;;  %v1828_v47 = vadd.f32 %v1796_v34, %v1764_v29 }
 0x25d   :  { %1901 = vst [vmem:[#allocation2 + $0x30] sm:$0xff] %v2109_v50  ;;  %1917 = vst [vmem:[#allocation2 + $0xb0] sm:$0xff] %v2125_v51  ;;  %v1766_v44 = vld [vmem:[%s3288_s0 + $0xf8] sm:$0xff]  ;;  %v1813_v48 = vadd.f32 %v1781_v36, %v1749_v35  ;;  %v1829_v49 = vadd.f32 %v1797_v39, %v1765_v0  ;;  %v1814_v52 = vadd.f32 %v1782_v43, %v1750_v40  ;;  %s2507_s0 = scalar_lea.vmem %s1933_s20, 4096 }
 0x25e   :  { %1902 = vst [vmem:[#allocation2 + $0x38] sm:$0xff] %v2110_v57  ;;  %1918 = vst [vmem:[#allocation2 + $0xb8] sm:$0xff] %v2126_v58  ;;  %v1798_v45 = vld [vmem:[%s3289_s1 + $0xf8] sm:$0xff]  ;;  %p2508_p0 = scmp.ne.s32.totalorder %s1933_s20, %s2507_s0  ;;  %p2513_p2 = scmp.lt.s32.totalorder %s2507_s0, %s2507_s0 }
 0x25f   :  { %v1830_v53 = vadd.f32 %v1798_v45, %v1766_v44 }
 0x260   :  { %p2514_p3 = por %p2513_p2, %p2512_p1 }
 0x261   :  { %v1563_v11 = vpop.f32.mrb[40].mxu0  ;;  %v1716_v12 = vpop.f32.mrb[40].mxu1 }
 0x262   :  { %v2111_v16 = vadd.f32 %v1807_v2, %v1563_v11  ;;  %v2127_v17 = vadd.f32 %v1823_v3, %v1716_v12  ;;  %v1565_v18 = vpop.f32.mrb[41].mxu0  ;;  %v1718_v19 = vpop.f32.mrb[41].mxu1  ;;  %p2515_p4 = pnand %p2514_p3, %p2508_p0 }
 0x263   :  { %v2112_v23 = vadd.f32 %v1808_v7, %v1565_v18  ;;  %v2128_v24 = vadd.f32 %v1824_v8, %v1718_v19  ;;  %v1567_v25 = vpop.f32.mrb[42].mxu0  ;;  %v1720_v26 = vpop.f32.mrb[42].mxu1 }
 0x264   :  { %1903 = vst [vmem:[#allocation2 + $0x40] sm:$0xff] %v2111_v16  ;;  %1919 = vst [vmem:[#allocation2 + $0xc0] sm:$0xff] %v2127_v17  ;;  %v2113_v30 = vadd.f32 %v1809_v9, %v1567_v25  ;;  %v2129_v31 = vadd.f32 %v1825_v10, %v1720_v26  ;;  %v1569_v32 = vpop.f32.mrb[43].mxu0  ;;  %v1722_v33 = vpop.f32.mrb[43].mxu1 }
 0x265   :  { %1904 = vst [vmem:[#allocation2 + $0x48] sm:$0xff] %v2112_v23  ;;  %1920 = vst [vmem:[#allocation2 + $0xc8] sm:$0xff] %v2128_v24  ;;  %v2114_v37 = vadd.f32 %v1810_v13, %v1569_v32  ;;  %v2130_v38 = vadd.f32 %v1826_v14, %v1722_v33 }
 0x266   :  { %1905 = vst [vmem:[#allocation2 + $0x50] sm:$0xff] %v2113_v30  ;;  %1921 = vst [vmem:[#allocation2 + $0xd0] sm:$0xff] %v2129_v31 }
 0x267   :  { %1906 = vst [vmem:[#allocation2 + $0x58] sm:$0xff] %v2114_v37  ;;  %1922 = vst [vmem:[#allocation2 + $0xd8] sm:$0xff] %v2130_v38 }
 0x269   :  { %v1573_v50 = vpop.f32.mrb[44].mxu0  ;;  %v1726_v51 = vpop.f32.mrb[44].mxu1 }
 0x26a   :  { %v2115_v54 = vadd.f32 %v1811_v41, %v1573_v50  ;;  %v2131_v55 = vadd.f32 %v1827_v42, %v1726_v51  ;;  %v1575_v56 = vpop.f32.mrb[45].mxu0  ;;  %v1728_v57 = vpop.f32.mrb[45].mxu1 }
 0x26b   :  { %v2116_v58 = vadd.f32 %v1812_v46, %v1575_v56  ;;  %v2132_v59 = vadd.f32 %v1828_v47, %v1728_v57  ;;  %v1577_v60 = vpop.f32.mrb[46].mxu0  ;;  %v1730_v61 = vpop.f32.mrb[46].mxu1 }
 0x26c   :  { %1907 = vst [vmem:[#allocation2 + $0x60] sm:$0xff] %v2115_v54  ;;  %1923 = vst [vmem:[#allocation2 + $0xe0] sm:$0xff] %v2131_v55  ;;  %v2117_v62 = vadd.f32 %v1813_v48, %v1577_v60  ;;  %v2133_v63 = vadd.f32 %v1829_v49, %v1730_v61  ;;  %v1579_v1 = vpop.f32.mrb[47].mxu0  ;;  %v1732_v2 = vpop.f32.mrb[47].mxu1 }
 0x26d   :  { %1908 = vst [vmem:[#allocation2 + $0x68] sm:$0xff] %v2116_v58  ;;  %1924 = vst [vmem:[#allocation2 + $0xe8] sm:$0xff] %v2132_v59  ;;  %v2118_v3 = vadd.f32 %v1814_v52, %v1579_v1  ;;  %v2134_v4 = vadd.f32 %v1830_v53, %v1732_v2 }
 0x26e   :  { %1909 = vst [vmem:[#allocation2 + $0x70] sm:$0xff] %v2117_v62  ;;  %1925 = vst [vmem:[#allocation2 + $0xf0] sm:$0xff] %v2133_v63 }
 0x26f   :  { %1910 = vst [vmem:[#allocation2 + $0x78] sm:$0xff] %v2118_v3  ;;  %1926 = vst [vmem:[#allocation2 + $0xf8] sm:$0xff] %v2134_v4 }
 0x270   :  { %2518 = shalt.err (!%p2515_p4)
}
 0x271   :  { %s2519_s22 = scalar_lea.hbm %s3296_s8, 4096 }
 0x272   :  { %p2520_p5 = scmp.ne.s32.totalorder %s3296_s8, %s2519_s22  ;;  %p2523_p6 = scmp.lt.u32.totalorder %s2519_s22, %s3296_s8 }
 0x274   :  { %p2525_p7 = pnand %p2523_p6, %p2520_p5 }
 0x276   :  { %2528 = shalt.err (!%p2525_p7)
}
 0x277   :  { %s2533_s2 = smov 256   ;;  %s2534_s26 = smov 16  }
 0x278   :  { %1938 = dma.vmem_to_hbm [thread:$0]  %s1933_s20, 4096, %s3296_s8, [#allocation3], %s2533_s2, %s2533_s2, %s2534_s26  }
 0x279   :  { %2529 = dma.done.wait [#allocation3], 4096  }
 0x27a   :  { %2530 = vsyncadd [#allocation3], 4294963200 }
 0x27b   :  { %1942 = vsyncpa [#allocation3], 1 }

// kernel: ca_forward.2
= control target key start
LH: loop header
LB: loop body
LE: loop exit
PB: predicated region body
PF: predicated region fallthrough
CT: control target
= control target key end

     0   :  { %17 = vsyncpa [#allocation3], 0  ;;  %s4416_s0 = inlined_call_operand.hbm [shape: f32[128,256], index: 0, kind: input, shape index: {}]   ;;  %s4417_s1 = inlined_call_operand.hbm [shape: f32[128,256], index: 1, kind: input, shape index: {}]   ;;  %s4418_s2 = inlined_call_operand.hbm [shape: bf16[256,768], index: 2, kind: input, shape index: {}]   ;;  %s4419_s3 = inlined_call_operand.hbm [shape: bf16[256,768], index: 3, kind: input, shape index: {}]   ;;  %s4420_s4 = inlined_call_operand.vmem [shape: f32[1,768], index: 4, kind: input, shape index: {}]   ;;  %s4421_s5 = inlined_call_operand.hbm [shape: f32[1,768], index: 5, kind: input, shape index: {}]   ;;  %s4422_s6 = inlined_call_operand.vmem [shape: bf16[128,256], index: 6, kind: output, shape index: {0}]   ;;  %s4423_s7 = inlined_call_operand.vmem [shape: bf16[128,256], index: 7, kind: output, shape index: {1}]   ;;  %s4424_s8 = inlined_call_operand.vmem [shape: bf16[128,256], index: 8, kind: output, shape index: {2}]   ;;  %s4425_s9 = inlined_call_operand.vmem [shape: bf16[128,256], index: 9, kind: output, shape index: {3}]   ;;  %s4426_s10 = inlined_call_operand.vmem [shape: bf16[128,256], index: 10, kind: output, shape index: {4}]   ;;  %s4427_s11 = inlined_call_operand.vmem [shape: bf16[128,256], index: 11, kind: output, shape index: {5}]  }
   0x1   :  { %18 = vsyncpa [#allocation5], 0 }
   0x2   :  { %19 = vsyncpa [#allocation8], 0  ;;  %s3581_s17 = smov [#allocation4]   ;;  %s3465_s21 = scalar_lea.hbm %s4417_s1, 4096 }
   0x3   :  { %s37_s18 = sshll.u32 %s3581_s17, 4  ;;  %p3466_p0 = scmp.ne.s32.totalorder %s4417_s1, %s3465_s21  ;;  %s38_s18 = int_to_ptr.vmem [resolvable:$true] %s37_s18 }
   0x4   :  { %p3469_p1 = scmp.lt.u32.totalorder %s3465_s21, %s4417_s1 }
   0x6   :  { %p3471_p2 = pnand %p3469_p1, %p3466_p0 }
   0x8   :  { %3474 = shalt.err (!%p3471_p2)
}
   0x9   :  { %s3475_s26 = scalar_lea.vmem %s38_s18, 4096  ;;  %p3480_p4 = scmp.lt.s32.totalorder %s38_s18, %s38_s18 }
   0xa   :  { %p3476_p3 = scmp.ne.s32.totalorder %s38_s18, %s3475_s26  ;;  %p3481_p5 = scmp.lt.s32.totalorder %s3475_s26, %s3475_s26 }
   0xc   :  { %p3482_p6 = por %p3481_p5, %p3480_p4 }
   0xe   :  { %p3483_p7 = pnand %p3482_p6, %p3476_p3 }
  0x10   :  { %3486 = shalt.err (!%p3483_p7)
}
  0x11   :  { %s3582_s27 = smov 256   ;;  %s3583_s28 = smov 16  }
  0x12   :  { %43 = dma.hbm_to_vmem [thread:$0]  %s4417_s1, 4096, %s38_s18, [#allocation5], %s3582_s27, %s3582_s27, %s3583_s28  }
  0x13   :  { %s3584_s12 = smov [#allocation7]   ;;  %s3585_s14 = smov [#allocation2]  }
  0x14   :  { %s61_s13 = sshll.u32 %s3584_s12, 4  ;;  %s25_s15 = sshll.u32 %s3585_s14, 4  ;;  %s62_s13 = int_to_ptr.vmem [resolvable:$true] %s61_s13  ;;  %s26_s15 = int_to_ptr.vmem [resolvable:$true] %s25_s15 }
  0x15   :  { %s3487_s19 = scalar_lea.hbm %s4419_s3, 12288 }
  0x16   :  { %p3488_p8 = scmp.ne.s32.totalorder %s4419_s3, %s3487_s19  ;;  %p3491_p9 = scmp.lt.u32.totalorder %s3487_s19, %s4419_s3 }
  0x18   :  { %p3493_p10 = pnand %p3491_p9, %p3488_p8 }
  0x1a   :  { %3496 = shalt.err (!%p3493_p10)
}
  0x1b   :  { %s3497_s1 = scalar_lea.vmem %s62_s13, 12288  ;;  %p3502_p12 = scmp.lt.s32.totalorder %s62_s13, %s62_s13 }
  0x1c   :  { %p3498_p11 = scmp.ne.s32.totalorder %s62_s13, %s3497_s1  ;;  %p3503_p13 = scmp.lt.s32.totalorder %s3497_s1, %s3497_s1 }
  0x1e   :  { %p3504_p0 = por %p3503_p13, %p3502_p12 }
  0x20   :  { %p3505_p1 = pnand %p3504_p0, %p3498_p11 }
  0x22   :  { %3508 = shalt.err (!%p3505_p1)
}
  0x23   :  { %s3586_s18 = smov 384   ;;  %s3587_s24 = smov 24  }
  0x24   :  { %67 = dma.hbm_to_vmem [thread:$0]  %s4419_s3, 12288, %s62_s13, [#allocation8], %s3586_s18, %s3586_s18, %s3587_s24  }
  0x25   :  { %s3509_s12 = scalar_lea.hbm %s4416_s0, 4096 }
  0x26   :  { %p3510_p2 = scmp.ne.s32.totalorder %s4416_s0, %s3509_s12  ;;  %p3513_p3 = scmp.lt.u32.totalorder %s3509_s12, %s4416_s0 }
  0x28   :  { %p3515_p4 = pnand %p3513_p3, %p3510_p2 }
  0x2a   :  { %3518 = shalt.err (!%p3515_p4)
}
  0x2b   :  { %s3519_s20 = scalar_lea.vmem %s26_s15, 4096  ;;  %p3524_p6 = scmp.lt.s32.totalorder %s26_s15, %s26_s15 }
  0x2c   :  { %p3520_p5 = scmp.ne.s32.totalorder %s26_s15, %s3519_s20  ;;  %p3525_p7 = scmp.lt.s32.totalorder %s3519_s20, %s3519_s20 }
  0x2e   :  { %p3526_p8 = por %p3525_p7, %p3524_p6 }
  0x30   :  { %p3527_p9 = pnand %p3526_p8, %p3520_p5 }
  0x32   :  { %3530 = shalt.err (!%p3527_p9)
}
  0x33   :  { %31 = dma.hbm_to_vmem [thread:$0]  %s4416_s0, 4096, %s26_s15, [#allocation3], %s3582_s27, %s3582_s27, %s3583_s28  }
  0x34   :  { %s3588_s21 = smov [#allocation6]   ;;  %s3589_s23 = smov [#allocation9]  }
  0x35   :  { %s49_s22 = sshll.u32 %s3588_s21, 4  ;;  %s76_s1 = sshll.u32 %s3589_s23, 4  ;;  %s50_s22 = int_to_ptr.vmem [resolvable:$true] %s49_s22  ;;  %s77_s1 = int_to_ptr.vmem [resolvable:$true] %s76_s1 }
  0x36   :  { %s3531_s29 = scalar_lea.hbm %s4418_s2, 12288 }
  0x37   :  { %p3532_p10 = scmp.ne.s32.totalorder %s4418_s2, %s3531_s29  ;;  %p3535_p11 = scmp.lt.u32.totalorder %s3531_s29, %s4418_s2 }
  0x39   :  { %p3537_p12 = pnand %p3535_p11, %p3532_p10 }
  0x3b   :  { %3540 = shalt.err (!%p3537_p12)
}
  0x3c   :  { %s3541_s0 = scalar_lea.vmem %s50_s22, 12288  ;;  %p3546_p0 = scmp.lt.s32.totalorder %s50_s22, %s50_s22 }
  0x3d   :  { %p3542_p13 = scmp.ne.s32.totalorder %s50_s22, %s3541_s0  ;;  %p3547_p1 = scmp.lt.s32.totalorder %s3541_s0, %s3541_s0 }
  0x3f   :  { %p3548_p2 = por %p3547_p1, %p3546_p0 }
  0x41   :  { %p3549_p3 = pnand %p3548_p2, %p3542_p13 }
  0x43   :  { %3552 = shalt.err (!%p3549_p3)
}
  0x44   :  { %55 = dma.hbm_to_vmem [thread:$0]  %s4418_s2, 12288, %s50_s22, [#allocation5], %s3586_s18, %s3586_s18, %s3587_s24  }
  0x45   :  { %s3553_s19 = scalar_lea.hbm %s4421_s5, 96 }
  0x46   :  { %p3554_p4 = scmp.ne.s32.totalorder %s4421_s5, %s3553_s19  ;;  %p3557_p5 = scmp.lt.u32.totalorder %s3553_s19, %s4421_s5 }
  0x48   :  { %p3559_p6 = pnand %p3557_p5, %p3554_p4 }
  0x4a   :  { %3562 = shalt.err (!%p3559_p6)
}
  0x4b   :  { %s3563_s23 = scalar_lea.vmem %s77_s1, 96  ;;  %p3568_p8 = scmp.lt.s32.totalorder %s77_s1, %s77_s1 }
  0x4c   :  { %p3564_p7 = scmp.ne.s32.totalorder %s77_s1, %s3563_s23  ;;  %p3569_p9 = scmp.lt.s32.totalorder %s3563_s23, %s3563_s23 }
  0x4e   :  { %p3570_p10 = por %p3569_p9, %p3568_p8 }
  0x50   :  { %p3571_p11 = pnand %p3570_p10, %p3564_p7 }
  0x52   :  { %3574 = shalt.err (!%p3571_p11)
}
  0x53   :  { %79 = dma.hbm_to_vmem [thread:$0]  %s4421_s5, 96, %s77_s1, [#allocation8]  }
  0x54   :  { %3575 = dma.done.wait [#allocation3], 4096  }
  0x55   :  { %3576 = vsyncadd [#allocation3], 4294963200 }
  0x56   :  { %3577 = dma.done.wait [#allocation5], 16384  }
  0x57   :  { %3578 = vsyncadd [#allocation5], 4294950912 }
  0x58   :  { %3579 = dma.done.wait [#allocation8], 12384  }
  0x59   :  { %3580 = vsyncadd [#allocation8], 4294954912  ;;  %v3177_v0 = vld [vmem:[#allocation6 + $0x4] ss:$24 sps:$4 sm:$0xff]   ;;  %v3181_v2 = vld [vmem:[#allocation6] ss:$24 sps:$4 sm:$0xff]  }
  0x5a   :  { %v3179_v1 = vld [vmem:[#allocation6 + $0xc] ss:$24 sps:$4 sm:$0xff]   ;;  %751 = vmatprep.subr.bf16.mxu0 %v3177_v0  ;;  %v3182_v3 = vld [vmem:[#allocation6 + $0x8] ss:$24 sps:$4 sm:$0xff]   ;;  %v3185_v5 = vld [vmem:[#allocation6 + $0x3c] ss:$24 sps:$4 sm:$0xff]  }
  0x5b   :  { %864 = vmatprep.subr.bf16.mxu1 %v3179_v1  ;;  %v3183_v4 = vld [vmem:[#allocation6 + $0x34] ss:$24 sps:$4 sm:$0xff]   ;;  %752 = vmatpush1.bf16.msra.mxu0 %v3181_v2  ;;  %v3187_v6 = vld [vmem:[#allocation6 + $0x30] ss:$24 sps:$4 sm:$0xff]   ;;  %v3189_v8 = vld [vmem:[#allocation6 + $0x64] ss:$24 sps:$4 sm:$0xff]  }
  0x5c   :  { %865 = vmatpush1.bf16.msra.mxu1 %v3182_v3  ;;  %753 = vmatprep.subr.bf16.mxu0 %v3183_v4  ;;  %v3188_v7 = vld [vmem:[#allocation6 + $0x38] ss:$24 sps:$4 sm:$0xff]   ;;  %v3191_v9 = vld [vmem:[#allocation6 + $0x6c] ss:$24 sps:$4 sm:$0xff]   ;;  %v3194_v11 = vld [vmem:[#allocation6 + $0x68] ss:$24 sps:$4 sm:$0xff]  }
  0x5d   :  { %866 = vmatprep.subr.bf16.mxu1 %v3185_v5  ;;  %v3193_v10 = vld [vmem:[#allocation6 + $0x60] ss:$24 sps:$4 sm:$0xff]   ;;  %v3195_v12 = vld [vmem:[#allocation6 + $0x94] ss:$24 sps:$4 sm:$0xff]   ;;  %v3199_v14 = vld [vmem:[#allocation6 + $0x90] ss:$24 sps:$4 sm:$0xff]  }
  0x5e   :  { %v3197_v13 = vld [vmem:[#allocation6 + $0x9c] ss:$24 sps:$4 sm:$0xff]   ;;  %v3200_v15 = vld [vmem:[#allocation6 + $0x98] ss:$24 sps:$4 sm:$0xff]   ;;  %v3203_v17 = vld [vmem:[#allocation6 + $0xcc] ss:$24 sps:$4 sm:$0xff]  }
  0x5f   :  { %754 = vmatpush1.bf16.msra.mxu0 %v3187_v6  ;;  %v3201_v16 = vld [vmem:[#allocation6 + $0xc4] ss:$24 sps:$4 sm:$0xff]   ;;  %v3205_v18 = vld [vmem:[#allocation6 + $0xc0] ss:$24 sps:$4 sm:$0xff]   ;;  %v3207_v20 = vld [vmem:[#allocation6 + $0xf4] ss:$24 sps:$4 sm:$0xff]  }
  0x60   :  { %867 = vmatpush1.bf16.msra.mxu1 %v3188_v7  ;;  %755 = vmatprep.subr.bf16.mxu0 %v3189_v8  ;;  %v3206_v19 = vld [vmem:[#allocation6 + $0xc8] ss:$24 sps:$4 sm:$0xff]   ;;  %v3209_v21 = vld [vmem:[#allocation6 + $0xfc] ss:$24 sps:$4 sm:$0xff]   ;;  %v3212_v23 = vld [vmem:[#allocation6 + $0xf8] ss:$24 sps:$4 sm:$0xff]  }
  0x61   :  { %868 = vmatprep.subr.bf16.mxu1 %v3191_v9  ;;  %v3211_v22 = vld [vmem:[#allocation6 + $0xf0] ss:$24 sps:$4 sm:$0xff]   ;;  %v3213_v24 = vld [vmem:[#allocation6 + $0x124] ss:$24 sps:$4 sm:$0xff]   ;;  %v3217_v26 = vld [vmem:[#allocation6 + $0x120] ss:$24 sps:$4 sm:$0xff]  }
  0x62   :  { %v3215_v25 = vld [vmem:[#allocation6 + $0x12c] ss:$24 sps:$4 sm:$0xff]   ;;  %v3218_v27 = vld [vmem:[#allocation6 + $0x128] ss:$24 sps:$4 sm:$0xff]   ;;  %v3221_v29 = vld [vmem:[#allocation6 + $0x15c] ss:$24 sps:$4 sm:$0xff]  }
  0x63   :  { %756 = vmatpush1.bf16.msra.mxu0 %v3193_v10  ;;  %v3219_v28 = vld [vmem:[#allocation6 + $0x154] ss:$24 sps:$4 sm:$0xff]   ;;  %v3223_v30 = vld [vmem:[#allocation6 + $0x150] ss:$24 sps:$4 sm:$0xff]   ;;  %v3225_v32 = vld [vmem:[#allocation6 + $0x184] ss:$24 sps:$4 sm:$0xff]  }
  0x64   :  { %869 = vmatpush1.bf16.msra.mxu1 %v3194_v11  ;;  %757 = vmatprep.subr.bf16.mxu0 %v3195_v12  ;;  %v3224_v31 = vld [vmem:[#allocation6 + $0x158] ss:$24 sps:$4 sm:$0xff]   ;;  %v3227_v33 = vld [vmem:[#allocation6 + $0x18c] ss:$24 sps:$4 sm:$0xff]   ;;  %v3230_v35 = vld [vmem:[#allocation6 + $0x188] ss:$24 sps:$4 sm:$0xff]  }
  0x65   :  { %870 = vmatprep.subr.bf16.mxu1 %v3197_v13  ;;  %v3229_v34 = vld [vmem:[#allocation6 + $0x180] ss:$24 sps:$4 sm:$0xff]   ;;  %v3231_v36 = vld [vmem:[#allocation6 + $0x1b4] ss:$24 sps:$4 sm:$0xff]   ;;  %v3235_v38 = vld [vmem:[#allocation6 + $0x1b0] ss:$24 sps:$4 sm:$0xff]  }
  0x66   :  { %v3233_v37 = vld [vmem:[#allocation6 + $0x1bc] ss:$24 sps:$4 sm:$0xff]   ;;  %v3236_v39 = vld [vmem:[#allocation6 + $0x1b8] ss:$24 sps:$4 sm:$0xff]   ;;  %v3239_v41 = vld [vmem:[#allocation6 + $0x1ec] ss:$24 sps:$4 sm:$0xff]  }
  0x67   :  { %758 = vmatpush1.bf16.msra.mxu0 %v3199_v14  ;;  %v3237_v40 = vld [vmem:[#allocation6 + $0x1e4] ss:$24 sps:$4 sm:$0xff]   ;;  %v3241_v42 = vld [vmem:[#allocation6 + $0x1e0] ss:$24 sps:$4 sm:$0xff]   ;;  %v3243_v44 = vld [vmem:[#allocation6 + $0x214] ss:$24 sps:$4 sm:$0xff]  }
  0x68   :  { %871 = vmatpush1.bf16.msra.mxu1 %v3200_v15  ;;  %759 = vmatprep.subr.bf16.mxu0 %v3201_v16  ;;  %v3242_v43 = vld [vmem:[#allocation6 + $0x1e8] ss:$24 sps:$4 sm:$0xff]   ;;  %v3245_v45 = vld [vmem:[#allocation6 + $0x21c] ss:$24 sps:$4 sm:$0xff]   ;;  %v3248_v48 = vld [vmem:[#allocation6 + $0x218] ss:$24 sps:$4 sm:$0xff]  }
  0x69   :  { %872 = vmatprep.subr.bf16.mxu1 %v3203_v17  ;;  %v96_v46 = vld [vmem:[#allocation2 + $0x8] sm:$0xff]  ;;  %v98_v49 = vld [vmem:[#allocation2 + $0x18] sm:$0xff]  ;;  %v95_v3 = vld [vmem:[#allocation2] sm:$0xff] }
  0x6a   :  { %v3247_v47 = vld [vmem:[#allocation6 + $0x210] ss:$24 sps:$4 sm:$0xff]   ;;  %v3249_v50 = vld [vmem:[#allocation6 + $0x244] ss:$24 sps:$4 sm:$0xff]   ;;  %v3722_v51 = vpack.c.bf16 %v98_v49, %v96_v46  ;;  %v3253_v53 = vld [vmem:[#allocation6 + $0x240] ss:$24 sps:$4 sm:$0xff]  }
  0x6b   :  { %760 = vmatpush1.bf16.msra.mxu0 %v3205_v18  ;;  %v3251_v52 = vld [vmem:[#allocation6 + $0x24c] ss:$24 sps:$4 sm:$0xff]   ;;  %v3254_v54 = vld [vmem:[#allocation6 + $0x248] ss:$24 sps:$4 sm:$0xff]   ;;  %v3257_v56 = vld [vmem:[#allocation6 + $0x27c] ss:$24 sps:$4 sm:$0xff]  }
  0x6c   :  { %873 = vmatpush1.bf16.msra.mxu1 %v3206_v19  ;;  %761 = vmatprep.subr.bf16.mxu0 %v3207_v20  ;;  %v3255_v55 = vld [vmem:[#allocation6 + $0x274] ss:$24 sps:$4 sm:$0xff]   ;;  %v3259_v57 = vld [vmem:[#allocation6 + $0x270] ss:$24 sps:$4 sm:$0xff]   ;;  %v3261_v59 = vld [vmem:[#allocation6 + $0x2a4] ss:$24 sps:$4 sm:$0xff]  }
  0x6d   :  { %874 = vmatprep.subr.bf16.mxu1 %v3209_v21  ;;  %783 = vmatprep.mubr.bf16.mxu0 %v3722_v51  ;;  %v3260_v58 = vld [vmem:[#allocation6 + $0x278] ss:$24 sps:$4 sm:$0xff]   ;;  %v3263_v60 = vld [vmem:[#allocation6 + $0x2ac] ss:$24 sps:$4 sm:$0xff]   ;;  %v3266_v62 = vld [vmem:[#allocation6 + $0x2a8] ss:$24 sps:$4 sm:$0xff]  }
  0x6e   :  { %896 = vmatprep.mubr.bf16.mxu1 %v3722_v51  ;;  %v3265_v61 = vld [vmem:[#allocation6 + $0x2a0] ss:$24 sps:$4 sm:$0xff]   ;;  %v3267_v63 = vld [vmem:[#allocation6 + $0x2d4] ss:$24 sps:$4 sm:$0xff]   ;;  %v3271_v1 = vld [vmem:[#allocation6 + $0x2d0] ss:$24 sps:$4 sm:$0xff]  }
  0x6f   :  { %762 = vmatpush1.bf16.msra.mxu0 %v3211_v22  ;;  %v3269_v0 = vld [vmem:[#allocation6 + $0x2dc] ss:$24 sps:$4 sm:$0xff]   ;;  %v3272_v2 = vld [vmem:[#allocation6 + $0x2d8] ss:$24 sps:$4 sm:$0xff]   ;;  %v100_v10 = vld [vmem:[#allocation2 + $0x28] sm:$0xff] }
  0x70   :  { %875 = vmatpush1.bf16.msra.mxu1 %v3212_v23  ;;  %763 = vmatprep.subr.bf16.mxu0 %v3213_v24  ;;  %v97_v4 = vld [vmem:[#allocation2 + $0x10] sm:$0xff]  ;;  %v3278_v6 = vld [vmem:[#allocation7 + $0x4] ss:$24 sps:$4 sm:$0xff]   ;;  %v3276_v9 = vld [vmem:[#allocation7] ss:$24 sps:$4 sm:$0xff]  }
  0x71   :  { %876 = vmatprep.subr.bf16.mxu1 %v3215_v25  ;;  %v3275_v5 = vld [vmem:[#allocation6 + $0x14] ss:$24 sps:$4 sm:$0xff]   ;;  %v3273_v7 = vld [vmem:[#allocation6 + $0x10] ss:$24 sps:$4 sm:$0xff]   ;;  %v3726_v8 = vpack.c.bf16 %v97_v4, %v95_v3  ;;  %v102_v11 = vld [vmem:[#allocation2 + $0x38] sm:$0xff] }
  0x72   :  { %v3281_v12 = vld [vmem:[#allocation6 + $0x44] ss:$24 sps:$4 sm:$0xff]   ;;  %v3284_v13 = vld [vmem:[#allocation7 + $0x34] ss:$24 sps:$4 sm:$0xff]   ;;  %v3279_v14 = vld [vmem:[#allocation6 + $0x40] ss:$24 sps:$4 sm:$0xff]   ;;  %v3728_v15 = vpack.c.bf16 %v102_v11, %v100_v10 }
  0x73   :  { %764 = vmatpush1.bf16.msra.mxu0 %v3217_v26  ;;  %v3282_v16 = vld [vmem:[#allocation7 + $0x30] ss:$24 sps:$4 sm:$0xff]   ;;  %v99_v17 = vld [vmem:[#allocation2 + $0x20] sm:$0xff]  ;;  %v3287_v19 = vld [vmem:[#allocation6 + $0x74] ss:$24 sps:$4 sm:$0xff]  }
  0x74   :  { %877 = vmatpush1.bf16.msra.mxu1 %v3218_v27  ;;  %765 = vmatprep.subr.bf16.mxu0 %v3219_v28  ;;  %v101_v18 = vld [vmem:[#allocation2 + $0x30] sm:$0xff]  ;;  %v3290_v20 = vld [vmem:[#allocation7 + $0x64] ss:$24 sps:$4 sm:$0xff]   ;;  %v3288_v22 = vld [vmem:[#allocation7 + $0x60] ss:$24 sps:$4 sm:$0xff]  }
  0x75   :  { %878 = vmatprep.subr.bf16.mxu1 %v3221_v29  ;;  %v3285_v21 = vld [vmem:[#allocation6 + $0x70] ss:$24 sps:$4 sm:$0xff]   ;;  %v3734_v23 = vpack.c.bf16 %v101_v18, %v99_v17  ;;  %v106_v25 = vld [vmem:[#allocation2 + $0x58] sm:$0xff]  ;;  %v3296_v27 = vld [vmem:[#allocation7 + $0x94] ss:$24 sps:$4 sm:$0xff]  }
  0x76   :  { %v104_v24 = vld [vmem:[#allocation2 + $0x48] sm:$0xff]  ;;  %v3293_v26 = vld [vmem:[#allocation6 + $0xa4] ss:$24 sps:$4 sm:$0xff]   ;;  %v3291_v29 = vld [vmem:[#allocation6 + $0xa0] ss:$24 sps:$4 sm:$0xff]  }
  0x77   :  { %766 = vmatpush1.bf16.msra.mxu0 %v3223_v30  ;;  %v3736_v28 = vpack.c.bf16 %v106_v25, %v104_v24  ;;  %v3294_v30 = vld [vmem:[#allocation7 + $0x90] ss:$24 sps:$4 sm:$0xff]   ;;  %v3324_v4 = vld [vmem:[#allocation7 + $0x180] ss:$24 sps:$4 sm:$0xff]  }
  0x78   :  { %879 = vmatpush1.bf16.msra.mxu1 %v3224_v31  ;;  %767 = vmatprep.subr.bf16.mxu0 %v3225_v32  ;;  %v103_v31 = vld [vmem:[#allocation2 + $0x40] sm:$0xff]  ;;  %v105_v32 = vld [vmem:[#allocation2 + $0x50] sm:$0xff] }
  0x79   :  { %880 = vmatprep.subr.bf16.mxu1 %v3227_v33  ;;  %v3299_v33 = vld [vmem:[#allocation6 + $0xd4] ss:$24 sps:$4 sm:$0xff]   ;;  %v3309_v49 = vld [vmem:[#allocation6 + $0x130] ss:$24 sps:$4 sm:$0xff]   ;;  %v115_v11 = vld [vmem:[#allocation2 + $0xa0] sm:$0xff] }
  0x7a   :  { %v109_v46 = vld [vmem:[#allocation2 + $0x70] sm:$0xff]  ;;  %v3336_v18 = vld [vmem:[#allocation7 + $0x1e0] ss:$24 sps:$4 sm:$0xff]  }
  0x7b   :  { %768 = vmatpush1.bf16.msra.mxu0 %v3229_v34  ;;  %v3302_v34 = vld [vmem:[#allocation7 + $0xc4] ss:$24 sps:$4 sm:$0xff]   ;;  %v3321_v3 = vld [vmem:[#allocation6 + $0x190] ss:$24 sps:$4 sm:$0xff]   ;;  %v3339_v24 = vld [vmem:[#allocation6 + $0x220] ss:$24 sps:$4 sm:$0xff]  }
  0x7c   :  { %881 = vmatpush1.bf16.msra.mxu1 %v3230_v35  ;;  %769 = vmatprep.subr.bf16.mxu0 %v3231_v36  ;;  %v3297_v35 = vld [vmem:[#allocation6 + $0xd0] ss:$24 sps:$4 sm:$0xff]   ;;  %v3300_v36 = vld [vmem:[#allocation7 + $0xc0] ss:$24 sps:$4 sm:$0xff]  }
  0x7d   :  { %882 = vmatprep.subr.bf16.mxu1 %v3233_v37  ;;  %v3742_v37 = vpack.c.bf16 %v105_v32, %v103_v31  ;;  %v3350_v31 = vld [vmem:[#allocation7 + $0x244] ss:$24 sps:$4 sm:$0xff]   ;;  %v3345_v32 = vld [vmem:[#allocation6 + $0x250] ss:$24 sps:$4 sm:$0xff]  }
  0x7f   :  { %770 = vmatpush1.bf16.msra.mxu0 %v3235_v38  ;;  %v108_v38 = vld [vmem:[#allocation2 + $0x68] sm:$0xff] }
  0x80   :  { %883 = vmatpush1.bf16.msra.mxu1 %v3236_v39  ;;  %771 = vmatprep.subr.bf16.mxu0 %v3237_v40  ;;  %v110_v39 = vld [vmem:[#allocation2 + $0x78] sm:$0xff] }
  0x81   :  { %884 = vmatprep.subr.bf16.mxu1 %v3239_v41  ;;  %v3305_v40 = vld [vmem:[#allocation6 + $0x104] ss:$24 sps:$4 sm:$0xff]   ;;  %v3308_v41 = vld [vmem:[#allocation7 + $0xf4] ss:$24 sps:$4 sm:$0xff]  }
  0x83   :  { %772 = vmatpush1.bf16.msra.mxu0 %v3241_v42  ;;  %v3303_v42 = vld [vmem:[#allocation6 + $0x100] ss:$24 sps:$4 sm:$0xff]  }
  0x84   :  { %885 = vmatpush1.bf16.msra.mxu1 %v3242_v43  ;;  %773 = vmatprep.subr.bf16.mxu0 %v3243_v44  ;;  %v3744_v43 = vpack.c.bf16 %v110_v39, %v108_v38  ;;  %v3306_v44 = vld [vmem:[#allocation7 + $0xf0] ss:$24 sps:$4 sm:$0xff]   ;;  %v3353_v38 = vld [vmem:[#allocation6 + $0x284] ss:$24 sps:$4 sm:$0xff]   ;;  %v3356_v39 = vld [vmem:[#allocation7 + $0x274] ss:$24 sps:$4 sm:$0xff]  }
  0x85   :  { %886 = vmatprep.subr.bf16.mxu1 %v3245_v45  ;;  %v107_v45 = vld [vmem:[#allocation2 + $0x60] sm:$0xff] }
  0x87   :  { %774 = vmatpush1.bf16.msra.mxu0 %v3247_v47  ;;  %v3311_v47 = vld [vmem:[#allocation6 + $0x134] ss:$24 sps:$4 sm:$0xff]  }
  0x88   :  { %887 = vmatpush1.bf16.msra.mxu1 %v3248_v48  ;;  %775 = vmatprep.subr.bf16.mxu0 %v3249_v50  ;;  %v3314_v48 = vld [vmem:[#allocation7 + $0x124] ss:$24 sps:$4 sm:$0xff]   ;;  %v3750_v50 = vpack.c.bf16 %v109_v46, %v107_v45  ;;  %v125_v45 = vld [vmem:[#allocation2 + $0xf0] sm:$0xff] }
  0x89   :  { %888 = vmatprep.subr.bf16.mxu1 %v3251_v52  ;;  %v112_v52 = vld [vmem:[#allocation2 + $0x88] sm:$0xff] }
  0x8a   :  { %v3359_v46 = vld [vmem:[#allocation6 + $0x2b4] ss:$24 sps:$4 sm:$0xff]  }
  0x8b   :  { %776 = vmatpush1.bf16.msra.mxu0 %v3253_v53  ;;  %v114_v53 = vld [vmem:[#allocation2 + $0x98] sm:$0xff] }
  0x8c   :  { %889 = vmatpush1.bf16.msra.mxu1 %v3254_v54  ;;  %777 = vmatprep.subr.bf16.mxu0 %v3255_v55  ;;  %v3312_v54 = vld [vmem:[#allocation7 + $0x120] ss:$24 sps:$4 sm:$0xff]   ;;  %v3317_v55 = vld [vmem:[#allocation6 + $0x164] ss:$24 sps:$4 sm:$0xff]  }
  0x8d   :  { %890 = vmatprep.subr.bf16.mxu1 %v3257_v56  ;;  %v3320_v56 = vld [vmem:[#allocation7 + $0x154] ss:$24 sps:$4 sm:$0xff]  }
  0x8f   :  { %778 = vmatpush1.bf16.msra.mxu0 %v3259_v57  ;;  %v3315_v57 = vld [vmem:[#allocation6 + $0x160] ss:$24 sps:$4 sm:$0xff]  }
  0x90   :  { %891 = vmatpush1.bf16.msra.mxu1 %v3260_v58  ;;  %779 = vmatprep.subr.bf16.mxu0 %v3261_v59  ;;  %v3318_v58 = vld [vmem:[#allocation7 + $0x150] ss:$24 sps:$4 sm:$0xff]   ;;  %v3752_v59 = vpack.c.bf16 %v114_v53, %v112_v52 }
  0x91   :  { %892 = vmatprep.subr.bf16.mxu1 %v3263_v60  ;;  %v111_v60 = vld [vmem:[#allocation2 + $0x80] sm:$0xff]  ;;  %v1427_v53 = vld [vmem:[#allocation4 + $0x8] sm:$0xff] }
  0x93   :  { %780 = vmatpush1.bf16.msra.mxu0 %v3265_v61  ;;  %v113_v61 = vld [vmem:[#allocation2 + $0x90] sm:$0xff] }
  0x94   :  { %893 = vmatpush1.bf16.msra.mxu1 %v3266_v62  ;;  %781 = vmatprep.subr.bf16.mxu0 %v3267_v63  ;;  %v3323_v62 = vld [vmem:[#allocation6 + $0x194] ss:$24 sps:$4 sm:$0xff]   ;;  %v3326_v63 = vld [vmem:[#allocation7 + $0x184] ss:$24 sps:$4 sm:$0xff]  }
  0x95   :  { %894 = vmatprep.subr.bf16.mxu1 %v3269_v0  ;;  %v3758_v0 = vpack.c.bf16 %v113_v61, %v111_v60  ;;  %v3366_v60 = vld [vmem:[#allocation7 + $0x2d0] ss:$24 sps:$4 sm:$0xff]   ;;  %v1426_v61 = vld [vmem:[#allocation4] sm:$0xff] }
  0x97   :  { %782 = vmatpush1.bf16.msra.mxu0 %v3271_v1  ;;  %v116_v1 = vld [vmem:[#allocation2 + $0xa8] sm:$0xff] }
  0x98   :  { %895 = vmatpush1.bf16.msra.mxu1 %v3272_v2  ;;  %977 = vmatprep.subr.bf16.mxu0 %v3275_v5  ;;  %v118_v2 = vld [vmem:[#allocation2 + $0xb8] sm:$0xff] }
  0x99   :  { %2082 = vmatprep.subr.bf16.mxu1 %v3278_v6  ;;  %v3329_v5 = vld [vmem:[#allocation6 + $0x1c4] ss:$24 sps:$4 sm:$0xff]   ;;  %v3332_v6 = vld [vmem:[#allocation7 + $0x1b4] ss:$24 sps:$4 sm:$0xff]   ;;  %v3760_v10 = vpack.c.bf16 %v118_v2, %v116_v1  ;;  %v3369_v2 = vld [vmem:[#allocation7 + $0x8] ss:$24 sps:$4 sm:$0xff]  }
  0x9a   :  { %784 = vmatmul.mubr.bf16.vlgmr.msra.gmra.mrb[0].mxu0 %v3726_v8  ;;  %v3374_v1 = vld [vmem:[#allocation7 + $0x14] ss:$24 sps:$4 sm:$0xff]  }
  0x9b   :  { %897 = vmatmul.mubr.bf16.vlgmr.msra.gmra.mrb[0].mxu1 %v3726_v8  ;;  %978 = vmatpush1.bf16.msra.mxu0 %v3273_v7  ;;  %v3327_v7 = vld [vmem:[#allocation6 + $0x1c0] ss:$24 sps:$4 sm:$0xff]  }
  0x9c   :  { %2083 = vmatpush1.bf16.msra.mxu1 %v3276_v9  ;;  %979 = vmatprep.subr.bf16.mxu0 %v3281_v12  ;;  %v3330_v9 = vld [vmem:[#allocation7 + $0x1b0] ss:$24 sps:$4 sm:$0xff]  }
  0x9d   :  { %2084 = vmatprep.subr.bf16.mxu1 %v3284_v13  ;;  %793 = vmatprep.mubr.bf16.mxu0 %v3728_v15  ;;  %v117_v12 = vld [vmem:[#allocation2 + $0xb0] sm:$0xff] }
  0x9e   :  { %906 = vmatprep.mubr.bf16.mxu1 %v3728_v15  ;;  %v3335_v13 = vld [vmem:[#allocation6 + $0x1f4] ss:$24 sps:$4 sm:$0xff]   ;;  %v3766_v17 = vpack.c.bf16 %v117_v12, %v115_v11  ;;  %v3375_v11 = vld [vmem:[#allocation7 + $0x38] ss:$24 sps:$4 sm:$0xff]  }
  0x9f   :  { %980 = vmatpush1.bf16.msra.mxu0 %v3279_v14  ;;  %v3338_v14 = vld [vmem:[#allocation7 + $0x1e4] ss:$24 sps:$4 sm:$0xff]   ;;  %v3378_v12 = vld [vmem:[#allocation7 + $0x40] ss:$24 sps:$4 sm:$0xff]  }
  0xa0   :  { %2085 = vmatpush1.bf16.msra.mxu1 %v3282_v16  ;;  %981 = vmatprep.subr.bf16.mxu0 %v3287_v19  ;;  %v3333_v16 = vld [vmem:[#allocation6 + $0x1f0] ss:$24 sps:$4 sm:$0xff]  }
  0xa1   :  { %2086 = vmatprep.subr.bf16.mxu1 %v3290_v20  ;;  %v120_v19 = vld [vmem:[#allocation2 + $0xc8] sm:$0xff]  ;;  %v122_v20 = vld [vmem:[#allocation2 + $0xd8] sm:$0xff] }
  0xa2   :  { %794 = vmatmul.mubr.bf16.gmra.mrb[4].mxu0 %v3734_v23  ;;  %v3768_v25 = vpack.c.bf16 %v122_v20, %v120_v19  ;;  %v1435_v20 = vld [vmem:[#allocation4 + $0x48] sm:$0xff] }
  0xa3   :  { %907 = vmatmul.mubr.bf16.gmra.mrb[4].mxu1 %v3734_v23  ;;  %982 = vmatpush1.bf16.msra.mxu0 %v3285_v21  ;;  %v3341_v21 = vld [vmem:[#allocation6 + $0x224] ss:$24 sps:$4 sm:$0xff]  }
  0xa4   :  { %2087 = vmatpush1.bf16.msra.mxu1 %v3288_v22  ;;  %983 = vmatprep.subr.bf16.mxu0 %v3293_v26  ;;  %v3344_v22 = vld [vmem:[#allocation7 + $0x214] ss:$24 sps:$4 sm:$0xff]   ;;  %v3342_v26 = vld [vmem:[#allocation7 + $0x210] ss:$24 sps:$4 sm:$0xff]  }
  0xa5   :  { %2088 = vmatprep.subr.bf16.mxu1 %v3296_v27  ;;  %803 = vmatprep.mubr.bf16.mxu0 %v3736_v28  ;;  %v119_v27 = vld [vmem:[#allocation2 + $0xc0] sm:$0xff] }
  0xa6   :  { %916 = vmatprep.mubr.bf16.mxu1 %v3736_v28 }
  0xa7   :  { %984 = vmatpush1.bf16.msra.mxu0 %v3291_v29  ;;  %v121_v29 = vld [vmem:[#allocation2 + $0xd0] sm:$0xff] }
  0xa8   :  { %2089 = vmatpush1.bf16.msra.mxu1 %v3294_v30  ;;  %985 = vmatprep.subr.bf16.mxu0 %v3299_v33  ;;  %v3347_v30 = vld [vmem:[#allocation6 + $0x254] ss:$24 sps:$4 sm:$0xff]   ;;  %v3348_v33 = vld [vmem:[#allocation7 + $0x240] ss:$24 sps:$4 sm:$0xff]  }
  0xa9   :  { %2090 = vmatprep.subr.bf16.mxu1 %v3302_v34  ;;  %v3774_v34 = vpack.c.bf16 %v121_v29, %v119_v27  ;;  %v3387_v27 = vld [vmem:[#allocation7 + $0x98] ss:$24 sps:$4 sm:$0xff]  }
  0xaa   :  { %804 = vmatmul.mubr.bf16.gmra.mrb[8].mxu0 %v3742_v37  ;;  %v3390_v29 = vld [vmem:[#allocation7 + $0xa0] ss:$24 sps:$4 sm:$0xff]  }
  0xab   :  { %917 = vmatmul.mubr.bf16.gmra.mrb[8].mxu1 %v3742_v37  ;;  %986 = vmatpush1.bf16.msra.mxu0 %v3297_v35  ;;  %v124_v35 = vld [vmem:[#allocation2 + $0xe8] sm:$0xff] }
  0xac   :  { %2091 = vmatpush1.bf16.msra.mxu1 %v3300_v36  ;;  %987 = vmatprep.subr.bf16.mxu0 %v3305_v40  ;;  %v126_v36 = vld [vmem:[#allocation2 + $0xf8] sm:$0xff] }
  0xad   :  { %2092 = vmatprep.subr.bf16.mxu1 %v3308_v41  ;;  %813 = vmatprep.mubr.bf16.mxu0 %v3744_v43  ;;  %v3776_v40 = vpack.c.bf16 %v126_v36, %v124_v35  ;;  %v3351_v41 = vld [vmem:[#allocation6 + $0x280] ss:$24 sps:$4 sm:$0xff]  }
  0xae   :  { %926 = vmatprep.mubr.bf16.mxu1 %v3744_v43  ;;  %v3393_v35 = vld [vmem:[#allocation7 + $0xc8] ss:$24 sps:$4 sm:$0xff]  }
  0xaf   :  { %988 = vmatpush1.bf16.msra.mxu0 %v3303_v42  ;;  %v3354_v42 = vld [vmem:[#allocation7 + $0x270] ss:$24 sps:$4 sm:$0xff]  }
  0xb0   :  { %2093 = vmatpush1.bf16.msra.mxu1 %v3306_v44  ;;  %989 = vmatprep.subr.bf16.mxu0 %v3311_v47  ;;  %v123_v44 = vld [vmem:[#allocation2 + $0xe0] sm:$0xff] }
  0xb1   :  { %2094 = vmatprep.subr.bf16.mxu1 %v3314_v48  ;;  %v3362_v47 = vld [vmem:[#allocation7 + $0x2a4] ss:$24 sps:$4 sm:$0xff]   ;;  %v3357_v48 = vld [vmem:[#allocation6 + $0x2b0] ss:$24 sps:$4 sm:$0xff]   ;;  %v3782_v52 = vpack.c.bf16 %v125_v45, %v123_v44 }
  0xb2   :  { %814 = vmatmul.mubr.bf16.gmra.mrb[12].mxu0 %v3750_v50  ;;  %v3399_v44 = vld [vmem:[#allocation7 + $0xf8] ss:$24 sps:$4 sm:$0xff]  }
  0xb3   :  { %927 = vmatmul.mubr.bf16.gmra.mrb[12].mxu1 %v3750_v50  ;;  %990 = vmatpush1.bf16.msra.mxu0 %v3309_v49  ;;  %v3360_v49 = vld [vmem:[#allocation7 + $0x2a0] ss:$24 sps:$4 sm:$0xff]  }
  0xb4   :  { %2095 = vmatpush1.bf16.msra.mxu1 %v3312_v54  ;;  %991 = vmatprep.subr.bf16.mxu0 %v3317_v55  ;;  %v1429_v54 = vld [vmem:[#allocation4 + $0x18] sm:$0xff] }
  0xb5   :  { %2096 = vmatprep.subr.bf16.mxu1 %v3320_v56  ;;  %823 = vmatprep.mubr.bf16.mxu0 %v3752_v59  ;;  %v3365_v55 = vld [vmem:[#allocation6 + $0x2e4] ss:$24 sps:$4 sm:$0xff]   ;;  %v3368_v56 = vld [vmem:[#allocation7 + $0x2d4] ss:$24 sps:$4 sm:$0xff]  }
  0xb6   :  { %936 = vmatprep.mubr.bf16.mxu1 %v3752_v59 }
  0xb7   :  { %992 = vmatpush1.bf16.msra.mxu0 %v3315_v57  ;;  %v3363_v57 = vld [vmem:[#allocation6 + $0x2e0] ss:$24 sps:$4 sm:$0xff]  }
  0xb8   :  { %2097 = vmatpush1.bf16.msra.mxu1 %v3318_v58  ;;  %993 = vmatprep.subr.bf16.mxu0 %v3323_v62  ;;  %v3784_v58 = vpack.c.bf16 %v1429_v54, %v1427_v53  ;;  %v1428_v62 = vld [vmem:[#allocation4 + $0x10] sm:$0xff]  ;;  %v1443_v54 = vld [vmem:[#allocation4 + $0x88] sm:$0xff] }
  0xb9   :  { %2098 = vmatprep.subr.bf16.mxu1 %v3326_v63  ;;  %v3371_v63 = vld [vmem:[#allocation7 + $0xc] ss:$24 sps:$4 sm:$0xff]  }
  0xba   :  { %824 = vmatmul.mubr.bf16.gmra.mrb[16].mxu0 %v3758_v0 }
  0xbb   :  { %937 = vmatmul.mubr.bf16.gmra.mrb[16].mxu1 %v3758_v0  ;;  %994 = vmatpush1.bf16.msra.mxu0 %v3321_v3  ;;  %v3790_v3 = vpack.c.bf16 %v1428_v62, %v1426_v61  ;;  %v3414_v62 = vld [vmem:[#allocation7 + $0x160] ss:$24 sps:$4 sm:$0xff]  }
  0xbc   :  { %2099 = vmatpush1.bf16.msra.mxu1 %v3324_v4  ;;  %995 = vmatprep.subr.bf16.mxu0 %v3329_v5  ;;  %v1431_v4 = vld [vmem:[#allocation4 + $0x28] sm:$0xff]  ;;  %v1433_v5 = vld [vmem:[#allocation4 + $0x38] sm:$0xff] }
  0xbd   :  { %2100 = vmatprep.subr.bf16.mxu1 %v3332_v6  ;;  %833 = vmatprep.mubr.bf16.mxu0 %v3760_v10  ;;  %v3372_v6 = vld [vmem:[#allocation7 + $0x10] ss:$24 sps:$4 sm:$0xff]  }
  0xbe   :  { %946 = vmatprep.mubr.bf16.mxu1 %v3760_v10 }
  0xbf   :  { %996 = vmatpush1.bf16.msra.mxu0 %v3327_v7  ;;  %v3377_v7 = vld [vmem:[#allocation7 + $0x3c] ss:$24 sps:$4 sm:$0xff]  }
  0xc0   :  { %2101 = vmatpush1.bf16.msra.mxu1 %v3330_v9  ;;  %997 = vmatprep.subr.bf16.mxu0 %v3335_v13  ;;  %v3380_v9 = vld [vmem:[#allocation7 + $0x44] ss:$24 sps:$4 sm:$0xff]   ;;  %v3792_v13 = vpack.c.bf16 %v1433_v5, %v1431_v4  ;;  %v3422_v4 = vld [vmem:[#allocation7 + $0x194] ss:$24 sps:$4 sm:$0xff]  }
  0xc1   :  { %2102 = vmatprep.subr.bf16.mxu1 %v3338_v14  ;;  %v1432_v14 = vld [vmem:[#allocation4 + $0x30] sm:$0xff] }
  0xc2   :  { %834 = vmatmul.mubr.bf16.gmra.mrb[20].mxu0 %v3766_v17 }
  0xc3   :  { %947 = vmatmul.mubr.bf16.gmra.mrb[20].mxu1 %v3766_v17  ;;  %998 = vmatpush1.bf16.msra.mxu0 %v3333_v16  ;;  %v3383_v16 = vld [vmem:[#allocation7 + $0x6c] ss:$24 sps:$4 sm:$0xff]  }
  0xc4   :  { %2103 = vmatpush1.bf16.msra.mxu1 %v3336_v18  ;;  %999 = vmatprep.subr.bf16.mxu0 %v3341_v21  ;;  %v3386_v18 = vld [vmem:[#allocation7 + $0x74] ss:$24 sps:$4 sm:$0xff]   ;;  %v1437_v21 = vld [vmem:[#allocation4 + $0x58] sm:$0xff] }
  0xc5   :  { %2104 = vmatprep.subr.bf16.mxu1 %v3344_v22  ;;  %843 = vmatprep.mubr.bf16.mxu0 %v3768_v25  ;;  %v3384_v22 = vld [vmem:[#allocation7 + $0x70] ss:$24 sps:$4 sm:$0xff]  }
  0xc6   :  { %956 = vmatprep.mubr.bf16.mxu1 %v3768_v25 }
  0xc7   :  { %1000 = vmatpush1.bf16.msra.mxu0 %v3339_v24  ;;  %v3389_v24 = vld [vmem:[#allocation7 + $0x9c] ss:$24 sps:$4 sm:$0xff]  }
  0xc8   :  { %2105 = vmatpush1.bf16.msra.mxu1 %v3342_v26  ;;  %1001 = vmatprep.subr.bf16.mxu0 %v3347_v30  ;;  %v3392_v26 = vld [vmem:[#allocation7 + $0xa4] ss:$24 sps:$4 sm:$0xff]   ;;  %v3800_v30 = vpack.c.bf16 %v1437_v21, %v1435_v20  ;;  %v3434_v21 = vld [vmem:[#allocation7 + $0x1f4] ss:$24 sps:$4 sm:$0xff]  }
  0xc9   :  { %2106 = vmatprep.subr.bf16.mxu1 %v3350_v31  ;;  %v1436_v31 = vld [vmem:[#allocation4 + $0x50] sm:$0xff]  ;;  %v3431_v20 = vld [vmem:[#allocation7 + $0x1ec] ss:$24 sps:$4 sm:$0xff]  }
  0xca   :  { %844 = vmatmul.mubr.bf16.gmra.mrb[24].mxu0 %v3774_v34 }
  0xcb   :  { %957 = vmatmul.mubr.bf16.gmra.mrb[24].mxu1 %v3774_v34  ;;  %1002 = vmatpush1.bf16.msra.mxu0 %v3345_v32  ;;  %v3395_v32 = vld [vmem:[#allocation7 + $0xcc] ss:$24 sps:$4 sm:$0xff]  }
  0xcc   :  { %2107 = vmatpush1.bf16.msra.mxu1 %v3348_v33  ;;  %1003 = vmatprep.subr.bf16.mxu0 %v3353_v38  ;;  %v3398_v33 = vld [vmem:[#allocation7 + $0xd4] ss:$24 sps:$4 sm:$0xff]   ;;  %v3396_v38 = vld [vmem:[#allocation7 + $0xd0] ss:$24 sps:$4 sm:$0xff]  }
  0xcd   :  { %2108 = vmatprep.subr.bf16.mxu1 %v3356_v39  ;;  %853 = vmatprep.mubr.bf16.mxu0 %v3776_v40  ;;  %v1439_v39 = vld [vmem:[#allocation4 + $0x68] sm:$0xff] }
  0xce   :  { %966 = vmatprep.mubr.bf16.mxu1 %v3776_v40 }
  0xcf   :  { %1004 = vmatpush1.bf16.msra.mxu0 %v3351_v41  ;;  %v3401_v41 = vld [vmem:[#allocation7 + $0xfc] ss:$24 sps:$4 sm:$0xff]  }
  0xd0   :  { %2109 = vmatpush1.bf16.msra.mxu1 %v3354_v42  ;;  %1005 = vmatprep.subr.bf16.mxu0 %v3359_v46  ;;  %v3404_v42 = vld [vmem:[#allocation7 + $0x104] ss:$24 sps:$4 sm:$0xff]  }
  0xd1   :  { %2110 = vmatprep.subr.bf16.mxu1 %v3362_v47  ;;  %v1438_v46 = vld [vmem:[#allocation4 + $0x60] sm:$0xff]  ;;  %v1440_v47 = vld [vmem:[#allocation4 + $0x70] sm:$0xff] }
  0xd2   :  { %854 = vmatmul.mubr.bf16.gmra.mrb[28].mxu0 %v3782_v52  ;;  %v3814_v53 = vpack.c.bf16 %v1440_v47, %v1438_v46  ;;  %v3450_v47 = vld [vmem:[#allocation7 + $0x280] ss:$24 sps:$4 sm:$0xff]  }
  0xd3   :  { %967 = vmatmul.mubr.bf16.gmra.mrb[28].mxu1 %v3782_v52  ;;  %1006 = vmatpush1.bf16.msra.mxu0 %v3357_v48  ;;  %v3407_v48 = vld [vmem:[#allocation7 + $0x12c] ss:$24 sps:$4 sm:$0xff]  }
  0xd4   :  { %2111 = vmatpush1.bf16.msra.mxu1 %v3360_v49  ;;  %1007 = vmatprep.subr.bf16.mxu0 %v3365_v55  ;;  %v3410_v49 = vld [vmem:[#allocation7 + $0x134] ss:$24 sps:$4 sm:$0xff]   ;;  %v1445_v55 = vld [vmem:[#allocation4 + $0x98] sm:$0xff] }
  0xd5   :  { %2112 = vmatprep.subr.bf16.mxu1 %v3368_v56  ;;  %1009 = vmatprep.mubr.bf16.mxu0 %v3722_v51  ;;  %v1430_v51 = vld [vmem:[#allocation4 + $0x20] sm:$0xff]  ;;  %v3408_v56 = vld [vmem:[#allocation7 + $0x130] ss:$24 sps:$4 sm:$0xff]   ;;  %v3816_v61 = vpack.c.bf16 %v1445_v55, %v1443_v54  ;;  %v3458_v55 = vld [vmem:[#allocation7 + $0x2b4] ss:$24 sps:$4 sm:$0xff]  }
  0xd6   :  { %2114 = vmatprep.mubr.bf16.mxu1 %v3784_v58  ;;  %v3798_v19 = vpack.c.bf16 %v1432_v14, %v1430_v51  ;;  %v3426_v14 = vld [vmem:[#allocation7 + $0x1c0] ss:$24 sps:$4 sm:$0xff]   ;;  %v3455_v54 = vld [vmem:[#allocation7 + $0x2ac] ss:$24 sps:$4 sm:$0xff]  }
  0xd7   :  { %1008 = vmatpush1.bf16.msra.mxu0 %v3363_v57  ;;  %v3413_v57 = vld [vmem:[#allocation7 + $0x15c] ss:$24 sps:$4 sm:$0xff]  }
  0xd8   :  { %2113 = vmatpush1.bf16.msra.mxu1 %v3366_v60  ;;  %2195 = vmatprep.subr.bf16.mxu0 %v3371_v63  ;;  %v3416_v60 = vld [vmem:[#allocation7 + $0x164] ss:$24 sps:$4 sm:$0xff]  }
  0xd9   :  { %2308 = vmatprep.subr.bf16.mxu1 %v3374_v1  ;;  %v1442_v63 = vld [vmem:[#allocation4 + $0x80] sm:$0xff]  ;;  %v1444_v1 = vld [vmem:[#allocation4 + $0x90] sm:$0xff] }
  0xda   :  { %1010 = vmatmul.mubr.bf16.vlgmr.msra.gmra.mrb[32].mxu0 %v3726_v8  ;;  %v3381_v8 = vld [vmem:[#allocation7 + $0x68] ss:$24 sps:$4 sm:$0xff]   ;;  %v3822_v5 = vpack.c.bf16 %v1444_v1, %v1442_v63 }
  0xdb   :  { %2115 = vmatmul.mubr.bf16.vlgmr.msra.gmra.mrb[32].mxu1 %v3790_v3  ;;  %2196 = vmatpush1.bf16.msra.mxu0 %v3369_v2  ;;  %v3419_v2 = vld [vmem:[#allocation7 + $0x18c] ss:$24 sps:$4 sm:$0xff]  }
  0xdc   :  { %2309 = vmatpush1.bf16.msra.mxu1 %v3372_v6  ;;  %2197 = vmatprep.subr.bf16.mxu0 %v3377_v7  ;;  %v1447_v6 = vld [vmem:[#allocation4 + $0xa8] sm:$0xff] }
  0xdd   :  { %2310 = vmatprep.subr.bf16.mxu1 %v3380_v9  ;;  %1019 = vmatprep.mubr.bf16.mxu0 %v3728_v15  ;;  %v1434_v15 = vld [vmem:[#allocation4 + $0x40] sm:$0xff]  ;;  %v3420_v9 = vld [vmem:[#allocation7 + $0x190] ss:$24 sps:$4 sm:$0xff]  }
  0xde   :  { %2124 = vmatprep.mubr.bf16.mxu1 %v3792_v13  ;;  %v3806_v36 = vpack.c.bf16 %v1436_v31, %v1434_v15  ;;  %v3417_v7 = vld [vmem:[#allocation7 + $0x188] ss:$24 sps:$4 sm:$0xff]  }
  0xdf   :  { %2198 = vmatpush1.bf16.msra.mxu0 %v3375_v11  ;;  %v3425_v11 = vld [vmem:[#allocation7 + $0x1bc] ss:$24 sps:$4 sm:$0xff]   ;;  %v3438_v31 = vld [vmem:[#allocation7 + $0x220] ss:$24 sps:$4 sm:$0xff]  }
  0xe0   :  { %2311 = vmatpush1.bf16.msra.mxu1 %v3378_v12  ;;  %2199 = vmatprep.subr.bf16.mxu0 %v3383_v16  ;;  %v3428_v12 = vld [vmem:[#allocation7 + $0x1c4] ss:$24 sps:$4 sm:$0xff]  }
  0xe1   :  { %2312 = vmatprep.subr.bf16.mxu1 %v3386_v18  ;;  %v1446_v16 = vld [vmem:[#allocation4 + $0xa0] sm:$0xff]  ;;  %v1448_v18 = vld [vmem:[#allocation4 + $0xb0] sm:$0xff] }
  0xe2   :  { %1020 = vmatmul.mubr.bf16.gmra.mrb[36].mxu0 %v3734_v23  ;;  %v1441_v23 = vld [vmem:[#allocation4 + $0x78] sm:$0xff] }
  0xe3   :  { %2125 = vmatmul.mubr.bf16.gmra.mrb[36].mxu1 %v3798_v19  ;;  %2200 = vmatpush1.bf16.msra.mxu0 %v3381_v8  ;;  %v3808_v45 = vpack.c.bf16 %v1441_v23, %v1439_v39  ;;  %v3830_v8 = vpack.c.bf16 %v1448_v18, %v1446_v16  ;;  %v1455_v23 = vld [vmem:[#allocation4 + $0xe8] sm:$0xff] }
  0xe4   :  { %2313 = vmatpush1.bf16.msra.mxu1 %v3384_v22  ;;  %2201 = vmatprep.subr.bf16.mxu0 %v3389_v24  ;;  %v1451_v22 = vld [vmem:[#allocation4 + $0xc8] sm:$0xff] }
  0xe5   :  { %2314 = vmatprep.subr.bf16.mxu1 %v3392_v26  ;;  %1029 = vmatprep.mubr.bf16.mxu0 %v3736_v28  ;;  %v3402_v28 = vld [vmem:[#allocation7 + $0x100] ss:$24 sps:$4 sm:$0xff]   ;;  %v3432_v26 = vld [vmem:[#allocation7 + $0x1f0] ss:$24 sps:$4 sm:$0xff]  }
  0xe6   :  { %2134 = vmatprep.mubr.bf16.mxu1 %v3800_v30  ;;  %v3429_v24 = vld [vmem:[#allocation7 + $0x1e8] ss:$24 sps:$4 sm:$0xff]  }
  0xe7   :  { %2202 = vmatpush1.bf16.msra.mxu0 %v3387_v27  ;;  %v3437_v27 = vld [vmem:[#allocation7 + $0x21c] ss:$24 sps:$4 sm:$0xff]  }
  0xe8   :  { %2315 = vmatpush1.bf16.msra.mxu1 %v3390_v29  ;;  %2203 = vmatprep.subr.bf16.mxu0 %v3395_v32  ;;  %v3440_v29 = vld [vmem:[#allocation7 + $0x224] ss:$24 sps:$4 sm:$0xff]  }
  0xe9   :  { %2316 = vmatprep.subr.bf16.mxu1 %v3398_v33  ;;  %v1450_v32 = vld [vmem:[#allocation4 + $0xc0] sm:$0xff]  ;;  %v1452_v33 = vld [vmem:[#allocation4 + $0xd0] sm:$0xff] }
  0xea   :  { %1030 = vmatmul.mubr.bf16.gmra.mrb[40].mxu0 %v3742_v37  ;;  %v3405_v37 = vld [vmem:[#allocation7 + $0x128] ss:$24 sps:$4 sm:$0xff]   ;;  %v3838_v39 = vpack.c.bf16 %v1452_v33, %v1450_v32 }
  0xeb   :  { %2135 = vmatmul.mubr.bf16.gmra.mrb[40].mxu1 %v3806_v36  ;;  %2204 = vmatpush1.bf16.msra.mxu0 %v3393_v35  ;;  %v3443_v35 = vld [vmem:[#allocation7 + $0x24c] ss:$24 sps:$4 sm:$0xff]  }
  0xec   :  { %2317 = vmatpush1.bf16.msra.mxu1 %v3396_v38  ;;  %2205 = vmatprep.subr.bf16.mxu0 %v3401_v41  ;;  %v3446_v38 = vld [vmem:[#allocation7 + $0x254] ss:$24 sps:$4 sm:$0xff]   ;;  %v3441_v41 = vld [vmem:[#allocation7 + $0x248] ss:$24 sps:$4 sm:$0xff]  }
  0xed   :  { %2318 = vmatprep.subr.bf16.mxu1 %v3404_v42  ;;  %1039 = vmatprep.mubr.bf16.mxu0 %v3744_v43  ;;  %v3411_v43 = vld [vmem:[#allocation7 + $0x158] ss:$24 sps:$4 sm:$0xff]  }
  0xee   :  { %2144 = vmatprep.mubr.bf16.mxu1 %v3808_v45  ;;  %v3444_v42 = vld [vmem:[#allocation7 + $0x250] ss:$24 sps:$4 sm:$0xff]  }
  0xef   :  { %2206 = vmatpush1.bf16.msra.mxu0 %v3399_v44  ;;  %v3449_v44 = vld [vmem:[#allocation7 + $0x27c] ss:$24 sps:$4 sm:$0xff]  }
  0xf0   :  { %2319 = vmatpush1.bf16.msra.mxu1 %v3402_v28  ;;  %2207 = vmatprep.subr.bf16.mxu0 %v3407_v48  ;;  %v3452_v28 = vld [vmem:[#allocation7 + $0x284] ss:$24 sps:$4 sm:$0xff]  }
  0xf1   :  { %2320 = vmatprep.subr.bf16.mxu1 %v3410_v49  ;;  %v1454_v48 = vld [vmem:[#allocation4 + $0xe0] sm:$0xff]  ;;  %v1456_v49 = vld [vmem:[#allocation4 + $0xf0] sm:$0xff] }
  0xf2   :  { %1040 = vmatmul.mubr.bf16.gmra.mrb[44].mxu0 %v3750_v50  ;;  %v1449_v50 = vld [vmem:[#allocation4 + $0xb8] sm:$0xff] }
  0xf3   :  { %2145 = vmatmul.mubr.bf16.gmra.mrb[44].mxu1 %v3814_v53  ;;  %2208 = vmatpush1.bf16.msra.mxu0 %v3405_v37  ;;  %v3824_v51 = vpack.c.bf16 %v1449_v50, %v1447_v6  ;;  %v1472_v37 = vpack.c.bf16 %v1456_v49, %v1454_v48 }
  0xf4   :  { %2321 = vmatpush1.bf16.msra.mxu1 %v3408_v56  ;;  %2209 = vmatprep.subr.bf16.mxu0 %v3413_v57  ;;  %v3456_v56 = vld [vmem:[#allocation7 + $0x2b0] ss:$24 sps:$4 sm:$0xff]   ;;  %v3461_v57 = vld [vmem:[#allocation7 + $0x2dc] ss:$24 sps:$4 sm:$0xff]  }
  0xf5   :  { %2322 = vmatprep.subr.bf16.mxu1 %v3416_v60  ;;  %1049 = vmatprep.mubr.bf16.mxu0 %v3752_v59  ;;  %v3423_v59 = vld [vmem:[#allocation7 + $0x1b8] ss:$24 sps:$4 sm:$0xff]   ;;  %v3464_v60 = vld [vmem:[#allocation7 + $0x2e4] ss:$24 sps:$4 sm:$0xff]  }
  0xf6   :  { %2154 = vmatprep.mubr.bf16.mxu1 %v3816_v61 }
  0xf7   :  { %2210 = vmatpush1.bf16.msra.mxu0 %v3411_v43  ;;  %v3459_v43 = vld [vmem:[#allocation7 + $0x2d8] ss:$24 sps:$4 sm:$0xff]  }
  0xf8   :  { %2323 = vmatpush1.bf16.msra.mxu1 %v3414_v62  ;;  %2211 = vmatprep.subr.bf16.mxu0 %v3419_v2  ;;  %v3462_v62 = vld [vmem:[#allocation7 + $0x2e0] ss:$24 sps:$4 sm:$0xff]  }
  0xf9   :  { %2324 = vmatprep.subr.bf16.mxu1 %v3422_v4 }
  0xfa   :  { %1050 = vmatmul.mubr.bf16.gmra.mrb[48].mxu0 %v3758_v0  ;;  %v1453_v0 = vld [vmem:[#allocation4 + $0xd8] sm:$0xff] }
  0xfb   :  { %2155 = vmatmul.mubr.bf16.gmra.mrb[48].mxu1 %v3822_v5  ;;  %2212 = vmatpush1.bf16.msra.mxu0 %v3417_v7  ;;  %v3832_v15 = vpack.c.bf16 %v1453_v0, %v1451_v22 }
  0xfc   :  { %2325 = vmatpush1.bf16.msra.mxu1 %v3420_v9  ;;  %2213 = vmatprep.subr.bf16.mxu0 %v3425_v11 }
  0xfd   :  { %2326 = vmatprep.subr.bf16.mxu1 %v3428_v12  ;;  %1059 = vmatprep.mubr.bf16.mxu0 %v3760_v10  ;;  %v3435_v10 = vld [vmem:[#allocation7 + $0x218] ss:$24 sps:$4 sm:$0xff]  }
  0xfe   :  { %2164 = vmatprep.mubr.bf16.mxu1 %v3824_v51 }
  0xff   :  { %2214 = vmatpush1.bf16.msra.mxu0 %v3423_v59 }
 0x100   :  { %2327 = vmatpush1.bf16.msra.mxu1 %v3426_v14  ;;  %2215 = vmatprep.subr.bf16.mxu0 %v3431_v20 }
 0x101   :  { %2328 = vmatprep.subr.bf16.mxu1 %v3434_v21 }
 0x102   :  { %1060 = vmatmul.mubr.bf16.gmra.mrb[52].mxu0 %v3766_v17  ;;  %v1457_v17 = vld [vmem:[#allocation4 + $0xf8] sm:$0xff] }
 0x103   :  { %2165 = vmatmul.mubr.bf16.gmra.mrb[52].mxu1 %v3830_v8  ;;  %2216 = vmatpush1.bf16.msra.mxu0 %v3429_v24  ;;  %v3840_v46 = vpack.c.bf16 %v1457_v17, %v1455_v23 }
 0x104   :  { %2329 = vmatpush1.bf16.msra.mxu1 %v3432_v26  ;;  %2217 = vmatprep.subr.bf16.mxu0 %v3437_v27 }
 0x105   :  { %2330 = vmatprep.subr.bf16.mxu1 %v3440_v29  ;;  %1069 = vmatprep.mubr.bf16.mxu0 %v3768_v25  ;;  %v3447_v25 = vld [vmem:[#allocation7 + $0x278] ss:$24 sps:$4 sm:$0xff]  }
 0x106   :  { %2174 = vmatprep.mubr.bf16.mxu1 %v3832_v15 }
 0x107   :  { %2218 = vmatpush1.bf16.msra.mxu0 %v3435_v10 }
 0x108   :  { %2331 = vmatpush1.bf16.msra.mxu1 %v3438_v31  ;;  %2219 = vmatprep.subr.bf16.mxu0 %v3443_v35 }
 0x109   :  { %2332 = vmatprep.subr.bf16.mxu1 %v3446_v38 }
 0x10a   :  { %1070 = vmatmul.mubr.bf16.gmra.mrb[56].mxu0 %v3774_v34  ;;  %v3453_v34 = vld [vmem:[#allocation7 + $0x2a8] ss:$24 sps:$4 sm:$0xff]  }
 0x10b   :  { %2175 = vmatmul.mubr.bf16.gmra.mrb[56].mxu1 %v3838_v39  ;;  %2220 = vmatpush1.bf16.msra.mxu0 %v3441_v41 }
 0x10c   :  { %2333 = vmatpush1.bf16.msra.mxu1 %v3444_v42  ;;  %2221 = vmatprep.subr.bf16.mxu0 %v3449_v44 }
 0x10d   :  { %2334 = vmatprep.subr.bf16.mxu1 %v3452_v28  ;;  %1079 = vmatprep.mubr.bf16.mxu0 %v3776_v40  ;;  %v241_v40 = vlaneseq }
 0x10e   :  { %2184 = vmatprep.mubr.bf16.mxu1 %v3840_v46 }
 0x10f   :  { %2222 = vmatpush1.bf16.msra.mxu0 %v3447_v25 }
 0x110   :  { %2335 = vmatpush1.bf16.msra.mxu1 %v3450_v47  ;;  %2223 = vmatprep.subr.bf16.mxu0 %v3455_v54 }
 0x111   :  { %2336 = vmatprep.subr.bf16.mxu1 %v3458_v55 }
 0x112   :  { %1080 = vmatmul.mubr.bf16.gmra.mrb[60].mxu0 %v3782_v52  ;;  %v3857_v52 = vshrl.u32 %v241_v40, 7 }
 0x113   :  { %2185 = vmatmul.mubr.bf16.gmra.mrb[60].mxu1 %v1472_v37  ;;  %2224 = vmatpush1.bf16.msra.mxu0 %v3453_v34 }
 0x114   :  { %2337 = vmatpush1.bf16.msra.mxu1 %v3456_v56  ;;  %2225 = vmatprep.subr.bf16.mxu0 %v3461_v57 }
 0x115   :  { %2338 = vmatprep.subr.bf16.mxu1 %v3464_v60  ;;  %2227 = vmatprep.mubr.bf16.mxu0 %v3784_v58 }
 0x116   :  { %2340 = vmatprep.mubr.bf16.mxu1 %v3784_v58  ;;  %v259_v58 = vsub.s32 4, %v3857_v52 }
 0x117   :  { %2226 = vmatpush1.bf16.msra.mxu0 %v3459_v43 }
 0x118   :  { %2339 = vmatpush1.bf16.msra.mxu1 %v3462_v62 }
 0x11a   :  { %2228 = vmatmul.mubr.bf16.vlgmr.msra.gmra.mrb[64].mxu0 %v3790_v3 }
 0x11b   :  { %2341 = vmatmul.mubr.bf16.vlgmr.msra.gmra.mrb[64].mxu1 %v3790_v3  ;;  %2237 = vmatprep.mubr.bf16.mxu0 %v3792_v13  ;;  %v239_v3 = vld [vmem:[%s4420_s4] sm:$0x3f] }
 0x11c   :  { %2350 = vmatprep.mubr.bf16.mxu1 %v3792_v13  ;;  %v263_v13 = vsub.s32 5, %v3857_v52 }
 0x122   :  { %2238 = vmatmul.mubr.bf16.gmra.mrb[68].mxu0 %v3798_v19 }
 0x123   :  { %2351 = vmatmul.mubr.bf16.gmra.mrb[68].mxu1 %v3798_v19  ;;  %2247 = vmatprep.mubr.bf16.mxu0 %v3800_v30  ;;  %v3868_v19 = vrot.slane %v239_v3, %v259_v58 }
 0x124   :  { %2360 = vmatprep.mubr.bf16.mxu1 %v3800_v30  ;;  %v3870_v30 = vrot.slane %v239_v3, %v263_v13 }
 0x12a   :  { %2248 = vmatmul.mubr.bf16.gmra.mrb[72].mxu0 %v3806_v36 }
 0x12b   :  { %2361 = vmatmul.mubr.bf16.gmra.mrb[72].mxu1 %v3806_v36  ;;  %2257 = vmatprep.mubr.bf16.mxu0 %v3808_v45  ;;  %v243_v36 = vsub.s32 0, %v3857_v52 }
 0x12c   :  { %2370 = vmatprep.mubr.bf16.mxu1 %v3808_v45  ;;  %v251_v45 = vsub.s32 2, %v3857_v52 }
 0x12d   :  { %v3894_v63 = vrot.slane %v239_v3, %v243_v36 }
 0x12e   :  { %v3898_v1 = vrot.slane %v239_v3, %v251_v45 }
 0x132   :  { %2258 = vmatmul.mubr.bf16.gmra.mrb[76].mxu0 %v3814_v53 }
 0x133   :  { %2371 = vmatmul.mubr.bf16.gmra.mrb[76].mxu1 %v3814_v53  ;;  %2267 = vmatprep.mubr.bf16.mxu0 %v3816_v61  ;;  %v247_v53 = vsub.s32 1, %v3857_v52 }
 0x134   :  { %2380 = vmatprep.mubr.bf16.mxu1 %v3816_v61  ;;  %v255_v61 = vsub.s32 3, %v3857_v52 }
 0x135   :  { %v3902_v2 = vrot.slane %v239_v3, %v247_v53 }
 0x136   :  { %v3906_v4 = vrot.slane %v239_v3, %v255_v61 }
 0x13a   :  { %2268 = vmatmul.mubr.bf16.gmra.mrb[80].mxu0 %v3822_v5 }
 0x13b   :  { %2381 = vmatmul.mubr.bf16.gmra.mrb[80].mxu1 %v3822_v5  ;;  %2277 = vmatprep.mubr.bf16.mxu0 %v3824_v51  ;;  %v3908_v5 = vld [vmem:[#allocation9] sm:$0x3f] }
 0x13c   :  { %2390 = vmatprep.mubr.bf16.mxu1 %v3824_v51  ;;  %v3911_v6 = vrot.slane %v3908_v5, %v259_v58  ;;  %v3914_v9 = vrot.slane %v3908_v5, %v263_v13 }
 0x142   :  { %2278 = vmatmul.mubr.bf16.gmra.mrb[84].mxu0 %v3830_v8 }
 0x143   :  { %2391 = vmatmul.mubr.bf16.gmra.mrb[84].mxu1 %v3830_v8  ;;  %2287 = vmatprep.mubr.bf16.mxu0 %v3832_v15 }
 0x144   :  { %2400 = vmatprep.mubr.bf16.mxu1 %v3832_v15 }
 0x14a   :  { %2288 = vmatmul.mubr.bf16.gmra.mrb[88].mxu0 %v3838_v39 }
 0x14b   :  { %2401 = vmatmul.mubr.bf16.gmra.mrb[88].mxu1 %v3838_v39  ;;  %2297 = vmatprep.mubr.bf16.mxu0 %v3840_v46 }
 0x14c   :  { %2410 = vmatprep.mubr.bf16.mxu1 %v3840_v46 }
 0x152   :  { %2298 = vmatmul.mubr.bf16.gmra.mrb[92].mxu0 %v1472_v37 }
 0x153   :  { %2411 = vmatmul.mubr.bf16.gmra.mrb[92].mxu1 %v1472_v37 }
 0x16d   :  { %v785_v50 = vpop.f32.mrb[0].mxu0 }
 0x16e   :  { %v898_v7 = vpop.f32.mrb[0].mxu1  ;;  %v786_v11 = vadd.f32 %v785_v50, %v3894_v63  ;;  %v787_v51 = vpop.f32.mrb[1].mxu0 }
 0x16f   :  { %v899_v12 = vadd.f32 %v898_v7, %v3898_v1  ;;  %v900_v59 = vpop.f32.mrb[1].mxu1  ;;  %v788_v14 = vadd.f32 %v787_v51, %v3902_v2  ;;  %v789_v18 = vpop.f32.mrb[2].mxu0 }
 0x170   :  { %v901_v16 = vadd.f32 %v900_v59, %v3906_v4  ;;  %v902_v20 = vpop.f32.mrb[2].mxu1  ;;  %v790_v21 = vadd.f32 %v789_v18, %v3894_v63  ;;  %v791_v22 = vpop.f32.mrb[3].mxu0 }
 0x171   :  { %v903_v8 = vadd.f32 %v902_v20, %v3898_v1  ;;  %v904_v0 = vpop.f32.mrb[3].mxu1  ;;  %v3072_v24 = vpack.c.bf16 %v788_v14, %v786_v11  ;;  %v792_v27 = vadd.f32 %v791_v22, %v3902_v2 }
 0x172   :  { %v3088_v26 = vpack.c.bf16 %v901_v16, %v899_v12  ;;  %v905_v29 = vadd.f32 %v904_v0, %v3906_v4 }
 0x173   :  { %1186 = vst [vmem:[%s4422_s6] sm:$0xff] %v3072_v24  ;;  %v3073_v15 = vpack.c.bf16 %v792_v27, %v790_v21 }
 0x174   :  { %1298 = vst [vmem:[%s4423_s7] sm:$0xff] %v3088_v26  ;;  %v3089_v10 = vpack.c.bf16 %v905_v29, %v903_v8 }
 0x175   :  { %1187 = vst [vmem:[%s4422_s6 + $0x8] sm:$0xff] %v3073_v15  ;;  %v795_v31 = vpop.f32.mrb[4].mxu0 }
 0x176   :  { %1299 = vst [vmem:[%s4423_s7 + $0x8] sm:$0xff] %v3089_v10  ;;  %v908_v32 = vpop.f32.mrb[4].mxu1  ;;  %v796_v33 = vadd.f32 %v795_v31, %v3894_v63  ;;  %v797_v38 = vpop.f32.mrb[5].mxu0 }
 0x177   :  { %v909_v35 = vadd.f32 %v908_v32, %v3898_v1  ;;  %v910_v39 = vpop.f32.mrb[5].mxu1  ;;  %v798_v23 = vadd.f32 %v797_v38, %v3902_v2  ;;  %v799_v41 = vpop.f32.mrb[6].mxu0 }
 0x178   :  { %v911_v17 = vadd.f32 %v910_v39, %v3906_v4  ;;  %v912_v42 = vpop.f32.mrb[6].mxu1  ;;  %v800_v44 = vadd.f32 %v799_v41, %v3894_v63  ;;  %v801_v46 = vpop.f32.mrb[7].mxu0 }
 0x179   :  { %v913_v28 = vadd.f32 %v912_v42, %v3898_v1  ;;  %v914_v25 = vpop.f32.mrb[7].mxu1  ;;  %v3074_v47 = vpack.c.bf16 %v798_v23, %v796_v33  ;;  %v802_v49 = vadd.f32 %v801_v46, %v3902_v2 }
 0x17a   :  { %v3090_v48 = vpack.c.bf16 %v911_v17, %v909_v35  ;;  %v915_v54 = vadd.f32 %v914_v25, %v3906_v4 }
 0x17b   :  { %1188 = vst [vmem:[%s4422_s6 + $0x10] sm:$0xff] %v3074_v47  ;;  %v3075_v55 = vpack.c.bf16 %v802_v49, %v800_v44 }
 0x17c   :  { %1300 = vst [vmem:[%s4423_s7 + $0x10] sm:$0xff] %v3090_v48  ;;  %v3091_v37 = vpack.c.bf16 %v915_v54, %v913_v28 }
 0x17d   :  { %1189 = vst [vmem:[%s4422_s6 + $0x18] sm:$0xff] %v3075_v55  ;;  %v805_v34 = vpop.f32.mrb[8].mxu0 }
 0x17e   :  { %1301 = vst [vmem:[%s4423_s7 + $0x18] sm:$0xff] %v3091_v37  ;;  %v918_v56 = vpop.f32.mrb[8].mxu1  ;;  %v806_v57 = vadd.f32 %v805_v34, %v3894_v63  ;;  %v807_v43 = vpop.f32.mrb[9].mxu0 }
 0x17f   :  { %v919_v60 = vadd.f32 %v918_v56, %v3898_v1  ;;  %v920_v62 = vpop.f32.mrb[9].mxu1  ;;  %v808_v40 = vadd.f32 %v807_v43, %v3902_v2  ;;  %v809_v3 = vpop.f32.mrb[10].mxu0 }
 0x180   :  { %v921_v58 = vadd.f32 %v920_v62, %v3906_v4  ;;  %v922_v13 = vpop.f32.mrb[10].mxu1  ;;  %v810_v50 = vadd.f32 %v809_v3, %v3894_v63  ;;  %v811_v11 = vpop.f32.mrb[11].mxu0 }
 0x181   :  { %v923_v7 = vadd.f32 %v922_v13, %v3898_v1  ;;  %v924_v12 = vpop.f32.mrb[11].mxu1  ;;  %v3076_v51 = vpack.c.bf16 %v808_v40, %v806_v57  ;;  %v812_v14 = vadd.f32 %v811_v11, %v3902_v2 }
 0x182   :  { %v3092_v59 = vpack.c.bf16 %v921_v58, %v919_v60  ;;  %v925_v16 = vadd.f32 %v924_v12, %v3906_v4 }
 0x183   :  { %1190 = vst [vmem:[%s4422_s6 + $0x20] sm:$0xff] %v3076_v51  ;;  %v3077_v18 = vpack.c.bf16 %v812_v14, %v810_v50 }
 0x184   :  { %1302 = vst [vmem:[%s4423_s7 + $0x20] sm:$0xff] %v3092_v59  ;;  %v3093_v20 = vpack.c.bf16 %v925_v16, %v923_v7 }
 0x185   :  { %1191 = vst [vmem:[%s4422_s6 + $0x28] sm:$0xff] %v3077_v18  ;;  %v815_v21 = vpop.f32.mrb[12].mxu0 }
 0x186   :  { %1303 = vst [vmem:[%s4423_s7 + $0x28] sm:$0xff] %v3093_v20  ;;  %v928_v8 = vpop.f32.mrb[12].mxu1  ;;  %v816_v22 = vadd.f32 %v815_v21, %v3894_v63  ;;  %v817_v24 = vpop.f32.mrb[13].mxu0 }
 0x187   :  { %v929_v0 = vadd.f32 %v928_v8, %v3898_v1  ;;  %v930_v26 = vpop.f32.mrb[13].mxu1  ;;  %v818_v27 = vadd.f32 %v817_v24, %v3902_v2  ;;  %v819_v15 = vpop.f32.mrb[14].mxu0 }
 0x188   :  { %v931_v29 = vadd.f32 %v930_v26, %v3906_v4  ;;  %v932_v10 = vpop.f32.mrb[14].mxu1  ;;  %v820_v31 = vadd.f32 %v819_v15, %v3894_v63  ;;  %v821_v33 = vpop.f32.mrb[15].mxu0 }
 0x189   :  { %v933_v32 = vadd.f32 %v932_v10, %v3898_v1  ;;  %v934_v35 = vpop.f32.mrb[15].mxu1  ;;  %v3078_v38 = vpack.c.bf16 %v818_v27, %v816_v22  ;;  %v822_v23 = vadd.f32 %v821_v33, %v3902_v2 }
 0x18a   :  { %v3094_v39 = vpack.c.bf16 %v931_v29, %v929_v0  ;;  %v935_v17 = vadd.f32 %v934_v35, %v3906_v4 }
 0x18b   :  { %1192 = vst [vmem:[%s4422_s6 + $0x30] sm:$0xff] %v3078_v38  ;;  %v3079_v41 = vpack.c.bf16 %v822_v23, %v820_v31 }
 0x18c   :  { %1304 = vst [vmem:[%s4423_s7 + $0x30] sm:$0xff] %v3094_v39  ;;  %v3095_v42 = vpack.c.bf16 %v935_v17, %v933_v32 }
 0x18d   :  { %1193 = vst [vmem:[%s4422_s6 + $0x38] sm:$0xff] %v3079_v41  ;;  %v825_v44 = vpop.f32.mrb[16].mxu0 }
 0x18e   :  { %1305 = vst [vmem:[%s4423_s7 + $0x38] sm:$0xff] %v3095_v42  ;;  %v938_v28 = vpop.f32.mrb[16].mxu1  ;;  %v826_v46 = vadd.f32 %v825_v44, %v3894_v63  ;;  %v827_v47 = vpop.f32.mrb[17].mxu0 }
 0x18f   :  { %v939_v25 = vadd.f32 %v938_v28, %v3898_v1  ;;  %v940_v48 = vpop.f32.mrb[17].mxu1  ;;  %v828_v49 = vadd.f32 %v827_v47, %v3902_v2  ;;  %v829_v55 = vpop.f32.mrb[18].mxu0 }
 0x190   :  { %v941_v54 = vadd.f32 %v940_v48, %v3906_v4  ;;  %v942_v37 = vpop.f32.mrb[18].mxu1  ;;  %v830_v34 = vadd.f32 %v829_v55, %v3894_v63  ;;  %v831_v57 = vpop.f32.mrb[19].mxu0 }
 0x191   :  { %v943_v56 = vadd.f32 %v942_v37, %v3898_v1  ;;  %v944_v60 = vpop.f32.mrb[19].mxu1  ;;  %v3080_v43 = vpack.c.bf16 %v828_v49, %v826_v46  ;;  %v832_v40 = vadd.f32 %v831_v57, %v3902_v2 }
 0x192   :  { %v3096_v62 = vpack.c.bf16 %v941_v54, %v939_v25  ;;  %v945_v58 = vadd.f32 %v944_v60, %v3906_v4 }
 0x193   :  { %1194 = vst [vmem:[%s4422_s6 + $0x40] sm:$0xff] %v3080_v43  ;;  %v3081_v3 = vpack.c.bf16 %v832_v40, %v830_v34 }
 0x194   :  { %1306 = vst [vmem:[%s4423_s7 + $0x40] sm:$0xff] %v3096_v62  ;;  %v3097_v13 = vpack.c.bf16 %v945_v58, %v943_v56 }
 0x195   :  { %1195 = vst [vmem:[%s4422_s6 + $0x48] sm:$0xff] %v3081_v3  ;;  %v835_v50 = vpop.f32.mrb[20].mxu0 }
 0x196   :  { %1307 = vst [vmem:[%s4423_s7 + $0x48] sm:$0xff] %v3097_v13  ;;  %v948_v7 = vpop.f32.mrb[20].mxu1  ;;  %v836_v11 = vadd.f32 %v835_v50, %v3894_v63  ;;  %v837_v51 = vpop.f32.mrb[21].mxu0 }
 0x197   :  { %v949_v12 = vadd.f32 %v948_v7, %v3898_v1  ;;  %v950_v59 = vpop.f32.mrb[21].mxu1  ;;  %v838_v14 = vadd.f32 %v837_v51, %v3902_v2  ;;  %v839_v18 = vpop.f32.mrb[22].mxu0 }
 0x198   :  { %v951_v16 = vadd.f32 %v950_v59, %v3906_v4  ;;  %v952_v20 = vpop.f32.mrb[22].mxu1  ;;  %v840_v21 = vadd.f32 %v839_v18, %v3894_v63  ;;  %v841_v22 = vpop.f32.mrb[23].mxu0  ;;  %v4067_v18 = vrot.slane %v3908_v5, %v243_v36 }
 0x199   :  { %v953_v8 = vadd.f32 %v952_v20, %v3898_v1  ;;  %v954_v0 = vpop.f32.mrb[23].mxu1  ;;  %v3082_v24 = vpack.c.bf16 %v838_v14, %v836_v11  ;;  %v842_v27 = vadd.f32 %v841_v22, %v3902_v2 }
 0x19a   :  { %v3098_v26 = vpack.c.bf16 %v951_v16, %v949_v12  ;;  %v955_v29 = vadd.f32 %v954_v0, %v3906_v4 }
 0x19b   :  { %1196 = vst [vmem:[%s4422_s6 + $0x50] sm:$0xff] %v3082_v24  ;;  %v3083_v15 = vpack.c.bf16 %v842_v27, %v840_v21 }
 0x19c   :  { %1308 = vst [vmem:[%s4423_s7 + $0x50] sm:$0xff] %v3098_v26  ;;  %v3099_v10 = vpack.c.bf16 %v955_v29, %v953_v8 }
 0x19d   :  { %1197 = vst [vmem:[%s4422_s6 + $0x58] sm:$0xff] %v3083_v15  ;;  %v845_v31 = vpop.f32.mrb[24].mxu0 }
 0x19e   :  { %1309 = vst [vmem:[%s4423_s7 + $0x58] sm:$0xff] %v3099_v10  ;;  %v958_v32 = vpop.f32.mrb[24].mxu1  ;;  %v846_v33 = vadd.f32 %v845_v31, %v3894_v63  ;;  %v847_v38 = vpop.f32.mrb[25].mxu0 }
 0x19f   :  { %v959_v35 = vadd.f32 %v958_v32, %v3898_v1  ;;  %v960_v39 = vpop.f32.mrb[25].mxu1  ;;  %v848_v23 = vadd.f32 %v847_v38, %v3902_v2  ;;  %v849_v41 = vpop.f32.mrb[26].mxu0 }
 0x1a0   :  { %v961_v17 = vadd.f32 %v960_v39, %v3906_v4  ;;  %v962_v42 = vpop.f32.mrb[26].mxu1  ;;  %v850_v44 = vadd.f32 %v849_v41, %v3894_v63  ;;  %v851_v46 = vpop.f32.mrb[27].mxu0 }
 0x1a1   :  { %v963_v28 = vadd.f32 %v962_v42, %v3898_v1  ;;  %v964_v25 = vpop.f32.mrb[27].mxu1  ;;  %v3084_v47 = vpack.c.bf16 %v848_v23, %v846_v33  ;;  %v852_v49 = vadd.f32 %v851_v46, %v3902_v2 }
 0x1a2   :  { %v3100_v48 = vpack.c.bf16 %v961_v17, %v959_v35  ;;  %v965_v54 = vadd.f32 %v964_v25, %v3906_v4 }
 0x1a3   :  { %1198 = vst [vmem:[%s4422_s6 + $0x60] sm:$0xff] %v3084_v47  ;;  %v3085_v55 = vpack.c.bf16 %v852_v49, %v850_v44 }
 0x1a4   :  { %1310 = vst [vmem:[%s4423_s7 + $0x60] sm:$0xff] %v3100_v48  ;;  %v3101_v37 = vpack.c.bf16 %v965_v54, %v963_v28 }
 0x1a5   :  { %1199 = vst [vmem:[%s4422_s6 + $0x68] sm:$0xff] %v3085_v55  ;;  %v855_v34 = vpop.f32.mrb[28].mxu0 }
 0x1a6   :  { %1311 = vst [vmem:[%s4423_s7 + $0x68] sm:$0xff] %v3101_v37  ;;  %v968_v56 = vpop.f32.mrb[28].mxu1  ;;  %v856_v57 = vadd.f32 %v855_v34, %v3894_v63  ;;  %v857_v43 = vpop.f32.mrb[29].mxu0 }
 0x1a7   :  { %v969_v60 = vadd.f32 %v968_v56, %v3898_v1  ;;  %v970_v62 = vpop.f32.mrb[29].mxu1  ;;  %v858_v40 = vadd.f32 %v857_v43, %v3902_v2  ;;  %v859_v3 = vpop.f32.mrb[30].mxu0 }
 0x1a8   :  { %v971_v58 = vadd.f32 %v970_v62, %v3906_v4  ;;  %v972_v13 = vpop.f32.mrb[30].mxu1  ;;  %v860_v50 = vadd.f32 %v859_v3, %v3894_v63  ;;  %v861_v11 = vpop.f32.mrb[31].mxu0 }
 0x1a9   :  { %v973_v7 = vadd.f32 %v972_v13, %v3898_v1  ;;  %v974_v12 = vpop.f32.mrb[31].mxu1  ;;  %v3086_v51 = vpack.c.bf16 %v858_v40, %v856_v57  ;;  %v862_v14 = vadd.f32 %v861_v11, %v3902_v2  ;;  %v4078_v2 = vrot.slane %v3908_v5, %v247_v53 }
 0x1aa   :  { %v3102_v59 = vpack.c.bf16 %v971_v58, %v969_v60  ;;  %v975_v16 = vadd.f32 %v974_v12, %v3906_v4 }
 0x1ab   :  { %1200 = vst [vmem:[%s4422_s6 + $0x70] sm:$0xff] %v3086_v51  ;;  %v3087_v63 = vpack.c.bf16 %v862_v14, %v860_v50 }
 0x1ac   :  { %1312 = vst [vmem:[%s4423_s7 + $0x70] sm:$0xff] %v3102_v59  ;;  %v3103_v1 = vpack.c.bf16 %v975_v16, %v973_v7 }
 0x1ad   :  { %1201 = vst [vmem:[%s4422_s6 + $0x78] sm:$0xff] %v3087_v63  ;;  %v1011_v36 = vpop.f32.mrb[32].mxu0 }
 0x1ae   :  { %1313 = vst [vmem:[%s4423_s7 + $0x78] sm:$0xff] %v3103_v1  ;;  %v2116_v4 = vpop.f32.mrb[32].mxu1  ;;  %v1012_v20 = vadd.f32 %v1011_v36, %v3868_v19  ;;  %v1013_v8 = vpop.f32.mrb[33].mxu0 }
 0x1af   :  { %v2117_v21 = vadd.f32 %v2116_v4, %v4067_v18  ;;  %v2118_v22 = vpop.f32.mrb[33].mxu1  ;;  %v1014_v0 = vadd.f32 %v1013_v8, %v3870_v30  ;;  %v1015_v24 = vpop.f32.mrb[34].mxu0 }
 0x1b0   :  { %v2119_v53 = vadd.f32 %v2118_v22, %v4078_v2  ;;  %v2120_v26 = vpop.f32.mrb[34].mxu1  ;;  %v1016_v27 = vadd.f32 %v1015_v24, %v3868_v19  ;;  %v1017_v15 = vpop.f32.mrb[35].mxu0 }
 0x1b1   :  { %v2121_v29 = vadd.f32 %v2120_v26, %v4067_v18  ;;  %v2122_v10 = vpop.f32.mrb[35].mxu1  ;;  %v3104_v31 = vpack.c.bf16 %v1014_v0, %v1012_v20  ;;  %v1018_v33 = vadd.f32 %v1017_v15, %v3870_v30 }
 0x1b2   :  { %v3120_v32 = vpack.c.bf16 %v2119_v53, %v2117_v21  ;;  %v2123_v35 = vadd.f32 %v2122_v10, %v4078_v2 }
 0x1b3   :  { %1410 = vst [vmem:[%s4424_s8] sm:$0xff] %v3104_v31  ;;  %v3105_v38 = vpack.c.bf16 %v1018_v33, %v1016_v27 }
 0x1b4   :  { %2517 = vst [vmem:[%s4425_s9] sm:$0xff] %v3120_v32  ;;  %v3121_v39 = vpack.c.bf16 %v2123_v35, %v2121_v29 }
 0x1b5   :  { %1411 = vst [vmem:[%s4424_s8 + $0x8] sm:$0xff] %v3105_v38  ;;  %v1021_v23 = vpop.f32.mrb[36].mxu0 }
 0x1b6   :  { %2518 = vst [vmem:[%s4425_s9 + $0x8] sm:$0xff] %v3121_v39  ;;  %v2126_v17 = vpop.f32.mrb[36].mxu1  ;;  %v1022_v41 = vadd.f32 %v1021_v23, %v3868_v19  ;;  %v1023_v44 = vpop.f32.mrb[37].mxu0 }
 0x1b7   :  { %v2127_v42 = vadd.f32 %v2126_v17, %v4067_v18  ;;  %v2128_v28 = vpop.f32.mrb[37].mxu1  ;;  %v1024_v46 = vadd.f32 %v1023_v44, %v3870_v30  ;;  %v1025_v47 = vpop.f32.mrb[38].mxu0 }
 0x1b8   :  { %v2129_v25 = vadd.f32 %v2128_v28, %v4078_v2  ;;  %v2130_v48 = vpop.f32.mrb[38].mxu1  ;;  %v1026_v49 = vadd.f32 %v1025_v47, %v3868_v19  ;;  %v1027_v55 = vpop.f32.mrb[39].mxu0 }
 0x1b9   :  { %v2131_v54 = vadd.f32 %v2130_v48, %v4067_v18  ;;  %v2132_v37 = vpop.f32.mrb[39].mxu1  ;;  %v3106_v34 = vpack.c.bf16 %v1024_v46, %v1022_v41  ;;  %v1028_v57 = vadd.f32 %v1027_v55, %v3870_v30 }
 0x1ba   :  { %v3122_v56 = vpack.c.bf16 %v2129_v25, %v2127_v42  ;;  %v2133_v60 = vadd.f32 %v2132_v37, %v4078_v2 }
 0x1bb   :  { %1412 = vst [vmem:[%s4424_s8 + $0x10] sm:$0xff] %v3106_v34  ;;  %v3107_v43 = vpack.c.bf16 %v1028_v57, %v1026_v49 }
 0x1bc   :  { %2519 = vst [vmem:[%s4425_s9 + $0x10] sm:$0xff] %v3122_v56  ;;  %v3123_v62 = vpack.c.bf16 %v2133_v60, %v2131_v54 }
 0x1bd   :  { %1413 = vst [vmem:[%s4424_s8 + $0x18] sm:$0xff] %v3107_v43  ;;  %v1031_v40 = vpop.f32.mrb[40].mxu0 }
 0x1be   :  { %2520 = vst [vmem:[%s4425_s9 + $0x18] sm:$0xff] %v3123_v62  ;;  %v2136_v58 = vpop.f32.mrb[40].mxu1  ;;  %v1032_v3 = vadd.f32 %v1031_v40, %v3868_v19  ;;  %v1033_v50 = vpop.f32.mrb[41].mxu0 }
 0x1bf   :  { %v2137_v13 = vadd.f32 %v2136_v58, %v4067_v18  ;;  %v2138_v7 = vpop.f32.mrb[41].mxu1  ;;  %v1034_v11 = vadd.f32 %v1033_v50, %v3870_v30  ;;  %v1035_v51 = vpop.f32.mrb[42].mxu0 }
 0x1c0   :  { %v2139_v12 = vadd.f32 %v2138_v7, %v4078_v2  ;;  %v2140_v59 = vpop.f32.mrb[42].mxu1  ;;  %v1036_v14 = vadd.f32 %v1035_v51, %v3868_v19  ;;  %v1037_v63 = vpop.f32.mrb[43].mxu0 }
 0x1c1   :  { %v2141_v16 = vadd.f32 %v2140_v59, %v4067_v18  ;;  %v2142_v1 = vpop.f32.mrb[43].mxu1  ;;  %v3108_v36 = vpack.c.bf16 %v1034_v11, %v1032_v3  ;;  %v1038_v20 = vadd.f32 %v1037_v63, %v3870_v30 }
 0x1c2   :  { %v3124_v4 = vpack.c.bf16 %v2139_v12, %v2137_v13  ;;  %v2143_v21 = vadd.f32 %v2142_v1, %v4078_v2 }
 0x1c3   :  { %1414 = vst [vmem:[%s4424_s8 + $0x20] sm:$0xff] %v3108_v36  ;;  %v3109_v8 = vpack.c.bf16 %v1038_v20, %v1036_v14 }
 0x1c4   :  { %2521 = vst [vmem:[%s4425_s9 + $0x20] sm:$0xff] %v3124_v4  ;;  %v3125_v22 = vpack.c.bf16 %v2143_v21, %v2141_v16 }
 0x1c5   :  { %1415 = vst [vmem:[%s4424_s8 + $0x28] sm:$0xff] %v3109_v8  ;;  %v1041_v0 = vpop.f32.mrb[44].mxu0 }
 0x1c6   :  { %2522 = vst [vmem:[%s4425_s9 + $0x28] sm:$0xff] %v3125_v22  ;;  %v2146_v53 = vpop.f32.mrb[44].mxu1  ;;  %v1042_v24 = vadd.f32 %v1041_v0, %v3868_v19  ;;  %v1043_v27 = vpop.f32.mrb[45].mxu0 }
 0x1c7   :  { %v2147_v26 = vadd.f32 %v2146_v53, %v4067_v18  ;;  %v2148_v29 = vpop.f32.mrb[45].mxu1  ;;  %v1044_v15 = vadd.f32 %v1043_v27, %v3870_v30  ;;  %v1045_v31 = vpop.f32.mrb[46].mxu0 }
 0x1c8   :  { %v2149_v10 = vadd.f32 %v2148_v29, %v4078_v2  ;;  %v2150_v32 = vpop.f32.mrb[46].mxu1  ;;  %v1046_v33 = vadd.f32 %v1045_v31, %v3868_v19  ;;  %v1047_v38 = vpop.f32.mrb[47].mxu0 }
 0x1c9   :  { %v2151_v35 = vadd.f32 %v2150_v32, %v4067_v18  ;;  %v2152_v39 = vpop.f32.mrb[47].mxu1  ;;  %v3110_v23 = vpack.c.bf16 %v1044_v15, %v1042_v24  ;;  %v1048_v41 = vadd.f32 %v1047_v38, %v3870_v30 }
 0x1ca   :  { %v3126_v17 = vpack.c.bf16 %v2149_v10, %v2147_v26  ;;  %v2153_v42 = vadd.f32 %v2152_v39, %v4078_v2 }
 0x1cb   :  { %1416 = vst [vmem:[%s4424_s8 + $0x30] sm:$0xff] %v3110_v23  ;;  %v3111_v44 = vpack.c.bf16 %v1048_v41, %v1046_v33 }
 0x1cc   :  { %2523 = vst [vmem:[%s4425_s9 + $0x30] sm:$0xff] %v3126_v17  ;;  %v3127_v28 = vpack.c.bf16 %v2153_v42, %v2151_v35 }
 0x1cd   :  { %1417 = vst [vmem:[%s4424_s8 + $0x38] sm:$0xff] %v3111_v44  ;;  %v1051_v46 = vpop.f32.mrb[48].mxu0 }
 0x1ce   :  { %2524 = vst [vmem:[%s4425_s9 + $0x38] sm:$0xff] %v3127_v28  ;;  %v2156_v25 = vpop.f32.mrb[48].mxu1  ;;  %v1052_v47 = vadd.f32 %v1051_v46, %v3868_v19  ;;  %v1053_v49 = vpop.f32.mrb[49].mxu0 }
 0x1cf   :  { %v2157_v48 = vadd.f32 %v2156_v25, %v4067_v18  ;;  %v2158_v54 = vpop.f32.mrb[49].mxu1  ;;  %v1054_v55 = vadd.f32 %v1053_v49, %v3870_v30  ;;  %v1055_v34 = vpop.f32.mrb[50].mxu0 }
 0x1d0   :  { %v2159_v37 = vadd.f32 %v2158_v54, %v4078_v2  ;;  %v2160_v56 = vpop.f32.mrb[50].mxu1  ;;  %v1056_v57 = vadd.f32 %v1055_v34, %v3868_v19  ;;  %v1057_v43 = vpop.f32.mrb[51].mxu0 }
 0x1d1   :  { %v2161_v60 = vadd.f32 %v2160_v56, %v4067_v18  ;;  %v2162_v62 = vpop.f32.mrb[51].mxu1  ;;  %v3112_v40 = vpack.c.bf16 %v1054_v55, %v1052_v47  ;;  %v1058_v3 = vadd.f32 %v1057_v43, %v3870_v30 }
 0x1d2   :  { %v3128_v58 = vpack.c.bf16 %v2159_v37, %v2157_v48  ;;  %v2163_v13 = vadd.f32 %v2162_v62, %v4078_v2 }
 0x1d3   :  { %1418 = vst [vmem:[%s4424_s8 + $0x40] sm:$0xff] %v3112_v40  ;;  %v3113_v50 = vpack.c.bf16 %v1058_v3, %v1056_v57 }
 0x1d4   :  { %2525 = vst [vmem:[%s4425_s9 + $0x40] sm:$0xff] %v3128_v58  ;;  %v3129_v7 = vpack.c.bf16 %v2163_v13, %v2161_v60 }
 0x1d5   :  { %1419 = vst [vmem:[%s4424_s8 + $0x48] sm:$0xff] %v3113_v50  ;;  %v1061_v11 = vpop.f32.mrb[52].mxu0 }
 0x1d6   :  { %2526 = vst [vmem:[%s4425_s9 + $0x48] sm:$0xff] %v3129_v7  ;;  %v2166_v12 = vpop.f32.mrb[52].mxu1  ;;  %v1062_v51 = vadd.f32 %v1061_v11, %v3868_v19  ;;  %v1063_v14 = vpop.f32.mrb[53].mxu0 }
 0x1d7   :  { %v2167_v59 = vadd.f32 %v2166_v12, %v4067_v18  ;;  %v2168_v16 = vpop.f32.mrb[53].mxu1  ;;  %v1064_v63 = vadd.f32 %v1063_v14, %v3870_v30  ;;  %v1065_v36 = vpop.f32.mrb[54].mxu0  ;;  %v4237_v14 = vrot.slane %v3908_v5, %v251_v45 }
 0x1d8   :  { %v2169_v1 = vadd.f32 %v2168_v16, %v4078_v2  ;;  %v2170_v4 = vpop.f32.mrb[54].mxu1  ;;  %v1066_v20 = vadd.f32 %v1065_v36, %v3868_v19  ;;  %v1067_v8 = vpop.f32.mrb[55].mxu0 }
 0x1d9   :  { %v2171_v21 = vadd.f32 %v2170_v4, %v4067_v18  ;;  %v2172_v22 = vpop.f32.mrb[55].mxu1  ;;  %v3114_v0 = vpack.c.bf16 %v1064_v63, %v1062_v51  ;;  %v1068_v24 = vadd.f32 %v1067_v8, %v3870_v30 }
 0x1da   :  { %v3130_v53 = vpack.c.bf16 %v2169_v1, %v2167_v59  ;;  %v2173_v26 = vadd.f32 %v2172_v22, %v4078_v2 }
 0x1db   :  { %1420 = vst [vmem:[%s4424_s8 + $0x50] sm:$0xff] %v3114_v0  ;;  %v3115_v27 = vpack.c.bf16 %v1068_v24, %v1066_v20 }
 0x1dc   :  { %2527 = vst [vmem:[%s4425_s9 + $0x50] sm:$0xff] %v3130_v53  ;;  %v3131_v29 = vpack.c.bf16 %v2173_v26, %v2171_v21 }
 0x1dd   :  { %1421 = vst [vmem:[%s4424_s8 + $0x58] sm:$0xff] %v3115_v27  ;;  %v1071_v15 = vpop.f32.mrb[56].mxu0 }
 0x1de   :  { %2528 = vst [vmem:[%s4425_s9 + $0x58] sm:$0xff] %v3131_v29  ;;  %v2176_v10 = vpop.f32.mrb[56].mxu1  ;;  %v1072_v31 = vadd.f32 %v1071_v15, %v3868_v19  ;;  %v1073_v33 = vpop.f32.mrb[57].mxu0 }
 0x1df   :  { %v2177_v32 = vadd.f32 %v2176_v10, %v4067_v18  ;;  %v2178_v35 = vpop.f32.mrb[57].mxu1  ;;  %v1074_v38 = vadd.f32 %v1073_v33, %v3870_v30  ;;  %v1075_v23 = vpop.f32.mrb[58].mxu0 }
 0x1e0   :  { %v2179_v39 = vadd.f32 %v2178_v35, %v4078_v2  ;;  %v2180_v17 = vpop.f32.mrb[58].mxu1  ;;  %v1076_v41 = vadd.f32 %v1075_v23, %v3868_v19  ;;  %v1077_v44 = vpop.f32.mrb[59].mxu0 }
 0x1e1   :  { %v2181_v42 = vadd.f32 %v2180_v17, %v4067_v18  ;;  %v2182_v28 = vpop.f32.mrb[59].mxu1  ;;  %v3116_v46 = vpack.c.bf16 %v1074_v38, %v1072_v31  ;;  %v1078_v47 = vadd.f32 %v1077_v44, %v3870_v30 }
 0x1e2   :  { %v3132_v25 = vpack.c.bf16 %v2179_v39, %v2177_v32  ;;  %v2183_v48 = vadd.f32 %v2182_v28, %v4078_v2 }
 0x1e3   :  { %1422 = vst [vmem:[%s4424_s8 + $0x60] sm:$0xff] %v3116_v46  ;;  %v3117_v49 = vpack.c.bf16 %v1078_v47, %v1076_v41 }
 0x1e4   :  { %2529 = vst [vmem:[%s4425_s9 + $0x60] sm:$0xff] %v3132_v25  ;;  %v3133_v54 = vpack.c.bf16 %v2183_v48, %v2181_v42 }
 0x1e5   :  { %1423 = vst [vmem:[%s4424_s8 + $0x68] sm:$0xff] %v3117_v49  ;;  %v1081_v55 = vpop.f32.mrb[60].mxu0 }
 0x1e6   :  { %2530 = vst [vmem:[%s4425_s9 + $0x68] sm:$0xff] %v3133_v54  ;;  %v2186_v37 = vpop.f32.mrb[60].mxu1  ;;  %v1082_v34 = vadd.f32 %v1081_v55, %v3868_v19  ;;  %v1083_v57 = vpop.f32.mrb[61].mxu0 }
 0x1e7   :  { %v2187_v56 = vadd.f32 %v2186_v37, %v4067_v18  ;;  %v2188_v60 = vpop.f32.mrb[61].mxu1  ;;  %v1084_v43 = vadd.f32 %v1083_v57, %v3870_v30  ;;  %v1085_v40 = vpop.f32.mrb[62].mxu0 }
 0x1e8   :  { %v2189_v62 = vadd.f32 %v2188_v60, %v4078_v2  ;;  %v2190_v58 = vpop.f32.mrb[62].mxu1  ;;  %v1086_v3 = vadd.f32 %v1085_v40, %v3868_v19  ;;  %v1087_v50 = vpop.f32.mrb[63].mxu0 }
 0x1e9   :  { %v2191_v13 = vadd.f32 %v2190_v58, %v4067_v18  ;;  %v2192_v7 = vpop.f32.mrb[63].mxu1  ;;  %v3118_v11 = vpack.c.bf16 %v1084_v43, %v1082_v34  ;;  %v1088_v51 = vadd.f32 %v1087_v50, %v3870_v30  ;;  %v4248_v30 = vrot.slane %v3908_v5, %v255_v61 }
 0x1ea   :  { %v3134_v12 = vpack.c.bf16 %v2189_v62, %v2187_v56  ;;  %v2193_v59 = vadd.f32 %v2192_v7, %v4078_v2 }
 0x1eb   :  { %1424 = vst [vmem:[%s4424_s8 + $0x70] sm:$0xff] %v3118_v11  ;;  %v3119_v19 = vpack.c.bf16 %v1088_v51, %v1086_v3 }
 0x1ec   :  { %2531 = vst [vmem:[%s4425_s9 + $0x70] sm:$0xff] %v3134_v12  ;;  %v3135_v18 = vpack.c.bf16 %v2193_v59, %v2191_v13 }
 0x1ed   :  { %1425 = vst [vmem:[%s4424_s8 + $0x78] sm:$0xff] %v3119_v19  ;;  %v2229_v45 = vpop.f32.mrb[64].mxu0 }
 0x1ee   :  { %2532 = vst [vmem:[%s4425_s9 + $0x78] sm:$0xff] %v3135_v18  ;;  %v2342_v2 = vpop.f32.mrb[64].mxu1  ;;  %v2230_v16 = vadd.f32 %v2229_v45, %v4237_v14  ;;  %v2231_v1 = vpop.f32.mrb[65].mxu0 }
 0x1ef   :  { %v2343_v63 = vadd.f32 %v2342_v2, %v3911_v6  ;;  %v2344_v36 = vpop.f32.mrb[65].mxu1  ;;  %v2232_v52 = vadd.f32 %v2231_v1, %v4248_v30  ;;  %v2233_v5 = vpop.f32.mrb[66].mxu0 }
 0x1f0   :  { %v2345_v61 = vadd.f32 %v2344_v36, %v3914_v9  ;;  %v2346_v4 = vpop.f32.mrb[66].mxu1  ;;  %v2234_v20 = vadd.f32 %v2233_v5, %v4237_v14  ;;  %v2235_v8 = vpop.f32.mrb[67].mxu0 }
 0x1f1   :  { %v2347_v21 = vadd.f32 %v2346_v4, %v3911_v6  ;;  %v2348_v22 = vpop.f32.mrb[67].mxu1  ;;  %v3136_v0 = vpack.c.bf16 %v2232_v52, %v2230_v16  ;;  %v2236_v24 = vadd.f32 %v2235_v8, %v4248_v30 }
 0x1f2   :  { %v3152_v53 = vpack.c.bf16 %v2345_v61, %v2343_v63  ;;  %v2349_v26 = vadd.f32 %v2348_v22, %v3914_v9 }
 0x1f3   :  { %2629 = vst [vmem:[%s4426_s10] sm:$0xff] %v3136_v0  ;;  %v3137_v27 = vpack.c.bf16 %v2236_v24, %v2234_v20 }
 0x1f4   :  { %2741 = vst [vmem:[%s4427_s11] sm:$0xff] %v3152_v53  ;;  %v3153_v29 = vpack.c.bf16 %v2349_v26, %v2347_v21 }
 0x1f5   :  { %2630 = vst [vmem:[%s4426_s10 + $0x8] sm:$0xff] %v3137_v27  ;;  %v2239_v15 = vpop.f32.mrb[68].mxu0 }
 0x1f6   :  { %2742 = vst [vmem:[%s4427_s11 + $0x8] sm:$0xff] %v3153_v29  ;;  %v2352_v10 = vpop.f32.mrb[68].mxu1  ;;  %v2240_v31 = vadd.f32 %v2239_v15, %v4237_v14  ;;  %v2241_v33 = vpop.f32.mrb[69].mxu0 }
 0x1f7   :  { %v2353_v32 = vadd.f32 %v2352_v10, %v3911_v6  ;;  %v2354_v35 = vpop.f32.mrb[69].mxu1  ;;  %v2242_v38 = vadd.f32 %v2241_v33, %v4248_v30  ;;  %v2243_v23 = vpop.f32.mrb[70].mxu0 }
 0x1f8   :  { %v2355_v39 = vadd.f32 %v2354_v35, %v3914_v9  ;;  %v2356_v17 = vpop.f32.mrb[70].mxu1  ;;  %v2244_v41 = vadd.f32 %v2243_v23, %v4237_v14  ;;  %v2245_v44 = vpop.f32.mrb[71].mxu0 }
 0x1f9   :  { %v2357_v42 = vadd.f32 %v2356_v17, %v3911_v6  ;;  %v2358_v28 = vpop.f32.mrb[71].mxu1  ;;  %v3138_v46 = vpack.c.bf16 %v2242_v38, %v2240_v31  ;;  %v2246_v47 = vadd.f32 %v2245_v44, %v4248_v30 }
 0x1fa   :  { %v3154_v25 = vpack.c.bf16 %v2355_v39, %v2353_v32  ;;  %v2359_v48 = vadd.f32 %v2358_v28, %v3914_v9 }
 0x1fb   :  { %2631 = vst [vmem:[%s4426_s10 + $0x10] sm:$0xff] %v3138_v46  ;;  %v3139_v49 = vpack.c.bf16 %v2246_v47, %v2244_v41 }
 0x1fc   :  { %2743 = vst [vmem:[%s4427_s11 + $0x10] sm:$0xff] %v3154_v25  ;;  %v3155_v54 = vpack.c.bf16 %v2359_v48, %v2357_v42 }
 0x1fd   :  { %2632 = vst [vmem:[%s4426_s10 + $0x18] sm:$0xff] %v3139_v49  ;;  %v2249_v55 = vpop.f32.mrb[72].mxu0 }
 0x1fe   :  { %2744 = vst [vmem:[%s4427_s11 + $0x18] sm:$0xff] %v3155_v54  ;;  %v2362_v37 = vpop.f32.mrb[72].mxu1  ;;  %v2250_v34 = vadd.f32 %v2249_v55, %v4237_v14  ;;  %v2251_v57 = vpop.f32.mrb[73].mxu0 }
 0x1ff   :  { %v2363_v56 = vadd.f32 %v2362_v37, %v3911_v6  ;;  %v2364_v60 = vpop.f32.mrb[73].mxu1  ;;  %v2252_v43 = vadd.f32 %v2251_v57, %v4248_v30  ;;  %v2253_v40 = vpop.f32.mrb[74].mxu0 }
 0x200   :  { %v2365_v62 = vadd.f32 %v2364_v60, %v3914_v9  ;;  %v2366_v58 = vpop.f32.mrb[74].mxu1  ;;  %v2254_v3 = vadd.f32 %v2253_v40, %v4237_v14  ;;  %v2255_v50 = vpop.f32.mrb[75].mxu0 }
 0x201   :  { %v2367_v13 = vadd.f32 %v2366_v58, %v3911_v6  ;;  %v2368_v7 = vpop.f32.mrb[75].mxu1  ;;  %v3140_v11 = vpack.c.bf16 %v2252_v43, %v2250_v34  ;;  %v2256_v51 = vadd.f32 %v2255_v50, %v4248_v30 }
 0x202   :  { %v3156_v12 = vpack.c.bf16 %v2365_v62, %v2363_v56  ;;  %v2369_v59 = vadd.f32 %v2368_v7, %v3914_v9 }
 0x203   :  { %2633 = vst [vmem:[%s4426_s10 + $0x20] sm:$0xff] %v3140_v11  ;;  %v3141_v19 = vpack.c.bf16 %v2256_v51, %v2254_v3 }
 0x204   :  { %2745 = vst [vmem:[%s4427_s11 + $0x20] sm:$0xff] %v3156_v12  ;;  %v3157_v18 = vpack.c.bf16 %v2369_v59, %v2367_v13 }
 0x205   :  { %2634 = vst [vmem:[%s4426_s10 + $0x28] sm:$0xff] %v3141_v19  ;;  %v2259_v45 = vpop.f32.mrb[76].mxu0 }
 0x206   :  { %2746 = vst [vmem:[%s4427_s11 + $0x28] sm:$0xff] %v3157_v18  ;;  %v2372_v2 = vpop.f32.mrb[76].mxu1  ;;  %v2260_v16 = vadd.f32 %v2259_v45, %v4237_v14  ;;  %v2261_v1 = vpop.f32.mrb[77].mxu0 }
 0x207   :  { %v2373_v63 = vadd.f32 %v2372_v2, %v3911_v6  ;;  %v2374_v36 = vpop.f32.mrb[77].mxu1  ;;  %v2262_v52 = vadd.f32 %v2261_v1, %v4248_v30  ;;  %v2263_v5 = vpop.f32.mrb[78].mxu0 }
 0x208   :  { %v2375_v61 = vadd.f32 %v2374_v36, %v3914_v9  ;;  %v2376_v4 = vpop.f32.mrb[78].mxu1  ;;  %v2264_v20 = vadd.f32 %v2263_v5, %v4237_v14  ;;  %v2265_v8 = vpop.f32.mrb[79].mxu0 }
 0x209   :  { %v2377_v21 = vadd.f32 %v2376_v4, %v3911_v6  ;;  %v2378_v22 = vpop.f32.mrb[79].mxu1  ;;  %v3142_v0 = vpack.c.bf16 %v2262_v52, %v2260_v16  ;;  %v2266_v24 = vadd.f32 %v2265_v8, %v4248_v30 }
 0x20a   :  { %v3158_v53 = vpack.c.bf16 %v2375_v61, %v2373_v63  ;;  %v2379_v26 = vadd.f32 %v2378_v22, %v3914_v9 }
 0x20b   :  { %2635 = vst [vmem:[%s4426_s10 + $0x30] sm:$0xff] %v3142_v0  ;;  %v3143_v27 = vpack.c.bf16 %v2266_v24, %v2264_v20 }
 0x20c   :  { %2747 = vst [vmem:[%s4427_s11 + $0x30] sm:$0xff] %v3158_v53  ;;  %v3159_v29 = vpack.c.bf16 %v2379_v26, %v2377_v21 }
 0x20d   :  { %2636 = vst [vmem:[%s4426_s10 + $0x38] sm:$0xff] %v3143_v27  ;;  %v2269_v15 = vpop.f32.mrb[80].mxu0 }
 0x20e   :  { %2748 = vst [vmem:[%s4427_s11 + $0x38] sm:$0xff] %v3159_v29  ;;  %v2382_v10 = vpop.f32.mrb[80].mxu1  ;;  %v2270_v31 = vadd.f32 %v2269_v15, %v4237_v14  ;;  %v2271_v33 = vpop.f32.mrb[81].mxu0 }
 0x20f   :  { %v2383_v32 = vadd.f32 %v2382_v10, %v3911_v6  ;;  %v2384_v35 = vpop.f32.mrb[81].mxu1  ;;  %v2272_v38 = vadd.f32 %v2271_v33, %v4248_v30  ;;  %v2273_v23 = vpop.f32.mrb[82].mxu0 }
 0x210   :  { %v2385_v39 = vadd.f32 %v2384_v35, %v3914_v9  ;;  %v2386_v17 = vpop.f32.mrb[82].mxu1  ;;  %v2274_v41 = vadd.f32 %v2273_v23, %v4237_v14  ;;  %v2275_v44 = vpop.f32.mrb[83].mxu0 }
 0x211   :  { %v2387_v42 = vadd.f32 %v2386_v17, %v3911_v6  ;;  %v2388_v28 = vpop.f32.mrb[83].mxu1  ;;  %v3144_v46 = vpack.c.bf16 %v2272_v38, %v2270_v31  ;;  %v2276_v47 = vadd.f32 %v2275_v44, %v4248_v30 }
 0x212   :  { %v3160_v25 = vpack.c.bf16 %v2385_v39, %v2383_v32  ;;  %v2389_v48 = vadd.f32 %v2388_v28, %v3914_v9 }
 0x213   :  { %2637 = vst [vmem:[%s4426_s10 + $0x40] sm:$0xff] %v3144_v46  ;;  %v3145_v49 = vpack.c.bf16 %v2276_v47, %v2274_v41 }
 0x214   :  { %2749 = vst [vmem:[%s4427_s11 + $0x40] sm:$0xff] %v3160_v25  ;;  %v3161_v54 = vpack.c.bf16 %v2389_v48, %v2387_v42 }
 0x215   :  { %2638 = vst [vmem:[%s4426_s10 + $0x48] sm:$0xff] %v3145_v49  ;;  %v2279_v55 = vpop.f32.mrb[84].mxu0 }
 0x216   :  { %2750 = vst [vmem:[%s4427_s11 + $0x48] sm:$0xff] %v3161_v54  ;;  %v2392_v37 = vpop.f32.mrb[84].mxu1  ;;  %v2280_v34 = vadd.f32 %v2279_v55, %v4237_v14  ;;  %v2281_v57 = vpop.f32.mrb[85].mxu0 }
 0x217   :  { %v2393_v56 = vadd.f32 %v2392_v37, %v3911_v6  ;;  %v2394_v60 = vpop.f32.mrb[85].mxu1  ;;  %v2282_v43 = vadd.f32 %v2281_v57, %v4248_v30  ;;  %v2283_v40 = vpop.f32.mrb[86].mxu0 }
 0x218   :  { %v2395_v62 = vadd.f32 %v2394_v60, %v3914_v9  ;;  %v2396_v58 = vpop.f32.mrb[86].mxu1  ;;  %v2284_v3 = vadd.f32 %v2283_v40, %v4237_v14  ;;  %v2285_v50 = vpop.f32.mrb[87].mxu0 }
 0x219   :  { %v2397_v13 = vadd.f32 %v2396_v58, %v3911_v6  ;;  %v2398_v7 = vpop.f32.mrb[87].mxu1  ;;  %v3146_v11 = vpack.c.bf16 %v2282_v43, %v2280_v34  ;;  %v2286_v51 = vadd.f32 %v2285_v50, %v4248_v30 }
 0x21a   :  { %v3162_v12 = vpack.c.bf16 %v2395_v62, %v2393_v56  ;;  %v2399_v59 = vadd.f32 %v2398_v7, %v3914_v9 }
 0x21b   :  { %2639 = vst [vmem:[%s4426_s10 + $0x50] sm:$0xff] %v3146_v11  ;;  %v3147_v19 = vpack.c.bf16 %v2286_v51, %v2284_v3 }
 0x21c   :  { %2751 = vst [vmem:[%s4427_s11 + $0x50] sm:$0xff] %v3162_v12  ;;  %v3163_v18 = vpack.c.bf16 %v2399_v59, %v2397_v13 }
 0x21d   :  { %2640 = vst [vmem:[%s4426_s10 + $0x58] sm:$0xff] %v3147_v19  ;;  %v2289_v45 = vpop.f32.mrb[88].mxu0 }
 0x21e   :  { %2752 = vst [vmem:[%s4427_s11 + $0x58] sm:$0xff] %v3163_v18  ;;  %v2402_v2 = vpop.f32.mrb[88].mxu1  ;;  %v2290_v16 = vadd.f32 %v2289_v45, %v4237_v14  ;;  %v2291_v1 = vpop.f32.mrb[89].mxu0 }
 0x21f   :  { %v2403_v63 = vadd.f32 %v2402_v2, %v3911_v6  ;;  %v2404_v36 = vpop.f32.mrb[89].mxu1  ;;  %v2292_v52 = vadd.f32 %v2291_v1, %v4248_v30  ;;  %v2293_v5 = vpop.f32.mrb[90].mxu0 }
 0x220   :  { %v2405_v61 = vadd.f32 %v2404_v36, %v3914_v9  ;;  %v2406_v4 = vpop.f32.mrb[90].mxu1  ;;  %v2294_v20 = vadd.f32 %v2293_v5, %v4237_v14  ;;  %v2295_v8 = vpop.f32.mrb[91].mxu0 }
 0x221   :  { %v2407_v21 = vadd.f32 %v2406_v4, %v3911_v6  ;;  %v2408_v22 = vpop.f32.mrb[91].mxu1  ;;  %v3148_v0 = vpack.c.bf16 %v2292_v52, %v2290_v16  ;;  %v2296_v24 = vadd.f32 %v2295_v8, %v4248_v30 }
 0x222   :  { %v3164_v53 = vpack.c.bf16 %v2405_v61, %v2403_v63  ;;  %v2409_v26 = vadd.f32 %v2408_v22, %v3914_v9 }
 0x223   :  { %2641 = vst [vmem:[%s4426_s10 + $0x60] sm:$0xff] %v3148_v0  ;;  %v3149_v27 = vpack.c.bf16 %v2296_v24, %v2294_v20 }
 0x224   :  { %2753 = vst [vmem:[%s4427_s11 + $0x60] sm:$0xff] %v3164_v53  ;;  %v3165_v29 = vpack.c.bf16 %v2409_v26, %v2407_v21 }
 0x225   :  { %2642 = vst [vmem:[%s4426_s10 + $0x68] sm:$0xff] %v3149_v27  ;;  %v2299_v15 = vpop.f32.mrb[92].mxu0 }
 0x226   :  { %2754 = vst [vmem:[%s4427_s11 + $0x68] sm:$0xff] %v3165_v29  ;;  %v2412_v10 = vpop.f32.mrb[92].mxu1  ;;  %v2300_v31 = vadd.f32 %v2299_v15, %v4237_v14  ;;  %v2301_v33 = vpop.f32.mrb[93].mxu0 }
 0x227   :  { %v2413_v32 = vadd.f32 %v2412_v10, %v3911_v6  ;;  %v2414_v35 = vpop.f32.mrb[93].mxu1  ;;  %v2302_v38 = vadd.f32 %v2301_v33, %v4248_v30  ;;  %v2303_v23 = vpop.f32.mrb[94].mxu0 }
 0x228   :  { %v2415_v39 = vadd.f32 %v2414_v35, %v3914_v9  ;;  %v2416_v17 = vpop.f32.mrb[94].mxu1  ;;  %v2304_v41 = vadd.f32 %v2303_v23, %v4237_v14  ;;  %v2305_v44 = vpop.f32.mrb[95].mxu0 }
 0x229   :  { %v2417_v42 = vadd.f32 %v2416_v17, %v3911_v6  ;;  %v2418_v28 = vpop.f32.mrb[95].mxu1  ;;  %v3150_v46 = vpack.c.bf16 %v2302_v38, %v2300_v31  ;;  %v2306_v47 = vadd.f32 %v2305_v44, %v4248_v30 }
 0x22a   :  { %v3166_v25 = vpack.c.bf16 %v2415_v39, %v2413_v32  ;;  %v2419_v48 = vadd.f32 %v2418_v28, %v3914_v9 }
 0x22b   :  { %2643 = vst [vmem:[%s4426_s10 + $0x70] sm:$0xff] %v3150_v46  ;;  %v3151_v49 = vpack.c.bf16 %v2306_v47, %v2304_v41 }
 0x22c   :  { %2755 = vst [vmem:[%s4427_s11 + $0x70] sm:$0xff] %v3166_v25  ;;  %v3167_v14 = vpack.c.bf16 %v2419_v48, %v2417_v42 }
 0x22d   :  { %2644 = vst [vmem:[%s4426_s10 + $0x78] sm:$0xff] %v3151_v49 }
 0x22e   :  { %2756 = vst [vmem:[%s4427_s11 + $0x78] sm:$0xff] %v3167_v14 }
 0x22f   :  { %2781 = vsyncpa [#allocation3], 1 }
 0x230   :  { %2782 = vsyncpa [#allocation5], 1 }
 0x231   :  { %2783 = vsyncpa [#allocation8], 1 }

</bundles_post_ra>
